<compile_context>
chip_gen: v7x
topology: tpu7x:2x2x1
jax: 0.10.0
libtpu: 0.0.40
codegen_flags: <defaults>
</compile_context>

<pallas_src>
import math
from functools import partial

import jax
import jax.numpy as jnp
from jax.experimental import pallas as pl
from jax.experimental.pallas import tpu as pltpu

LN_EPS = 1e-12
NEG_INF = -1e9


# ----------------------------- fused layer kernel -----------------------------

def _decoder_layer_kernel(
    # activations (one batch row per grid step)
    h_ref, e1k_ref, e1v_ref, e2k_ref, e2v_ref,
    # padding masks, (1, 1, Sk) blocks of (B, 1, Sk) arrays, 1.0 = keep
    pm_self_ref, pm1_ref, pm2_ref,
    # self attention: packed QKV
    w_sqkv_ref, b_sqkv_ref,
    # cross attention 1: Q + stacked K/V (key/value come from different tensors)
    w_c1q_ref, b_c1q_ref, w_c1kv_ref, b_c1kv_ref,
    # cross attention 2
    w_c2q_ref, b_c2q_ref, w_c2kv_ref, b_c2kv_ref,
    # merge matrices (3, D, D) and biases (3, 1, D): [self, cross1, cross2]
    w_merge_ref, b_merge_ref,
    # layer norms (4, 1, D): [post_attn, post_cross1, post_cross2, post_ffn]
    ln_g_ref, ln_b_ref,
    # FFN
    w_f1_ref, b_f1_ref, w_f2_ref, b_f2_ref,
    # output
    o_ref,
    *, n_heads, eps,
):
    f32 = jnp.float32
    S, D = h_ref.shape[1], h_ref.shape[2]
    Dh = D // n_heads
    scale = 1.0 / math.sqrt(Dh)

    def layer_norm(x, idx):
        # torch LayerNorm (biased variance) over the feature dim, f32 math.
        mean = jnp.mean(x, axis=-1, keepdims=True)
        var = jnp.mean((x - mean) ** 2, axis=-1, keepdims=True)
        nx = (x - mean) * jax.lax.rsqrt(var + eps)
        return nx * ln_g_ref[idx] + ln_b_ref[idx]

    def softmax_rows(s):
        m = jnp.max(s, axis=-1, keepdims=True)
        p = jnp.exp(s - m)
        denom = jnp.sum(p, axis=-1, keepdims=True)
        return p * pl.reciprocal(denom, approx=True)

    def mha_merged(q, k, v, add_mask, w_m, b_m):
        """Multi-head attention with the output merge matrix folded in.

        q: (Sq, D), k/v: (Sk, D), add_mask broadcastable to (Sq, Sk).
        Returns concat_heads(attn(q, k, v)) @ w_m + b_m, shape (Sq, D).
        """
        qs = q * scale                                   # scale the small operand
        acc = jnp.zeros((q.shape[0], D), f32)
        for hd in range(n_heads):                        # static unroll over heads
            sl = slice(hd * Dh, (hd + 1) * Dh)
            s = jax.lax.dot_general(qs[:, sl], k[:, sl],
                                    (((1,), (1,)), ((), ())),
                                    preferred_element_type=f32)   # (Sq, Sk)
            p = softmax_rows(s + add_mask)
            o_h = jnp.dot(p, v[:, sl], preferred_element_type=f32)           # (Sq, Dh)
            acc = acc + jnp.dot(o_h, w_m[sl, :], preferred_element_type=f32)  # (Sq, D)
        return acc + b_m

    def pad_mask(pm_ref):
        return (1.0 - pm_ref[0]) * NEG_INF               # (1, Sk) additive

    h = h_ref[0]                                         # (S, D)

    # ---- self attention: causal + padding mask built in-kernel ----
    row = jax.lax.broadcasted_iota(jnp.int32, (S, S), 0)
    col = jax.lax.broadcasted_iota(jnp.int32, (S, S), 1)
    self_mask = jnp.where(col > row, NEG_INF, 0.0) + pad_mask(pm_self_ref)

    qkv = jnp.dot(h, w_sqkv_ref[...], preferred_element_type=f32) + b_sqkv_ref[...]
    sa = mha_merged(qkv[:, 0:D], qkv[:, D:2 * D], qkv[:, 2 * D:3 * D],
                    self_mask, w_merge_ref[0], b_merge_ref[0])
    h1 = layer_norm(sa + h, 0)

    # ---- first cross attention ----
    q1 = jnp.dot(h1, w_c1q_ref[...], preferred_element_type=f32) + b_c1q_ref[...]
    k1 = jnp.dot(e1k_ref[0], w_c1kv_ref[0], preferred_element_type=f32) + b_c1kv_ref[0]
    v1 = jnp.dot(e1v_ref[0], w_c1kv_ref[1], preferred_element_type=f32) + b_c1kv_ref[1]
    c1 = mha_merged(q1, k1, v1, pad_mask(pm1_ref), w_merge_ref[1], b_merge_ref[1])
    h2 = layer_norm(c1 + h1, 1)

    # ---- second cross attention ----
    q2 = jnp.dot(h2, w_c2q_ref[...], preferred_element_type=f32) + b_c2q_ref[...]
    k2 = jnp.dot(e2k_ref[0], w_c2kv_ref[0], preferred_element_type=f32) + b_c2kv_ref[0]
    v2 = jnp.dot(e2v_ref[0], w_c2kv_ref[1], preferred_element_type=f32) + b_c2kv_ref[1]
    c2 = mha_merged(q2, k2, v2, pad_mask(pm2_ref), w_merge_ref[2], b_merge_ref[2])
    h3 = layer_norm(c2 + h2, 2)

    # ---- FFN (gelu) + post-LN ----
    f = jnp.dot(h3, w_f1_ref[...], preferred_element_type=f32) + b_f1_ref[...]
    # TODO(synk): torch nn.GELU defaults to exact erf GELU; tanh approximation
    # used here for guaranteed Mosaic lowering (~1e-3 relative difference).
    cgelu = math.sqrt(2.0 / math.pi)
    f = 0.5 * f * (1.0 + jnp.tanh(cgelu * (f + 0.044715 * f * f * f)))
    f = jnp.dot(f, w_f2_ref[...], preferred_element_type=f32) + b_f2_ref[...]
    out = layer_norm(f + h3, 3)

    o_ref[0] = out.astype(o_ref.dtype)


# ----------------------------- layer / model wrappers --------------------------

def decoder_layer(hidden, e1k, e1v, e2k, e2v, pm_self, pm1, pm2, p, n_heads):
    B, S, D = hidden.shape
    Sk1 = e1k.shape[1]
    Sk2 = e2k.shape[1]

    def row_spec(s, d):
        # one batch row per grid step; block (1, s, d)
        return pl.BlockSpec((1, s, d), lambda b: (b, 0, 0))

    def full_spec(shape):
        nd = len(shape)
        return pl.BlockSpec(shape, lambda b, nd=nd: (0,) * nd)

    weights = [
        p["w_self_qkv"], p["b_self_qkv"],
        p["w_c1_q"], p["b_c1_q"], p["w_c1_kv"], p["b_c1_kv"],
        p["w_c2_q"], p["b_c2_q"], p["w_c2_kv"], p["b_c2_kv"],
        p["w_merge"], p["b_merge"],
        p["ln_g"], p["ln_b"],
        p["w_ffn1"], p["b_ffn1"], p["w_ffn2"], p["b_ffn2"],
    ]

    in_specs = [
        row_spec(S, D),                                    # hidden
        row_spec(Sk1, D), row_spec(Sk1, D),                # enc1 key / value
        row_spec(Sk2, D), row_spec(Sk2, D),                # enc2 key / value
        row_spec(1, S), row_spec(1, Sk1), row_spec(1, Sk2),  # padding masks
    ] + [full_spec(w.shape) for w in weights]

    kernel = partial(_decoder_layer_kernel, n_heads=n_heads, eps=LN_EPS)

    return pl.pallas_call(
        kernel,
        grid=(B,),
        in_specs=in_specs,
        out_specs=row_spec(S, D),
        out_shape=jax.ShapeDtypeStruct((B, S, D), hidden.dtype),
        compiler_params=pltpu.CompilerParams(
            dimension_semantics=("parallel",)),
    )(hidden, e1k, e1v, e2k, e2v, pm_self, pm1, pm2, *weights)


def embed(input_ids, p):
    # use_embedding_layer_norm=False (default); dropout = identity at inference;
    # token_type_ids default to 0.  Gathers stay in plain XLA (no Pallas win).
    S = input_ids.shape[1]
    tok = p["tok_emb"][input_ids]                       # (B, S, D)
    pos = p["pos_emb"][:S][None, :, :]                  # (1, S, D)
    tt = p["type_emb"][0][None, None, :]                # (1, 1, D)
    return tok + pos + tt


@partial(jax.jit, static_argnames=("n_heads",))
def multimodal_decoder_forward(params, input_ids, enc1, enc2,
                               attention_mask=None,
                               first_encoder_attention_mask=None,
                               second_encoder_attention_mask=None,
                               n_heads=4):
    B, S = input_ids.shape
    Sk1 = enc1["key"].shape[1]
    Sk2 = enc2["key"].shape[1]

    def pad_rows(mask, k_len):
        if mask is None:
            m = jnp.ones((B, k_len), jnp.float32)
        else:
            m = mask.astype(jnp.float32)
        return m.reshape(B, 1, k_len)

    pm_self = pad_rows(attention_mask, S)                    # causal part added in-kernel
    pm1 = pad_rows(first_encoder_attention_mask, Sk1)
    pm2 = pad_rows(second_encoder_attention_mask, Sk2)

    hidden = embed(input_ids, params["embedding"])
    for lp in params["layers"]:
        hidden = decoder_layer(hidden, enc1["key"], enc1["value"],
                               enc2["key"], enc2["value"],
                               pm_self, pm1, pm2, lp, n_heads)
    return hidden


# ----------------------------- parameter init -----------------------------

def init_params(key, d_model, vocab_size, max_length, pad_token_id,
                token_type_vocab_size, dim_feedforward, num_layers):
    keys = iter(jax.random.split(key, 256))

    def dense(shape, scale=0.02):
        return jax.random.normal(next(keys), shape, jnp.float32) * scale

    tok_emb = dense((vocab_size, d_model)).at[pad_token_id].set(0.0)  # padding_idx row = 0
    emb = dict(tok_emb=tok_emb,
               pos_emb=dense((max_length, d_model)),
               type_emb=dense((token_type_vocab_size, d_model)))

    D, Dff = d_model, dim_feedforward
    layers = []
    for _ in range(num_layers):
        layers.append(dict(
            # self attention: concatenated [Q | K | V]
            w_self_qkv=dense((D, 3 * D)),
            b_self_qkv=jnp.zeros((1, 3 * D), jnp.float32),
            # cross attention 1: Q separate, [K; V] stacked (different source tensors)
            w_c1_q=dense((D, D)), b_c1_q=jnp.zeros((1, D), jnp.float32),
            w_c1_kv=dense((2, D, D)), b_c1_kv=jnp.zeros((2, 1, D), jnp.float32),
            # cross attention 2
            w_c2_q=dense((D, D)), b_c2_q=jnp.zeros((1, D), jnp.float32),
            w_c2_kv=dense((2, D, D)), b_c2_kv=jnp.zeros((2, 1, D), jnp.float32),
            # merge matrices [self, cross1, cross2]
            w_merge=dense((3, D, D)),
            b_merge=jnp.zeros((3, 1, D), jnp.float32),
            # layer norms [post_attn, post_cross1, post_cross2, post_ffn]
            ln_g=jnp.ones((4, 1, D), jnp.float32),
            ln_b=jnp.zeros((4, 1, D), jnp.float32),
            # FFN
            w_ffn1=dense((D, Dff)), b_ffn1=jnp.zeros((1, Dff), jnp.float32),
            w_ffn2=dense((Dff, D)), b_ffn2=jnp.zeros((1, D), jnp.float32),
        ))
    return dict(embedding=emb, layers=layers)


# --------------------------------- main ------------------------------------

if __name__ == "__main__":
    d_model, n_heads, dim_feedforward, num_layers = 32, 4, 64, 2
    vocab_size, max_length, pad_token_id, token_type_vocab_size = 50, 16, 0, 2
    B, S, S_enc1, S_enc2 = 2, 8, 10, 12

    root = jax.random.PRNGKey(0)
    kp, ki, k1a, k1b, k2a, k2b = jax.random.split(root, 6)

    params = init_params(kp, d_model, vocab_size, max_length, pad_token_id,
                         token_type_vocab_size, dim_feedforward, num_layers)

    input_ids = jax.random.randint(ki, (B, S), 0, vocab_size)
    first_encoder_hidden_state = {
        "key": jax.random.normal(k1a, (B, S_enc1, d_model), jnp.float32) * 0.5,
        "value": jax.random.normal(k1b, (B, S_enc1, d_model), jnp.float32) * 0.5,
    }
    second_encoder_hidden_state = {
        "key": jax.random.normal(k2a, (B, S_enc2, d_model), jnp.float32) * 0.5,
        "value": jax.random.normal(k2b, (B, S_enc2, d_model), jnp.float32) * 0.5,
    }

    out = multimodal_decoder_forward(
        params, input_ids,
        first_encoder_hidden_state, second_encoder_hidden_state,
        attention_mask=None,
        first_encoder_attention_mask=None,
        second_encoder_attention_mask=None,
        n_heads=n_heads,
    )
    out = jax.block_until_ready(out)

    assert out.shape == (B, S, d_model), out.shape
    assert bool(jnp.all(jnp.isfinite(out)))
    print("KERNEL_OK")
</pallas_src>

<mosaic_0001>
module attributes {stable_mosaic.version = 11 : i64} {
  func.func @_decoder_layer_kernel(%arg0: i32, %arg1: memref<1x8x32xf32, #tpu.memory_space<vmem>>, %arg2: memref<1x10x32xf32, #tpu.memory_space<vmem>>, %arg3: memref<1x10x32xf32, #tpu.memory_space<vmem>>, %arg4: memref<1x12x32xf32, #tpu.memory_space<vmem>>, %arg5: memref<1x12x32xf32, #tpu.memory_space<vmem>>, %arg6: memref<1x1x8xf32, #tpu.memory_space<vmem>>, %arg7: memref<1x1x10xf32, #tpu.memory_space<vmem>>, %arg8: memref<1x1x12xf32, #tpu.memory_space<vmem>>, %arg9: memref<32x96xf32, #tpu.memory_space<vmem>>, %arg10: memref<1x96xf32, #tpu.memory_space<vmem>>, %arg11: memref<32x32xf32, #tpu.memory_space<vmem>>, %arg12: memref<1x32xf32, #tpu.memory_space<vmem>>, %arg13: memref<2x32x32xf32, #tpu.memory_space<vmem>>, %arg14: memref<2x1x32xf32, #tpu.memory_space<vmem>>, %arg15: memref<32x32xf32, #tpu.memory_space<vmem>>, %arg16: memref<1x32xf32, #tpu.memory_space<vmem>>, %arg17: memref<2x32x32xf32, #tpu.memory_space<vmem>>, %arg18: memref<2x1x32xf32, #tpu.memory_space<vmem>>, %arg19: memref<3x32x32xf32, #tpu.memory_space<vmem>>, %arg20: memref<3x1x32xf32, #tpu.memory_space<vmem>>, %arg21: memref<4x1x32xf32, #tpu.memory_space<vmem>>, %arg22: memref<4x1x32xf32, #tpu.memory_space<vmem>>, %arg23: memref<32x64xf32, #tpu.memory_space<vmem>>, %arg24: memref<1x64xf32, #tpu.memory_space<vmem>>, %arg25: memref<64x32xf32, #tpu.memory_space<vmem>>, %arg26: memref<1x32xf32, #tpu.memory_space<vmem>>, %arg27: memref<1x8x32xf32, #tpu.memory_space<vmem>>) attributes {dimension_semantics = [#tpu.dimension_semantics<parallel>], iteration_bounds = array<i64: 2>, scalar_prefetch = 0 : i64, scratch_operands = 0 : i64, tpu.core_type = #tpu.core_type<tc>, window_params = [{transform_indices = @transform_0, window_bounds = array<i64: 1, 8, 32>}, {transform_indices = @transform_1, window_bounds = array<i64: 1, 10, 32>}, {transform_indices = @transform_2, window_bounds = array<i64: 1, 10, 32>}, {transform_indices = @transform_3, window_bounds = array<i64: 1, 12, 32>}, {transform_indices = @transform_4, window_bounds = array<i64: 1, 12, 32>}, {transform_indices = @transform_5, window_bounds = array<i64: 1, 1, 8>}, {transform_indices = @transform_6, window_bounds = array<i64: 1, 1, 10>}, {transform_indices = @transform_7, window_bounds = array<i64: 1, 1, 12>}, {pipeline_mode = #tpu.pipeline_mode<synchronous>, transform_indices = @transform_8, window_bounds = array<i64: 32, 96>}, {pipeline_mode = #tpu.pipeline_mode<synchronous>, transform_indices = @transform_9, window_bounds = array<i64: 1, 96>}, {pipeline_mode = #tpu.pipeline_mode<synchronous>, transform_indices = @transform_10, window_bounds = array<i64: 32, 32>}, {pipeline_mode = #tpu.pipeline_mode<synchronous>, transform_indices = @transform_11, window_bounds = array<i64: 1, 32>}, {pipeline_mode = #tpu.pipeline_mode<synchronous>, transform_indices = @transform_12, window_bounds = array<i64: 2, 32, 32>}, {pipeline_mode = #tpu.pipeline_mode<synchronous>, transform_indices = @transform_13, window_bounds = array<i64: 2, 1, 32>}, {pipeline_mode = #tpu.pipeline_mode<synchronous>, transform_indices = @transform_14, window_bounds = array<i64: 32, 32>}, {pipeline_mode = #tpu.pipeline_mode<synchronous>, transform_indices = @transform_15, window_bounds = array<i64: 1, 32>}, {pipeline_mode = #tpu.pipeline_mode<synchronous>, transform_indices = @transform_16, window_bounds = array<i64: 2, 32, 32>}, {pipeline_mode = #tpu.pipeline_mode<synchronous>, transform_indices = @transform_17, window_bounds = array<i64: 2, 1, 32>}, {pipeline_mode = #tpu.pipeline_mode<synchronous>, transform_indices = @transform_18, window_bounds = array<i64: 3, 32, 32>}, {pipeline_mode = #tpu.pipeline_mode<synchronous>, transform_indices = @transform_19, window_bounds = array<i64: 3, 1, 32>}, {pipeline_mode = #tpu.pipeline_mode<synchronous>, transform_indices = @transform_20, window_bounds = array<i64: 4, 1, 32>}, {pipeline_mode = #tpu.pipeline_mode<synchronous>, transform_indices = @transform_21, window_bounds = array<i64: 4, 1, 32>}, {pipeline_mode = #tpu.pipeline_mode<synchronous>, transform_indices = @transform_22, window_bounds = array<i64: 32, 64>}, {pipeline_mode = #tpu.pipeline_mode<synchronous>, transform_indices = @transform_23, window_bounds = array<i64: 1, 64>}, {pipeline_mode = #tpu.pipeline_mode<synchronous>, transform_indices = @transform_24, window_bounds = array<i64: 64, 32>}, {pipeline_mode = #tpu.pipeline_mode<synchronous>, transform_indices = @transform_25, window_bounds = array<i64: 1, 32>}, {transform_indices = @transform_26, window_bounds = array<i64: 1, 8, 32>}]} {
    %c0 = arith.constant 0 : index
    %c0_0 = arith.constant 0 : index
    %c0_1 = arith.constant 0 : index
    %0 = vector.load %arg1[%c0, %c0_0, %c0_1] : memref<1x8x32xf32, #tpu.memory_space<vmem>>, vector<1x8x32xf32>
    %1 = vector.shape_cast %0 : vector<1x8x32xf32> to vector<8x32xf32>
    %2 = tpu.iota {dimensions = array<i32: 0>} : vector<8x8xi32>
    %3 = tpu.iota {dimensions = array<i32: 1>} : vector<8x8xi32>
    %4 = arith.cmpi sgt, %3, %2 : vector<8x8xi32>
    %cst = arith.constant -1.000000e+09 : f32
    %cst_2 = arith.constant 0.000000e+00 : f32
    %5 = vector.broadcast %cst : f32 to vector<8x8xf32>
    %6 = vector.broadcast %cst_2 : f32 to vector<8x8xf32>
    %7 = arith.select %4, %5, %6 : vector<8x8xi1>, vector<8x8xf32>
    %c0_3 = arith.constant 0 : index
    %c0_4 = arith.constant 0 : index
    %c0_5 = arith.constant 0 : index
    %8 = vector.load %arg6[%c0_3, %c0_4, %c0_5] : memref<1x1x8xf32, #tpu.memory_space<vmem>>, vector<1x1x8xf32>
    %9 = vector.shape_cast %8 : vector<1x1x8xf32> to vector<1x8xf32>
    %cst_6 = arith.constant 1.000000e+00 : f32
    %10 = vector.broadcast %cst_6 : f32 to vector<1x8xf32>
    %11 = arith.subf %10, %9 : vector<1x8xf32>
    %cst_7 = arith.constant -1.000000e+09 : f32
    %12 = vector.broadcast %cst_7 : f32 to vector<1x8xf32>
    %13 = arith.mulf %11, %12 : vector<1x8xf32>
    %14 = vector.broadcast %13 : vector<1x8xf32> to vector<8x8xf32>
    %15 = arith.addf %7, %14 : vector<8x8xf32>
    %c0_8 = arith.constant 0 : index
    %c0_9 = arith.constant 0 : index
    %16 = vector.load %arg9[%c0_8, %c0_9] : memref<32x96xf32, #tpu.memory_space<vmem>>, vector<32x96xf32>
    %cst_10 = arith.constant dense<0.000000e+00> : vector<8x96xf32>
    %17 = tpu.matmul %1, %16, %cst_10 {dimension_numbers = #tpu.dot_dimension_numbers<[1], [0], [0], [1], [0, 0, 1, 1], [], []>} : vector<8x32xf32>, vector<32x96xf32>, vector<8x96xf32> -> vector<8x96xf32>
    %c0_11 = arith.constant 0 : index
    %c0_12 = arith.constant 0 : index
    %18 = vector.load %arg10[%c0_11, %c0_12] : memref<1x96xf32, #tpu.memory_space<vmem>>, vector<1x96xf32>
    %19 = vector.broadcast %18 : vector<1x96xf32> to vector<8x96xf32>
    %20 = arith.addf %17, %19 : vector<8x96xf32>
    %21 = vector.extract_strided_slice %20 {offsets = [0, 0], sizes = [8, 32], strides = [1, 1]} : vector<8x96xf32> to vector<8x32xf32>
    %22 = vector.extract_strided_slice %20 {offsets = [0, 32], sizes = [8, 32], strides = [1, 1]} : vector<8x96xf32> to vector<8x32xf32>
    %23 = vector.extract_strided_slice %20 {offsets = [0, 64], sizes = [8, 32], strides = [1, 1]} : vector<8x96xf32> to vector<8x32xf32>
    %c0_13 = arith.constant 0 : index
    %c0_14 = arith.constant 0 : index
    %c0_15 = arith.constant 0 : index
    %24 = vector.load %arg19[%c0_13, %c0_14, %c0_15] : memref<3x32x32xf32, #tpu.memory_space<vmem>>, vector<1x32x32xf32>
    %25 = vector.shape_cast %24 : vector<1x32x32xf32> to vector<32x32xf32>
    %c0_16 = arith.constant 0 : index
    %c0_17 = arith.constant 0 : index
    %c0_18 = arith.constant 0 : index
    %26 = vector.load %arg20[%c0_16, %c0_17, %c0_18] : memref<3x1x32xf32, #tpu.memory_space<vmem>>, vector<1x1x32xf32>
    %27 = vector.shape_cast %26 : vector<1x1x32xf32> to vector<1x32xf32>
    %cst_19 = arith.constant 0.353553385 : f32
    %28 = vector.broadcast %cst_19 : f32 to vector<8x32xf32>
    %29 = arith.mulf %21, %28 : vector<8x32xf32>
    %cst_20 = arith.constant 0.000000e+00 : f32
    %30 = vector.broadcast %cst_20 : f32 to vector<8x32xf32>
    %31 = vector.extract_strided_slice %29 {offsets = [0, 0], sizes = [8, 8], strides = [1, 1]} : vector<8x32xf32> to vector<8x8xf32>
    %32 = vector.extract_strided_slice %22 {offsets = [0, 0], sizes = [8, 8], strides = [1, 1]} : vector<8x32xf32> to vector<8x8xf32>
    %cst_21 = arith.constant dense<0.000000e+00> : vector<8x8xf32>
    %33 = tpu.matmul %31, %32, %cst_21 {dimension_numbers = #tpu.dot_dimension_numbers<[1], [1], [0], [0], [0, 0, 1, 0], [], []>} : vector<8x8xf32>, vector<8x8xf32>, vector<8x8xf32> -> vector<8x8xf32>
    %34 = arith.addf %33, %15 : vector<8x8xf32>
    %cst_22 = arith.constant dense<0xFF800000> : vector<8xf32>
    %35 = vector.multi_reduction <maximumf>, %34, %cst_22 [1] : vector<8x8xf32> to vector<8xf32>
    %36 = vector.shape_cast %35 : vector<8xf32> to vector<8x1xf32>
    %37 = vector.broadcast %36 : vector<8x1xf32> to vector<8x8xf32>
    %38 = arith.subf %34, %37 : vector<8x8xf32>
    %39 = math.exp %38 : vector<8x8xf32>
    %cst_23 = arith.constant dense<0.000000e+00> : vector<8xf32>
    %40 = vector.multi_reduction <add>, %39, %cst_23 [1] : vector<8x8xf32> to vector<8xf32>
    %41 = vector.shape_cast %40 : vector<8xf32> to vector<8x1xf32>
    %42 = tpu.reciprocal %41 {approx = true} : vector<8x1xf32> -> vector<8x1xf32>
    %43 = vector.broadcast %42 : vector<8x1xf32> to vector<8x8xf32>
    %44 = arith.mulf %39, %43 : vector<8x8xf32>
    %45 = vector.extract_strided_slice %23 {offsets = [0, 0], sizes = [8, 8], strides = [1, 1]} : vector<8x32xf32> to vector<8x8xf32>
    %cst_24 = arith.constant dense<0.000000e+00> : vector<8x8xf32>
    %46 = tpu.matmul %44, %45, %cst_24 {dimension_numbers = #tpu.dot_dimension_numbers<[1], [0], [0], [1], [0, 0, 1, 1], [], []>} : vector<8x8xf32>, vector<8x8xf32>, vector<8x8xf32> -> vector<8x8xf32>
    %47 = vector.extract_strided_slice %25 {offsets = [0, 0], sizes = [8, 32], strides = [1, 1]} : vector<32x32xf32> to vector<8x32xf32>
    %cst_25 = arith.constant dense<0.000000e+00> : vector<8x32xf32>
    %48 = tpu.matmul %46, %47, %cst_25 {dimension_numbers = #tpu.dot_dimension_numbers<[1], [0], [0], [1], [0, 0, 1, 1], [], []>} : vector<8x8xf32>, vector<8x32xf32>, vector<8x32xf32> -> vector<8x32xf32>
    %49 = arith.addf %30, %48 : vector<8x32xf32>
    %50 = vector.extract_strided_slice %29 {offsets = [0, 8], sizes = [8, 8], strides = [1, 1]} : vector<8x32xf32> to vector<8x8xf32>
    %51 = vector.extract_strided_slice %22 {offsets = [0, 8], sizes = [8, 8], strides = [1, 1]} : vector<8x32xf32> to vector<8x8xf32>
    %cst_26 = arith.constant dense<0.000000e+00> : vector<8x8xf32>
    %52 = tpu.matmul %50, %51, %cst_26 {dimension_numbers = #tpu.dot_dimension_numbers<[1], [1], [0], [0], [0, 0, 1, 0], [], []>} : vector<8x8xf32>, vector<8x8xf32>, vector<8x8xf32> -> vector<8x8xf32>
    %53 = arith.addf %52, %15 : vector<8x8xf32>
    %cst_27 = arith.constant dense<0xFF800000> : vector<8xf32>
    %54 = vector.multi_reduction <maximumf>, %53, %cst_27 [1] : vector<8x8xf32> to vector<8xf32>
    %55 = vector.shape_cast %54 : vector<8xf32> to vector<8x1xf32>
    %56 = vector.broadcast %55 : vector<8x1xf32> to vector<8x8xf32>
    %57 = arith.subf %53, %56 : vector<8x8xf32>
    %58 = math.exp %57 : vector<8x8xf32>
    %cst_28 = arith.constant dense<0.000000e+00> : vector<8xf32>
    %59 = vector.multi_reduction <add>, %58, %cst_28 [1] : vector<8x8xf32> to vector<8xf32>
    %60 = vector.shape_cast %59 : vector<8xf32> to vector<8x1xf32>
    %61 = tpu.reciprocal %60 {approx = true} : vector<8x1xf32> -> vector<8x1xf32>
    %62 = vector.broadcast %61 : vector<8x1xf32> to vector<8x8xf32>
    %63 = arith.mulf %58, %62 : vector<8x8xf32>
    %64 = vector.extract_strided_slice %23 {offsets = [0, 8], sizes = [8, 8], strides = [1, 1]} : vector<8x32xf32> to vector<8x8xf32>
    %cst_29 = arith.constant dense<0.000000e+00> : vector<8x8xf32>
    %65 = tpu.matmul %63, %64, %cst_29 {dimension_numbers = #tpu.dot_dimension_numbers<[1], [0], [0], [1], [0, 0, 1, 1], [], []>} : vector<8x8xf32>, vector<8x8xf32>, vector<8x8xf32> -> vector<8x8xf32>
    %66 = vector.extract_strided_slice %25 {offsets = [8, 0], sizes = [8, 32], strides = [1, 1]} : vector<32x32xf32> to vector<8x32xf32>
    %cst_30 = arith.constant dense<0.000000e+00> : vector<8x32xf32>
    %67 = tpu.matmul %65, %66, %cst_30 {dimension_numbers = #tpu.dot_dimension_numbers<[1], [0], [0], [1], [0, 0, 1, 1], [], []>} : vector<8x8xf32>, vector<8x32xf32>, vector<8x32xf32> -> vector<8x32xf32>
    %68 = arith.addf %49, %67 : vector<8x32xf32>
    %69 = vector.extract_strided_slice %29 {offsets = [0, 16], sizes = [8, 8], strides = [1, 1]} : vector<8x32xf32> to vector<8x8xf32>
    %70 = vector.extract_strided_slice %22 {offsets = [0, 16], sizes = [8, 8], strides = [1, 1]} : vector<8x32xf32> to vector<8x8xf32>
    %cst_31 = arith.constant dense<0.000000e+00> : vector<8x8xf32>
    %71 = tpu.matmul %69, %70, %cst_31 {dimension_numbers = #tpu.dot_dimension_numbers<[1], [1], [0], [0], [0, 0, 1, 0], [], []>} : vector<8x8xf32>, vector<8x8xf32>, vector<8x8xf32> -> vector<8x8xf32>
    %72 = arith.addf %71, %15 : vector<8x8xf32>
    %cst_32 = arith.constant dense<0xFF800000> : vector<8xf32>
    %73 = vector.multi_reduction <maximumf>, %72, %cst_32 [1] : vector<8x8xf32> to vector<8xf32>
    %74 = vector.shape_cast %73 : vector<8xf32> to vector<8x1xf32>
    %75 = vector.broadcast %74 : vector<8x1xf32> to vector<8x8xf32>
    %76 = arith.subf %72, %75 : vector<8x8xf32>
    %77 = math.exp %76 : vector<8x8xf32>
    %cst_33 = arith.constant dense<0.000000e+00> : vector<8xf32>
    %78 = vector.multi_reduction <add>, %77, %cst_33 [1] : vector<8x8xf32> to vector<8xf32>
    %79 = vector.shape_cast %78 : vector<8xf32> to vector<8x1xf32>
    %80 = tpu.reciprocal %79 {approx = true} : vector<8x1xf32> -> vector<8x1xf32>
    %81 = vector.broadcast %80 : vector<8x1xf32> to vector<8x8xf32>
    %82 = arith.mulf %77, %81 : vector<8x8xf32>
    %83 = vector.extract_strided_slice %23 {offsets = [0, 16], sizes = [8, 8], strides = [1, 1]} : vector<8x32xf32> to vector<8x8xf32>
    %cst_34 = arith.constant dense<0.000000e+00> : vector<8x8xf32>
    %84 = tpu.matmul %82, %83, %cst_34 {dimension_numbers = #tpu.dot_dimension_numbers<[1], [0], [0], [1], [0, 0, 1, 1], [], []>} : vector<8x8xf32>, vector<8x8xf32>, vector<8x8xf32> -> vector<8x8xf32>
    %85 = vector.extract_strided_slice %25 {offsets = [16, 0], sizes = [8, 32], strides = [1, 1]} : vector<32x32xf32> to vector<8x32xf32>
    %cst_35 = arith.constant dense<0.000000e+00> : vector<8x32xf32>
    %86 = tpu.matmul %84, %85, %cst_35 {dimension_numbers = #tpu.dot_dimension_numbers<[1], [0], [0], [1], [0, 0, 1, 1], [], []>} : vector<8x8xf32>, vector<8x32xf32>, vector<8x32xf32> -> vector<8x32xf32>
    %87 = arith.addf %68, %86 : vector<8x32xf32>
    %88 = vector.extract_strided_slice %29 {offsets = [0, 24], sizes = [8, 8], strides = [1, 1]} : vector<8x32xf32> to vector<8x8xf32>
    %89 = vector.extract_strided_slice %22 {offsets = [0, 24], sizes = [8, 8], strides = [1, 1]} : vector<8x32xf32> to vector<8x8xf32>
    %cst_36 = arith.constant dense<0.000000e+00> : vector<8x8xf32>
    %90 = tpu.matmul %88, %89, %cst_36 {dimension_numbers = #tpu.dot_dimension_numbers<[1], [1], [0], [0], [0, 0, 1, 0], [], []>} : vector<8x8xf32>, vector<8x8xf32>, vector<8x8xf32> -> vector<8x8xf32>
    %91 = arith.addf %90, %15 : vector<8x8xf32>
    %cst_37 = arith.constant dense<0xFF800000> : vector<8xf32>
    %92 = vector.multi_reduction <maximumf>, %91, %cst_37 [1] : vector<8x8xf32> to vector<8xf32>
    %93 = vector.shape_cast %92 : vector<8xf32> to vector<8x1xf32>
    %94 = vector.broadcast %93 : vector<8x1xf32> to vector<8x8xf32>
    %95 = arith.subf %91, %94 : vector<8x8xf32>
    %96 = math.exp %95 : vector<8x8xf32>
    %cst_38 = arith.constant dense<0.000000e+00> : vector<8xf32>
    %97 = vector.multi_reduction <add>, %96, %cst_38 [1] : vector<8x8xf32> to vector<8xf32>
    %98 = vector.shape_cast %97 : vector<8xf32> to vector<8x1xf32>
    %99 = tpu.reciprocal %98 {approx = true} : vector<8x1xf32> -> vector<8x1xf32>
    %100 = vector.broadcast %99 : vector<8x1xf32> to vector<8x8xf32>
    %101 = arith.mulf %96, %100 : vector<8x8xf32>
    %102 = vector.extract_strided_slice %23 {offsets = [0, 24], sizes = [8, 8], strides = [1, 1]} : vector<8x32xf32> to vector<8x8xf32>
    %cst_39 = arith.constant dense<0.000000e+00> : vector<8x8xf32>
    %103 = tpu.matmul %101, %102, %cst_39 {dimension_numbers = #tpu.dot_dimension_numbers<[1], [0], [0], [1], [0, 0, 1, 1], [], []>} : vector<8x8xf32>, vector<8x8xf32>, vector<8x8xf32> -> vector<8x8xf32>
    %104 = vector.extract_strided_slice %25 {offsets = [24, 0], sizes = [8, 32], strides = [1, 1]} : vector<32x32xf32> to vector<8x32xf32>
    %cst_40 = arith.constant dense<0.000000e+00> : vector<8x32xf32>
    %105 = tpu.matmul %103, %104, %cst_40 {dimension_numbers = #tpu.dot_dimension_numbers<[1], [0], [0], [1], [0, 0, 1, 1], [], []>} : vector<8x8xf32>, vector<8x32xf32>, vector<8x32xf32> -> vector<8x32xf32>
    %106 = arith.addf %87, %105 : vector<8x32xf32>
    %107 = vector.broadcast %27 : vector<1x32xf32> to vector<8x32xf32>
    %108 = arith.addf %106, %107 : vector<8x32xf32>
    %109 = arith.addf %108, %1 : vector<8x32xf32>
    %cst_41 = arith.constant dense<0.000000e+00> : vector<8xf32>
    %110 = vector.multi_reduction <add>, %109, %cst_41 [1] : vector<8x32xf32> to vector<8xf32>
    %111 = vector.shape_cast %110 : vector<8xf32> to vector<8x1xf32>
    %cst_42 = arith.constant 3.200000e+01 : f32
    %112 = vector.broadcast %cst_42 : f32 to vector<8x1xf32>
    %113 = arith.divf %111, %112 : vector<8x1xf32>
    %114 = vector.broadcast %113 : vector<8x1xf32> to vector<8x32xf32>
    %115 = arith.subf %109, %114 : vector<8x32xf32>
    %116 = arith.mulf %115, %115 : vector<8x32xf32>
    %cst_43 = arith.constant dense<0.000000e+00> : vector<8xf32>
    %117 = vector.multi_reduction <add>, %116, %cst_43 [1] : vector<8x32xf32> to vector<8xf32>
    %118 = vector.shape_cast %117 : vector<8xf32> to vector<8x1xf32>
    %cst_44 = arith.constant 3.200000e+01 : f32
    %119 = vector.broadcast %cst_44 : f32 to vector<8x1xf32>
    %120 = arith.divf %118, %119 : vector<8x1xf32>
    %121 = vector.broadcast %113 : vector<8x1xf32> to vector<8x32xf32>
    %122 = arith.subf %109, %121 : vector<8x32xf32>
    %cst_45 = arith.constant 9.99999996E-13 : f32
    %123 = vector.broadcast %cst_45 : f32 to vector<8x1xf32>
    %124 = arith.addf %120, %123 : vector<8x1xf32>
    %125 = math.rsqrt %124 : vector<8x1xf32>
    %126 = vector.broadcast %125 : vector<8x1xf32> to vector<8x32xf32>
    %127 = arith.mulf %122, %126 : vector<8x32xf32>
    %c0_46 = arith.constant 0 : index
    %c0_47 = arith.constant 0 : index
    %c0_48 = arith.constant 0 : index
    %128 = vector.load %arg21[%c0_46, %c0_47, %c0_48] : memref<4x1x32xf32, #tpu.memory_space<vmem>>, vector<1x1x32xf32>
    %129 = vector.shape_cast %128 : vector<1x1x32xf32> to vector<1x32xf32>
    %130 = vector.broadcast %129 : vector<1x32xf32> to vector<8x32xf32>
    %131 = arith.mulf %127, %130 : vector<8x32xf32>
    %c0_49 = arith.constant 0 : index
    %c0_50 = arith.constant 0 : index
    %c0_51 = arith.constant 0 : index
    %132 = vector.load %arg22[%c0_49, %c0_50, %c0_51] : memref<4x1x32xf32, #tpu.memory_space<vmem>>, vector<1x1x32xf32>
    %133 = vector.shape_cast %132 : vector<1x1x32xf32> to vector<1x32xf32>
    %134 = vector.broadcast %133 : vector<1x32xf32> to vector<8x32xf32>
    %135 = arith.addf %131, %134 : vector<8x32xf32>
    %c0_52 = arith.constant 0 : index
    %c0_53 = arith.constant 0 : index
    %136 = vector.load %arg11[%c0_52, %c0_53] : memref<32x32xf32, #tpu.memory_space<vmem>>, vector<32x32xf32>
    %cst_54 = arith.constant dense<0.000000e+00> : vector<8x32xf32>
    %137 = tpu.matmul %135, %136, %cst_54 {dimension_numbers = #tpu.dot_dimension_numbers<[1], [0], [0], [1], [0, 0, 1, 1], [], []>} : vector<8x32xf32>, vector<32x32xf32>, vector<8x32xf32> -> vector<8x32xf32>
    %c0_55 = arith.constant 0 : index
    %c0_56 = arith.constant 0 : index
    %138 = vector.load %arg12[%c0_55, %c0_56] : memref<1x32xf32, #tpu.memory_space<vmem>>, vector<1x32xf32>
    %139 = vector.broadcast %138 : vector<1x32xf32> to vector<8x32xf32>
    %140 = arith.addf %137, %139 : vector<8x32xf32>
    %c0_57 = arith.constant 0 : index
    %c0_58 = arith.constant 0 : index
    %c0_59 = arith.constant 0 : index
    %141 = vector.load %arg2[%c0_57, %c0_58, %c0_59] : memref<1x10x32xf32, #tpu.memory_space<vmem>>, vector<1x10x32xf32>
    %142 = vector.shape_cast %141 : vector<1x10x32xf32> to vector<10x32xf32>
    %c0_60 = arith.constant 0 : index
    %c0_61 = arith.constant 0 : index
    %c0_62 = arith.constant 0 : index
    %143 = vector.load %arg13[%c0_60, %c0_61, %c0_62] : memref<2x32x32xf32, #tpu.memory_space<vmem>>, vector<1x32x32xf32>
    %144 = vector.shape_cast %143 : vector<1x32x32xf32> to vector<32x32xf32>
    %cst_63 = arith.constant dense<0.000000e+00> : vector<10x32xf32>
    %145 = tpu.matmul %142, %144, %cst_63 {dimension_numbers = #tpu.dot_dimension_numbers<[1], [0], [0], [1], [0, 0, 1, 1], [], []>} : vector<10x32xf32>, vector<32x32xf32>, vector<10x32xf32> -> vector<10x32xf32>
    %c0_64 = arith.constant 0 : index
    %c0_65 = arith.constant 0 : index
    %c0_66 = arith.constant 0 : index
    %146 = vector.load %arg14[%c0_64, %c0_65, %c0_66] : memref<2x1x32xf32, #tpu.memory_space<vmem>>, vector<1x1x32xf32>
    %147 = vector.shape_cast %146 : vector<1x1x32xf32> to vector<1x32xf32>
    %148 = vector.broadcast %147 : vector<1x32xf32> to vector<10x32xf32>
    %149 = arith.addf %145, %148 : vector<10x32xf32>
    %c0_67 = arith.constant 0 : index
    %c0_68 = arith.constant 0 : index
    %c0_69 = arith.constant 0 : index
    %150 = vector.load %arg3[%c0_67, %c0_68, %c0_69] : memref<1x10x32xf32, #tpu.memory_space<vmem>>, vector<1x10x32xf32>
    %151 = vector.shape_cast %150 : vector<1x10x32xf32> to vector<10x32xf32>
    %c1 = arith.constant 1 : index
    %c0_70 = arith.constant 0 : index
    %c0_71 = arith.constant 0 : index
    %152 = vector.load %arg13[%c1, %c0_70, %c0_71] : memref<2x32x32xf32, #tpu.memory_space<vmem>>, vector<1x32x32xf32>
    %153 = vector.shape_cast %152 : vector<1x32x32xf32> to vector<32x32xf32>
    %cst_72 = arith.constant dense<0.000000e+00> : vector<10x32xf32>
    %154 = tpu.matmul %151, %153, %cst_72 {dimension_numbers = #tpu.dot_dimension_numbers<[1], [0], [0], [1], [0, 0, 1, 1], [], []>} : vector<10x32xf32>, vector<32x32xf32>, vector<10x32xf32> -> vector<10x32xf32>
    %c1_73 = arith.constant 1 : index
    %c0_74 = arith.constant 0 : index
    %c0_75 = arith.constant 0 : index
    %155 = vector.load %arg14[%c1_73, %c0_74, %c0_75] : memref<2x1x32xf32, #tpu.memory_space<vmem>>, vector<1x1x32xf32>
    %156 = vector.shape_cast %155 : vector<1x1x32xf32> to vector<1x32xf32>
    %157 = vector.broadcast %156 : vector<1x32xf32> to vector<10x32xf32>
    %158 = arith.addf %154, %157 : vector<10x32xf32>
    %c0_76 = arith.constant 0 : index
    %c0_77 = arith.constant 0 : index
    %c0_78 = arith.constant 0 : index
    %159 = vector.load %arg7[%c0_76, %c0_77, %c0_78] : memref<1x1x10xf32, #tpu.memory_space<vmem>>, vector<1x1x10xf32>
    %160 = vector.shape_cast %159 : vector<1x1x10xf32> to vector<1x10xf32>
    %cst_79 = arith.constant 1.000000e+00 : f32
    %161 = vector.broadcast %cst_79 : f32 to vector<1x10xf32>
    %162 = arith.subf %161, %160 : vector<1x10xf32>
    %cst_80 = arith.constant -1.000000e+09 : f32
    %163 = vector.broadcast %cst_80 : f32 to vector<1x10xf32>
    %164 = arith.mulf %162, %163 : vector<1x10xf32>
    %c1_81 = arith.constant 1 : index
    %c0_82 = arith.constant 0 : index
    %c0_83 = arith.constant 0 : index
    %165 = vector.load %arg19[%c1_81, %c0_82, %c0_83] : memref<3x32x32xf32, #tpu.memory_space<vmem>>, vector<1x32x32xf32>
    %166 = vector.shape_cast %165 : vector<1x32x32xf32> to vector<32x32xf32>
    %c1_84 = arith.constant 1 : index
    %c0_85 = arith.constant 0 : index
    %c0_86 = arith.constant 0 : index
    %167 = vector.load %arg20[%c1_84, %c0_85, %c0_86] : memref<3x1x32xf32, #tpu.memory_space<vmem>>, vector<1x1x32xf32>
    %168 = vector.shape_cast %167 : vector<1x1x32xf32> to vector<1x32xf32>
    %cst_87 = arith.constant 0.353553385 : f32
    %169 = vector.broadcast %cst_87 : f32 to vector<8x32xf32>
    %170 = arith.mulf %140, %169 : vector<8x32xf32>
    %cst_88 = arith.constant 0.000000e+00 : f32
    %171 = vector.broadcast %cst_88 : f32 to vector<8x32xf32>
    %172 = vector.extract_strided_slice %170 {offsets = [0, 0], sizes = [8, 8], strides = [1, 1]} : vector<8x32xf32> to vector<8x8xf32>
    %173 = vector.extract_strided_slice %149 {offsets = [0, 0], sizes = [10, 8], strides = [1, 1]} : vector<10x32xf32> to vector<10x8xf32>
    %cst_89 = arith.constant dense<0.000000e+00> : vector<8x10xf32>
    %174 = tpu.matmul %172, %173, %cst_89 {dimension_numbers = #tpu.dot_dimension_numbers<[1], [1], [0], [0], [0, 0, 1, 0], [], []>} : vector<8x8xf32>, vector<10x8xf32>, vector<8x10xf32> -> vector<8x10xf32>
    %175 = vector.broadcast %164 : vector<1x10xf32> to vector<8x10xf32>
    %176 = arith.addf %174, %175 : vector<8x10xf32>
    %cst_90 = arith.constant dense<0xFF800000> : vector<8xf32>
    %177 = vector.multi_reduction <maximumf>, %176, %cst_90 [1] : vector<8x10xf32> to vector<8xf32>
    %178 = vector.shape_cast %177 : vector<8xf32> to vector<8x1xf32>
    %179 = vector.broadcast %178 : vector<8x1xf32> to vector<8x10xf32>
    %180 = arith.subf %176, %179 : vector<8x10xf32>
    %181 = math.exp %180 : vector<8x10xf32>
    %cst_91 = arith.constant dense<0.000000e+00> : vector<8xf32>
    %182 = vector.multi_reduction <add>, %181, %cst_91 [1] : vector<8x10xf32> to vector<8xf32>
    %183 = vector.shape_cast %182 : vector<8xf32> to vector<8x1xf32>
    %184 = tpu.reciprocal %183 {approx = true} : vector<8x1xf32> -> vector<8x1xf32>
    %185 = vector.broadcast %184 : vector<8x1xf32> to vector<8x10xf32>
    %186 = arith.mulf %181, %185 : vector<8x10xf32>
    %187 = vector.extract_strided_slice %158 {offsets = [0, 0], sizes = [10, 8], strides = [1, 1]} : vector<10x32xf32> to vector<10x8xf32>
    %cst_92 = arith.constant dense<0.000000e+00> : vector<8x8xf32>
    %188 = tpu.matmul %186, %187, %cst_92 {dimension_numbers = #tpu.dot_dimension_numbers<[1], [0], [0], [1], [0, 0, 1, 1], [], []>} : vector<8x10xf32>, vector<10x8xf32>, vector<8x8xf32> -> vector<8x8xf32>
    %189 = vector.extract_strided_slice %166 {offsets = [0, 0], sizes = [8, 32], strides = [1, 1]} : vector<32x32xf32> to vector<8x32xf32>
    %cst_93 = arith.constant dense<0.000000e+00> : vector<8x32xf32>
    %190 = tpu.matmul %188, %189, %cst_93 {dimension_numbers = #tpu.dot_dimension_numbers<[1], [0], [0], [1], [0, 0, 1, 1], [], []>} : vector<8x8xf32>, vector<8x32xf32>, vector<8x32xf32> -> vector<8x32xf32>
    %191 = arith.addf %171, %190 : vector<8x32xf32>
    %192 = vector.extract_strided_slice %170 {offsets = [0, 8], sizes = [8, 8], strides = [1, 1]} : vector<8x32xf32> to vector<8x8xf32>
    %193 = vector.extract_strided_slice %149 {offsets = [0, 8], sizes = [10, 8], strides = [1, 1]} : vector<10x32xf32> to vector<10x8xf32>
    %cst_94 = arith.constant dense<0.000000e+00> : vector<8x10xf32>
    %194 = tpu.matmul %192, %193, %cst_94 {dimension_numbers = #tpu.dot_dimension_numbers<[1], [1], [0], [0], [0, 0, 1, 0], [], []>} : vector<8x8xf32>, vector<10x8xf32>, vector<8x10xf32> -> vector<8x10xf32>
    %195 = vector.broadcast %164 : vector<1x10xf32> to vector<8x10xf32>
    %196 = arith.addf %194, %195 : vector<8x10xf32>
    %cst_95 = arith.constant dense<0xFF800000> : vector<8xf32>
    %197 = vector.multi_reduction <maximumf>, %196, %cst_95 [1] : vector<8x10xf32> to vector<8xf32>
    %198 = vector.shape_cast %197 : vector<8xf32> to vector<8x1xf32>
    %199 = vector.broadcast %198 : vector<8x1xf32> to vector<8x10xf32>
    %200 = arith.subf %196, %199 : vector<8x10xf32>
    %201 = math.exp %200 : vector<8x10xf32>
    %cst_96 = arith.constant dense<0.000000e+00> : vector<8xf32>
    %202 = vector.multi_reduction <add>, %201, %cst_96 [1] : vector<8x10xf32> to vector<8xf32>
    %203 = vector.shape_cast %202 : vector<8xf32> to vector<8x1xf32>
    %204 = tpu.reciprocal %203 {approx = true} : vector<8x1xf32> -> vector<8x1xf32>
    %205 = vector.broadcast %204 : vector<8x1xf32> to vector<8x10xf32>
    %206 = arith.mulf %201, %205 : vector<8x10xf32>
    %207 = vector.extract_strided_slice %158 {offsets = [0, 8], sizes = [10, 8], strides = [1, 1]} : vector<10x32xf32> to vector<10x8xf32>
    %cst_97 = arith.constant dense<0.000000e+00> : vector<8x8xf32>
    %208 = tpu.matmul %206, %207, %cst_97 {dimension_numbers = #tpu.dot_dimension_numbers<[1], [0], [0], [1], [0, 0, 1, 1], [], []>} : vector<8x10xf32>, vector<10x8xf32>, vector<8x8xf32> -> vector<8x8xf32>
    %209 = vector.extract_strided_slice %166 {offsets = [8, 0], sizes = [8, 32], strides = [1, 1]} : vector<32x32xf32> to vector<8x32xf32>
    %cst_98 = arith.constant dense<0.000000e+00> : vector<8x32xf32>
    %210 = tpu.matmul %208, %209, %cst_98 {dimension_numbers = #tpu.dot_dimension_numbers<[1], [0], [0], [1], [0, 0, 1, 1], [], []>} : vector<8x8xf32>, vector<8x32xf32>, vector<8x32xf32> -> vector<8x32xf32>
    %211 = arith.addf %191, %210 : vector<8x32xf32>
    %212 = vector.extract_strided_slice %170 {offsets = [0, 16], sizes = [8, 8], strides = [1, 1]} : vector<8x32xf32> to vector<8x8xf32>
    %213 = vector.extract_strided_slice %149 {offsets = [0, 16], sizes = [10, 8], strides = [1, 1]} : vector<10x32xf32> to vector<10x8xf32>
    %cst_99 = arith.constant dense<0.000000e+00> : vector<8x10xf32>
    %214 = tpu.matmul %212, %213, %cst_99 {dimension_numbers = #tpu.dot_dimension_numbers<[1], [1], [0], [0], [0, 0, 1, 0], [], []>} : vector<8x8xf32>, vector<10x8xf32>, vector<8x10xf32> -> vector<8x10xf32>
    %215 = vector.broadcast %164 : vector<1x10xf32> to vector<8x10xf32>
    %216 = arith.addf %214, %215 : vector<8x10xf32>
    %cst_100 = arith.constant dense<0xFF800000> : vector<8xf32>
    %217 = vector.multi_reduction <maximumf>, %216, %cst_100 [1] : vector<8x10xf32> to vector<8xf32>
    %218 = vector.shape_cast %217 : vector<8xf32> to vector<8x1xf32>
    %219 = vector.broadcast %218 : vector<8x1xf32> to vector<8x10xf32>
    %220 = arith.subf %216, %219 : vector<8x10xf32>
    %221 = math.exp %220 : vector<8x10xf32>
    %cst_101 = arith.constant dense<0.000000e+00> : vector<8xf32>
    %222 = vector.multi_reduction <add>, %221, %cst_101 [1] : vector<8x10xf32> to vector<8xf32>
    %223 = vector.shape_cast %222 : vector<8xf32> to vector<8x1xf32>
    %224 = tpu.reciprocal %223 {approx = true} : vector<8x1xf32> -> vector<8x1xf32>
    %225 = vector.broadcast %224 : vector<8x1xf32> to vector<8x10xf32>
    %226 = arith.mulf %221, %225 : vector<8x10xf32>
    %227 = vector.extract_strided_slice %158 {offsets = [0, 16], sizes = [10, 8], strides = [1, 1]} : vector<10x32xf32> to vector<10x8xf32>
    %cst_102 = arith.constant dense<0.000000e+00> : vector<8x8xf32>
    %228 = tpu.matmul %226, %227, %cst_102 {dimension_numbers = #tpu.dot_dimension_numbers<[1], [0], [0], [1], [0, 0, 1, 1], [], []>} : vector<8x10xf32>, vector<10x8xf32>, vector<8x8xf32> -> vector<8x8xf32>
    %229 = vector.extract_strided_slice %166 {offsets = [16, 0], sizes = [8, 32], strides = [1, 1]} : vector<32x32xf32> to vector<8x32xf32>
    %cst_103 = arith.constant dense<0.000000e+00> : vector<8x32xf32>
    %230 = tpu.matmul %228, %229, %cst_103 {dimension_numbers = #tpu.dot_dimension_numbers<[1], [0], [0], [1], [0, 0, 1, 1], [], []>} : vector<8x8xf32>, vector<8x32xf32>, vector<8x32xf32> -> vector<8x32xf32>
    %231 = arith.addf %211, %230 : vector<8x32xf32>
    %232 = vector.extract_strided_slice %170 {offsets = [0, 24], sizes = [8, 8], strides = [1, 1]} : vector<8x32xf32> to vector<8x8xf32>
    %233 = vector.extract_strided_slice %149 {offsets = [0, 24], sizes = [10, 8], strides = [1, 1]} : vector<10x32xf32> to vector<10x8xf32>
    %cst_104 = arith.constant dense<0.000000e+00> : vector<8x10xf32>
    %234 = tpu.matmul %232, %233, %cst_104 {dimension_numbers = #tpu.dot_dimension_numbers<[1], [1], [0], [0], [0, 0, 1, 0], [], []>} : vector<8x8xf32>, vector<10x8xf32>, vector<8x10xf32> -> vector<8x10xf32>
    %235 = vector.broadcast %164 : vector<1x10xf32> to vector<8x10xf32>
    %236 = arith.addf %234, %235 : vector<8x10xf32>
    %cst_105 = arith.constant dense<0xFF800000> : vector<8xf32>
    %237 = vector.multi_reduction <maximumf>, %236, %cst_105 [1] : vector<8x10xf32> to vector<8xf32>
    %238 = vector.shape_cast %237 : vector<8xf32> to vector<8x1xf32>
    %239 = vector.broadcast %238 : vector<8x1xf32> to vector<8x10xf32>
    %240 = arith.subf %236, %239 : vector<8x10xf32>
    %241 = math.exp %240 : vector<8x10xf32>
    %cst_106 = arith.constant dense<0.000000e+00> : vector<8xf32>
    %242 = vector.multi_reduction <add>, %241, %cst_106 [1] : vector<8x10xf32> to vector<8xf32>
    %243 = vector.shape_cast %242 : vector<8xf32> to vector<8x1xf32>
    %244 = tpu.reciprocal %243 {approx = true} : vector<8x1xf32> -> vector<8x1xf32>
    %245 = vector.broadcast %244 : vector<8x1xf32> to vector<8x10xf32>
    %246 = arith.mulf %241, %245 : vector<8x10xf32>
    %247 = vector.extract_strided_slice %158 {offsets = [0, 24], sizes = [10, 8], strides = [1, 1]} : vector<10x32xf32> to vector<10x8xf32>
    %cst_107 = arith.constant dense<0.000000e+00> : vector<8x8xf32>
    %248 = tpu.matmul %246, %247, %cst_107 {dimension_numbers = #tpu.dot_dimension_numbers<[1], [0], [0], [1], [0, 0, 1, 1], [], []>} : vector<8x10xf32>, vector<10x8xf32>, vector<8x8xf32> -> vector<8x8xf32>
    %249 = vector.extract_strided_slice %166 {offsets = [24, 0], sizes = [8, 32], strides = [1, 1]} : vector<32x32xf32> to vector<8x32xf32>
    %cst_108 = arith.constant dense<0.000000e+00> : vector<8x32xf32>
    %250 = tpu.matmul %248, %249, %cst_108 {dimension_numbers = #tpu.dot_dimension_numbers<[1], [0], [0], [1], [0, 0, 1, 1], [], []>} : vector<8x8xf32>, vector<8x32xf32>, vector<8x32xf32> -> vector<8x32xf32>
    %251 = arith.addf %231, %250 : vector<8x32xf32>
    %252 = vector.broadcast %168 : vector<1x32xf32> to vector<8x32xf32>
    %253 = arith.addf %251, %252 : vector<8x32xf32>
    %254 = arith.addf %253, %135 : vector<8x32xf32>
    %cst_109 = arith.constant dense<0.000000e+00> : vector<8xf32>
    %255 = vector.multi_reduction <add>, %254, %cst_109 [1] : vector<8x32xf32> to vector<8xf32>
    %256 = vector.shape_cast %255 : vector<8xf32> to vector<8x1xf32>
    %cst_110 = arith.constant 3.200000e+01 : f32
    %257 = vector.broadcast %cst_110 : f32 to vector<8x1xf32>
    %258 = arith.divf %256, %257 : vector<8x1xf32>
    %259 = vector.broadcast %258 : vector<8x1xf32> to vector<8x32xf32>
    %260 = arith.subf %254, %259 : vector<8x32xf32>
    %261 = arith.mulf %260, %260 : vector<8x32xf32>
    %cst_111 = arith.constant dense<0.000000e+00> : vector<8xf32>
    %262 = vector.multi_reduction <add>, %261, %cst_111 [1] : vector<8x32xf32> to vector<8xf32>
    %263 = vector.shape_cast %262 : vector<8xf32> to vector<8x1xf32>
    %cst_112 = arith.constant 3.200000e+01 : f32
    %264 = vector.broadcast %cst_112 : f32 to vector<8x1xf32>
    %265 = arith.divf %263, %264 : vector<8x1xf32>
    %266 = vector.broadcast %258 : vector<8x1xf32> to vector<8x32xf32>
    %267 = arith.subf %254, %266 : vector<8x32xf32>
    %cst_113 = arith.constant 9.99999996E-13 : f32
    %268 = vector.broadcast %cst_113 : f32 to vector<8x1xf32>
    %269 = arith.addf %265, %268 : vector<8x1xf32>
    %270 = math.rsqrt %269 : vector<8x1xf32>
    %271 = vector.broadcast %270 : vector<8x1xf32> to vector<8x32xf32>
    %272 = arith.mulf %267, %271 : vector<8x32xf32>
    %c1_114 = arith.constant 1 : index
    %c0_115 = arith.constant 0 : index
    %c0_116 = arith.constant 0 : index
    %273 = vector.load %arg21[%c1_114, %c0_115, %c0_116] : memref<4x1x32xf32, #tpu.memory_space<vmem>>, vector<1x1x32xf32>
    %274 = vector.shape_cast %273 : vector<1x1x32xf32> to vector<1x32xf32>
    %275 = vector.broadcast %274 : vector<1x32xf32> to vector<8x32xf32>
    %276 = arith.mulf %272, %275 : vector<8x32xf32>
    %c1_117 = arith.constant 1 : index
    %c0_118 = arith.constant 0 : index
    %c0_119 = arith.constant 0 : index
    %277 = vector.load %arg22[%c1_117, %c0_118, %c0_119] : memref<4x1x32xf32, #tpu.memory_space<vmem>>, vector<1x1x32xf32>
    %278 = vector.shape_cast %277 : vector<1x1x32xf32> to vector<1x32xf32>
    %279 = vector.broadcast %278 : vector<1x32xf32> to vector<8x32xf32>
    %280 = arith.addf %276, %279 : vector<8x32xf32>
    %c0_120 = arith.constant 0 : index
    %c0_121 = arith.constant 0 : index
    %281 = vector.load %arg15[%c0_120, %c0_121] : memref<32x32xf32, #tpu.memory_space<vmem>>, vector<32x32xf32>
    %cst_122 = arith.constant dense<0.000000e+00> : vector<8x32xf32>
    %282 = tpu.matmul %280, %281, %cst_122 {dimension_numbers = #tpu.dot_dimension_numbers<[1], [0], [0], [1], [0, 0, 1, 1], [], []>} : vector<8x32xf32>, vector<32x32xf32>, vector<8x32xf32> -> vector<8x32xf32>
    %c0_123 = arith.constant 0 : index
    %c0_124 = arith.constant 0 : index
    %283 = vector.load %arg16[%c0_123, %c0_124] : memref<1x32xf32, #tpu.memory_space<vmem>>, vector<1x32xf32>
    %284 = vector.broadcast %283 : vector<1x32xf32> to vector<8x32xf32>
    %285 = arith.addf %282, %284 : vector<8x32xf32>
    %c0_125 = arith.constant 0 : index
    %c0_126 = arith.constant 0 : index
    %c0_127 = arith.constant 0 : index
    %286 = vector.load %arg4[%c0_125, %c0_126, %c0_127] : memref<1x12x32xf32, #tpu.memory_space<vmem>>, vector<1x12x32xf32>
    %287 = vector.shape_cast %286 : vector<1x12x32xf32> to vector<12x32xf32>
    %c0_128 = arith.constant 0 : index
    %c0_129 = arith.constant 0 : index
    %c0_130 = arith.constant 0 : index
    %288 = vector.load %arg17[%c0_128, %c0_129, %c0_130] : memref<2x32x32xf32, #tpu.memory_space<vmem>>, vector<1x32x32xf32>
    %289 = vector.shape_cast %288 : vector<1x32x32xf32> to vector<32x32xf32>
    %cst_131 = arith.constant dense<0.000000e+00> : vector<12x32xf32>
    %290 = tpu.matmul %287, %289, %cst_131 {dimension_numbers = #tpu.dot_dimension_numbers<[1], [0], [0], [1], [0, 0, 1, 1], [], []>} : vector<12x32xf32>, vector<32x32xf32>, vector<12x32xf32> -> vector<12x32xf32>
    %c0_132 = arith.constant 0 : index
    %c0_133 = arith.constant 0 : index
    %c0_134 = arith.constant 0 : index
    %291 = vector.load %arg18[%c0_132, %c0_133, %c0_134] : memref<2x1x32xf32, #tpu.memory_space<vmem>>, vector<1x1x32xf32>
    %292 = vector.shape_cast %291 : vector<1x1x32xf32> to vector<1x32xf32>
    %293 = vector.broadcast %292 : vector<1x32xf32> to vector<12x32xf32>
    %294 = arith.addf %290, %293 : vector<12x32xf32>
    %c0_135 = arith.constant 0 : index
    %c0_136 = arith.constant 0 : index
    %c0_137 = arith.constant 0 : index
    %295 = vector.load %arg5[%c0_135, %c0_136, %c0_137] : memref<1x12x32xf32, #tpu.memory_space<vmem>>, vector<1x12x32xf32>
    %296 = vector.shape_cast %295 : vector<1x12x32xf32> to vector<12x32xf32>
    %c1_138 = arith.constant 1 : index
    %c0_139 = arith.constant 0 : index
    %c0_140 = arith.constant 0 : index
    %297 = vector.load %arg17[%c1_138, %c0_139, %c0_140] : memref<2x32x32xf32, #tpu.memory_space<vmem>>, vector<1x32x32xf32>
    %298 = vector.shape_cast %297 : vector<1x32x32xf32> to vector<32x32xf32>
    %cst_141 = arith.constant dense<0.000000e+00> : vector<12x32xf32>
    %299 = tpu.matmul %296, %298, %cst_141 {dimension_numbers = #tpu.dot_dimension_numbers<[1], [0], [0], [1], [0, 0, 1, 1], [], []>} : vector<12x32xf32>, vector<32x32xf32>, vector<12x32xf32> -> vector<12x32xf32>
    %c1_142 = arith.constant 1 : index
    %c0_143 = arith.constant 0 : index
    %c0_144 = arith.constant 0 : index
    %300 = vector.load %arg18[%c1_142, %c0_143, %c0_144] : memref<2x1x32xf32, #tpu.memory_space<vmem>>, vector<1x1x32xf32>
    %301 = vector.shape_cast %300 : vector<1x1x32xf32> to vector<1x32xf32>
    %302 = vector.broadcast %301 : vector<1x32xf32> to vector<12x32xf32>
    %303 = arith.addf %299, %302 : vector<12x32xf32>
    %c0_145 = arith.constant 0 : index
    %c0_146 = arith.constant 0 : index
    %c0_147 = arith.constant 0 : index
    %304 = vector.load %arg8[%c0_145, %c0_146, %c0_147] : memref<1x1x12xf32, #tpu.memory_space<vmem>>, vector<1x1x12xf32>
    %305 = vector.shape_cast %304 : vector<1x1x12xf32> to vector<1x12xf32>
    %cst_148 = arith.constant 1.000000e+00 : f32
    %306 = vector.broadcast %cst_148 : f32 to vector<1x12xf32>
    %307 = arith.subf %306, %305 : vector<1x12xf32>
    %cst_149 = arith.constant -1.000000e+09 : f32
    %308 = vector.broadcast %cst_149 : f32 to vector<1x12xf32>
    %309 = arith.mulf %307, %308 : vector<1x12xf32>
    %c2 = arith.constant 2 : index
    %c0_150 = arith.constant 0 : index
    %c0_151 = arith.constant 0 : index
    %310 = vector.load %arg19[%c2, %c0_150, %c0_151] : memref<3x32x32xf32, #tpu.memory_space<vmem>>, vector<1x32x32xf32>
    %311 = vector.shape_cast %310 : vector<1x32x32xf32> to vector<32x32xf32>
    %c2_152 = arith.constant 2 : index
    %c0_153 = arith.constant 0 : index
    %c0_154 = arith.constant 0 : index
    %312 = vector.load %arg20[%c2_152, %c0_153, %c0_154] : memref<3x1x32xf32, #tpu.memory_space<vmem>>, vector<1x1x32xf32>
    %313 = vector.shape_cast %312 : vector<1x1x32xf32> to vector<1x32xf32>
    %cst_155 = arith.constant 0.353553385 : f32
    %314 = vector.broadcast %cst_155 : f32 to vector<8x32xf32>
    %315 = arith.mulf %285, %314 : vector<8x32xf32>
    %cst_156 = arith.constant 0.000000e+00 : f32
    %316 = vector.broadcast %cst_156 : f32 to vector<8x32xf32>
    %317 = vector.extract_strided_slice %315 {offsets = [0, 0], sizes = [8, 8], strides = [1, 1]} : vector<8x32xf32> to vector<8x8xf32>
    %318 = vector.extract_strided_slice %294 {offsets = [0, 0], sizes = [12, 8], strides = [1, 1]} : vector<12x32xf32> to vector<12x8xf32>
    %cst_157 = arith.constant dense<0.000000e+00> : vector<8x12xf32>
    %319 = tpu.matmul %317, %318, %cst_157 {dimension_numbers = #tpu.dot_dimension_numbers<[1], [1], [0], [0], [0, 0, 1, 0], [], []>} : vector<8x8xf32>, vector<12x8xf32>, vector<8x12xf32> -> vector<8x12xf32>
    %320 = vector.broadcast %309 : vector<1x12xf32> to vector<8x12xf32>
    %321 = arith.addf %319, %320 : vector<8x12xf32>
    %cst_158 = arith.constant dense<0xFF800000> : vector<8xf32>
    %322 = vector.multi_reduction <maximumf>, %321, %cst_158 [1] : vector<8x12xf32> to vector<8xf32>
    %323 = vector.shape_cast %322 : vector<8xf32> to vector<8x1xf32>
    %324 = vector.broadcast %323 : vector<8x1xf32> to vector<8x12xf32>
    %325 = arith.subf %321, %324 : vector<8x12xf32>
    %326 = math.exp %325 : vector<8x12xf32>
    %cst_159 = arith.constant dense<0.000000e+00> : vector<8xf32>
    %327 = vector.multi_reduction <add>, %326, %cst_159 [1] : vector<8x12xf32> to vector<8xf32>
    %328 = vector.shape_cast %327 : vector<8xf32> to vector<8x1xf32>
    %329 = tpu.reciprocal %328 {approx = true} : vector<8x1xf32> -> vector<8x1xf32>
    %330 = vector.broadcast %329 : vector<8x1xf32> to vector<8x12xf32>
    %331 = arith.mulf %326, %330 : vector<8x12xf32>
    %332 = vector.extract_strided_slice %303 {offsets = [0, 0], sizes = [12, 8], strides = [1, 1]} : vector<12x32xf32> to vector<12x8xf32>
    %cst_160 = arith.constant dense<0.000000e+00> : vector<8x8xf32>
    %333 = tpu.matmul %331, %332, %cst_160 {dimension_numbers = #tpu.dot_dimension_numbers<[1], [0], [0], [1], [0, 0, 1, 1], [], []>} : vector<8x12xf32>, vector<12x8xf32>, vector<8x8xf32> -> vector<8x8xf32>
    %334 = vector.extract_strided_slice %311 {offsets = [0, 0], sizes = [8, 32], strides = [1, 1]} : vector<32x32xf32> to vector<8x32xf32>
    %cst_161 = arith.constant dense<0.000000e+00> : vector<8x32xf32>
    %335 = tpu.matmul %333, %334, %cst_161 {dimension_numbers = #tpu.dot_dimension_numbers<[1], [0], [0], [1], [0, 0, 1, 1], [], []>} : vector<8x8xf32>, vector<8x32xf32>, vector<8x32xf32> -> vector<8x32xf32>
    %336 = arith.addf %316, %335 : vector<8x32xf32>
    %337 = vector.extract_strided_slice %315 {offsets = [0, 8], sizes = [8, 8], strides = [1, 1]} : vector<8x32xf32> to vector<8x8xf32>
    %338 = vector.extract_strided_slice %294 {offsets = [0, 8], sizes = [12, 8], strides = [1, 1]} : vector<12x32xf32> to vector<12x8xf32>
    %cst_162 = arith.constant dense<0.000000e+00> : vector<8x12xf32>
    %339 = tpu.matmul %337, %338, %cst_162 {dimension_numbers = #tpu.dot_dimension_numbers<[1], [1], [0], [0], [0, 0, 1, 0], [], []>} : vector<8x8xf32>, vector<12x8xf32>, vector<8x12xf32> -> vector<8x12xf32>
    %340 = vector.broadcast %309 : vector<1x12xf32> to vector<8x12xf32>
    %341 = arith.addf %339, %340 : vector<8x12xf32>
    %cst_163 = arith.constant dense<0xFF800000> : vector<8xf32>
    %342 = vector.multi_reduction <maximumf>, %341, %cst_163 [1] : vector<8x12xf32> to vector<8xf32>
    %343 = vector.shape_cast %342 : vector<8xf32> to vector<8x1xf32>
    %344 = vector.broadcast %343 : vector<8x1xf32> to vector<8x12xf32>
    %345 = arith.subf %341, %344 : vector<8x12xf32>
    %346 = math.exp %345 : vector<8x12xf32>
    %cst_164 = arith.constant dense<0.000000e+00> : vector<8xf32>
    %347 = vector.multi_reduction <add>, %346, %cst_164 [1] : vector<8x12xf32> to vector<8xf32>
    %348 = vector.shape_cast %347 : vector<8xf32> to vector<8x1xf32>
    %349 = tpu.reciprocal %348 {approx = true} : vector<8x1xf32> -> vector<8x1xf32>
    %350 = vector.broadcast %349 : vector<8x1xf32> to vector<8x12xf32>
    %351 = arith.mulf %346, %350 : vector<8x12xf32>
    %352 = vector.extract_strided_slice %303 {offsets = [0, 8], sizes = [12, 8], strides = [1, 1]} : vector<12x32xf32> to vector<12x8xf32>
    %cst_165 = arith.constant dense<0.000000e+00> : vector<8x8xf32>
    %353 = tpu.matmul %351, %352, %cst_165 {dimension_numbers = #tpu.dot_dimension_numbers<[1], [0], [0], [1], [0, 0, 1, 1], [], []>} : vector<8x12xf32>, vector<12x8xf32>, vector<8x8xf32> -> vector<8x8xf32>
    %354 = vector.extract_strided_slice %311 {offsets = [8, 0], sizes = [8, 32], strides = [1, 1]} : vector<32x32xf32> to vector<8x32xf32>
    %cst_166 = arith.constant dense<0.000000e+00> : vector<8x32xf32>
    %355 = tpu.matmul %353, %354, %cst_166 {dimension_numbers = #tpu.dot_dimension_numbers<[1], [0], [0], [1], [0, 0, 1, 1], [], []>} : vector<8x8xf32>, vector<8x32xf32>, vector<8x32xf32> -> vector<8x32xf32>
    %356 = arith.addf %336, %355 : vector<8x32xf32>
    %357 = vector.extract_strided_slice %315 {offsets = [0, 16], sizes = [8, 8], strides = [1, 1]} : vector<8x32xf32> to vector<8x8xf32>
    %358 = vector.extract_strided_slice %294 {offsets = [0, 16], sizes = [12, 8], strides = [1, 1]} : vector<12x32xf32> to vector<12x8xf32>
    %cst_167 = arith.constant dense<0.000000e+00> : vector<8x12xf32>
    %359 = tpu.matmul %357, %358, %cst_167 {dimension_numbers = #tpu.dot_dimension_numbers<[1], [1], [0], [0], [0, 0, 1, 0], [], []>} : vector<8x8xf32>, vector<12x8xf32>, vector<8x12xf32> -> vector<8x12xf32>
    %360 = vector.broadcast %309 : vector<1x12xf32> to vector<8x12xf32>
    %361 = arith.addf %359, %360 : vector<8x12xf32>
    %cst_168 = arith.constant dense<0xFF800000> : vector<8xf32>
    %362 = vector.multi_reduction <maximumf>, %361, %cst_168 [1] : vector<8x12xf32> to vector<8xf32>
    %363 = vector.shape_cast %362 : vector<8xf32> to vector<8x1xf32>
    %364 = vector.broadcast %363 : vector<8x1xf32> to vector<8x12xf32>
    %365 = arith.subf %361, %364 : vector<8x12xf32>
    %366 = math.exp %365 : vector<8x12xf32>
    %cst_169 = arith.constant dense<0.000000e+00> : vector<8xf32>
    %367 = vector.multi_reduction <add>, %366, %cst_169 [1] : vector<8x12xf32> to vector<8xf32>
    %368 = vector.shape_cast %367 : vector<8xf32> to vector<8x1xf32>
    %369 = tpu.reciprocal %368 {approx = true} : vector<8x1xf32> -> vector<8x1xf32>
    %370 = vector.broadcast %369 : vector<8x1xf32> to vector<8x12xf32>
    %371 = arith.mulf %366, %370 : vector<8x12xf32>
    %372 = vector.extract_strided_slice %303 {offsets = [0, 16], sizes = [12, 8], strides = [1, 1]} : vector<12x32xf32> to vector<12x8xf32>
    %cst_170 = arith.constant dense<0.000000e+00> : vector<8x8xf32>
    %373 = tpu.matmul %371, %372, %cst_170 {dimension_numbers = #tpu.dot_dimension_numbers<[1], [0], [0], [1], [0, 0, 1, 1], [], []>} : vector<8x12xf32>, vector<12x8xf32>, vector<8x8xf32> -> vector<8x8xf32>
    %374 = vector.extract_strided_slice %311 {offsets = [16, 0], sizes = [8, 32], strides = [1, 1]} : vector<32x32xf32> to vector<8x32xf32>
    %cst_171 = arith.constant dense<0.000000e+00> : vector<8x32xf32>
    %375 = tpu.matmul %373, %374, %cst_171 {dimension_numbers = #tpu.dot_dimension_numbers<[1], [0], [0], [1], [0, 0, 1, 1], [], []>} : vector<8x8xf32>, vector<8x32xf32>, vector<8x32xf32> -> vector<8x32xf32>
    %376 = arith.addf %356, %375 : vector<8x32xf32>
    %377 = vector.extract_strided_slice %315 {offsets = [0, 24], sizes = [8, 8], strides = [1, 1]} : vector<8x32xf32> to vector<8x8xf32>
    %378 = vector.extract_strided_slice %294 {offsets = [0, 24], sizes = [12, 8], strides = [1, 1]} : vector<12x32xf32> to vector<12x8xf32>
    %cst_172 = arith.constant dense<0.000000e+00> : vector<8x12xf32>
    %379 = tpu.matmul %377, %378, %cst_172 {dimension_numbers = #tpu.dot_dimension_numbers<[1], [1], [0], [0], [0, 0, 1, 0], [], []>} : vector<8x8xf32>, vector<12x8xf32>, vector<8x12xf32> -> vector<8x12xf32>
    %380 = vector.broadcast %309 : vector<1x12xf32> to vector<8x12xf32>
    %381 = arith.addf %379, %380 : vector<8x12xf32>
    %cst_173 = arith.constant dense<0xFF800000> : vector<8xf32>
    %382 = vector.multi_reduction <maximumf>, %381, %cst_173 [1] : vector<8x12xf32> to vector<8xf32>
    %383 = vector.shape_cast %382 : vector<8xf32> to vector<8x1xf32>
    %384 = vector.broadcast %383 : vector<8x1xf32> to vector<8x12xf32>
    %385 = arith.subf %381, %384 : vector<8x12xf32>
    %386 = math.exp %385 : vector<8x12xf32>
    %cst_174 = arith.constant dense<0.000000e+00> : vector<8xf32>
    %387 = vector.multi_reduction <add>, %386, %cst_174 [1] : vector<8x12xf32> to vector<8xf32>
    %388 = vector.shape_cast %387 : vector<8xf32> to vector<8x1xf32>
    %389 = tpu.reciprocal %388 {approx = true} : vector<8x1xf32> -> vector<8x1xf32>
    %390 = vector.broadcast %389 : vector<8x1xf32> to vector<8x12xf32>
    %391 = arith.mulf %386, %390 : vector<8x12xf32>
    %392 = vector.extract_strided_slice %303 {offsets = [0, 24], sizes = [12, 8], strides = [1, 1]} : vector<12x32xf32> to vector<12x8xf32>
    %cst_175 = arith.constant dense<0.000000e+00> : vector<8x8xf32>
    %393 = tpu.matmul %391, %392, %cst_175 {dimension_numbers = #tpu.dot_dimension_numbers<[1], [0], [0], [1], [0, 0, 1, 1], [], []>} : vector<8x12xf32>, vector<12x8xf32>, vector<8x8xf32> -> vector<8x8xf32>
    %394 = vector.extract_strided_slice %311 {offsets = [24, 0], sizes = [8, 32], strides = [1, 1]} : vector<32x32xf32> to vector<8x32xf32>
    %cst_176 = arith.constant dense<0.000000e+00> : vector<8x32xf32>
    %395 = tpu.matmul %393, %394, %cst_176 {dimension_numbers = #tpu.dot_dimension_numbers<[1], [0], [0], [1], [0, 0, 1, 1], [], []>} : vector<8x8xf32>, vector<8x32xf32>, vector<8x32xf32> -> vector<8x32xf32>
    %396 = arith.addf %376, %395 : vector<8x32xf32>
    %397 = vector.broadcast %313 : vector<1x32xf32> to vector<8x32xf32>
    %398 = arith.addf %396, %397 : vector<8x32xf32>
    %399 = arith.addf %398, %280 : vector<8x32xf32>
    %cst_177 = arith.constant dense<0.000000e+00> : vector<8xf32>
    %400 = vector.multi_reduction <add>, %399, %cst_177 [1] : vector<8x32xf32> to vector<8xf32>
    %401 = vector.shape_cast %400 : vector<8xf32> to vector<8x1xf32>
    %cst_178 = arith.constant 3.200000e+01 : f32
    %402 = vector.broadcast %cst_178 : f32 to vector<8x1xf32>
    %403 = arith.divf %401, %402 : vector<8x1xf32>
    %404 = vector.broadcast %403 : vector<8x1xf32> to vector<8x32xf32>
    %405 = arith.subf %399, %404 : vector<8x32xf32>
    %406 = arith.mulf %405, %405 : vector<8x32xf32>
    %cst_179 = arith.constant dense<0.000000e+00> : vector<8xf32>
    %407 = vector.multi_reduction <add>, %406, %cst_179 [1] : vector<8x32xf32> to vector<8xf32>
    %408 = vector.shape_cast %407 : vector<8xf32> to vector<8x1xf32>
    %cst_180 = arith.constant 3.200000e+01 : f32
    %409 = vector.broadcast %cst_180 : f32 to vector<8x1xf32>
    %410 = arith.divf %408, %409 : vector<8x1xf32>
    %411 = vector.broadcast %403 : vector<8x1xf32> to vector<8x32xf32>
    %412 = arith.subf %399, %411 : vector<8x32xf32>
    %cst_181 = arith.constant 9.99999996E-13 : f32
    %413 = vector.broadcast %cst_181 : f32 to vector<8x1xf32>
    %414 = arith.addf %410, %413 : vector<8x1xf32>
    %415 = math.rsqrt %414 : vector<8x1xf32>
    %416 = vector.broadcast %415 : vector<8x1xf32> to vector<8x32xf32>
    %417 = arith.mulf %412, %416 : vector<8x32xf32>
    %c2_182 = arith.constant 2 : index
    %c0_183 = arith.constant 0 : index
    %c0_184 = arith.constant 0 : index
    %418 = vector.load %arg21[%c2_182, %c0_183, %c0_184] : memref<4x1x32xf32, #tpu.memory_space<vmem>>, vector<1x1x32xf32>
    %419 = vector.shape_cast %418 : vector<1x1x32xf32> to vector<1x32xf32>
    %420 = vector.broadcast %419 : vector<1x32xf32> to vector<8x32xf32>
    %421 = arith.mulf %417, %420 : vector<8x32xf32>
    %c2_185 = arith.constant 2 : index
    %c0_186 = arith.constant 0 : index
    %c0_187 = arith.constant 0 : index
    %422 = vector.load %arg22[%c2_185, %c0_186, %c0_187] : memref<4x1x32xf32, #tpu.memory_space<vmem>>, vector<1x1x32xf32>
    %423 = vector.shape_cast %422 : vector<1x1x32xf32> to vector<1x32xf32>
    %424 = vector.broadcast %423 : vector<1x32xf32> to vector<8x32xf32>
    %425 = arith.addf %421, %424 : vector<8x32xf32>
    %c0_188 = arith.constant 0 : index
    %c0_189 = arith.constant 0 : index
    %426 = vector.load %arg23[%c0_188, %c0_189] : memref<32x64xf32, #tpu.memory_space<vmem>>, vector<32x64xf32>
    %cst_190 = arith.constant dense<0.000000e+00> : vector<8x64xf32>
    %427 = tpu.matmul %425, %426, %cst_190 {dimension_numbers = #tpu.dot_dimension_numbers<[1], [0], [0], [1], [0, 0, 1, 1], [], []>} : vector<8x32xf32>, vector<32x64xf32>, vector<8x64xf32> -> vector<8x64xf32>
    %c0_191 = arith.constant 0 : index
    %c0_192 = arith.constant 0 : index
    %428 = vector.load %arg24[%c0_191, %c0_192] : memref<1x64xf32, #tpu.memory_space<vmem>>, vector<1x64xf32>
    %429 = vector.broadcast %428 : vector<1x64xf32> to vector<8x64xf32>
    %430 = arith.addf %427, %429 : vector<8x64xf32>
    %cst_193 = arith.constant 5.000000e-01 : f32
    %431 = vector.broadcast %cst_193 : f32 to vector<8x64xf32>
    %432 = arith.mulf %431, %430 : vector<8x64xf32>
    %cst_194 = arith.constant 4.471500e-02 : f32
    %433 = vector.broadcast %cst_194 : f32 to vector<8x64xf32>
    %434 = arith.mulf %433, %430 : vector<8x64xf32>
    %435 = arith.mulf %434, %430 : vector<8x64xf32>
    %436 = arith.mulf %435, %430 : vector<8x64xf32>
    %437 = arith.addf %430, %436 : vector<8x64xf32>
    %cst_195 = arith.constant 0.797884583 : f32
    %438 = vector.broadcast %cst_195 : f32 to vector<8x64xf32>
    %439 = arith.mulf %438, %437 : vector<8x64xf32>
    %440 = math.tanh %439 : vector<8x64xf32>
    %cst_196 = arith.constant 1.000000e+00 : f32
    %441 = vector.broadcast %cst_196 : f32 to vector<8x64xf32>
    %442 = arith.addf %441, %440 : vector<8x64xf32>
    %443 = arith.mulf %432, %442 : vector<8x64xf32>
    %c0_197 = arith.constant 0 : index
    %c0_198 = arith.constant 0 : index
    %444 = vector.load %arg25[%c0_197, %c0_198] : memref<64x32xf32, #tpu.memory_space<vmem>>, vector<64x32xf32>
    %cst_199 = arith.constant dense<0.000000e+00> : vector<8x32xf32>
    %445 = tpu.matmul %443, %444, %cst_199 {dimension_numbers = #tpu.dot_dimension_numbers<[1], [0], [0], [1], [0, 0, 1, 1], [], []>} : vector<8x64xf32>, vector<64x32xf32>, vector<8x32xf32> -> vector<8x32xf32>
    %c0_200 = arith.constant 0 : index
    %c0_201 = arith.constant 0 : index
    %446 = vector.load %arg26[%c0_200, %c0_201] : memref<1x32xf32, #tpu.memory_space<vmem>>, vector<1x32xf32>
    %447 = vector.broadcast %446 : vector<1x32xf32> to vector<8x32xf32>
    %448 = arith.addf %445, %447 : vector<8x32xf32>
    %449 = arith.addf %448, %425 : vector<8x32xf32>
    %cst_202 = arith.constant dense<0.000000e+00> : vector<8xf32>
    %450 = vector.multi_reduction <add>, %449, %cst_202 [1] : vector<8x32xf32> to vector<8xf32>
    %451 = vector.shape_cast %450 : vector<8xf32> to vector<8x1xf32>
    %cst_203 = arith.constant 3.200000e+01 : f32
    %452 = vector.broadcast %cst_203 : f32 to vector<8x1xf32>
    %453 = arith.divf %451, %452 : vector<8x1xf32>
    %454 = vector.broadcast %453 : vector<8x1xf32> to vector<8x32xf32>
    %455 = arith.subf %449, %454 : vector<8x32xf32>
    %456 = arith.mulf %455, %455 : vector<8x32xf32>
    %cst_204 = arith.constant dense<0.000000e+00> : vector<8xf32>
    %457 = vector.multi_reduction <add>, %456, %cst_204 [1] : vector<8x32xf32> to vector<8xf32>
    %458 = vector.shape_cast %457 : vector<8xf32> to vector<8x1xf32>
    %cst_205 = arith.constant 3.200000e+01 : f32
    %459 = vector.broadcast %cst_205 : f32 to vector<8x1xf32>
    %460 = arith.divf %458, %459 : vector<8x1xf32>
    %461 = vector.broadcast %453 : vector<8x1xf32> to vector<8x32xf32>
    %462 = arith.subf %449, %461 : vector<8x32xf32>
    %cst_206 = arith.constant 9.99999996E-13 : f32
    %463 = vector.broadcast %cst_206 : f32 to vector<8x1xf32>
    %464 = arith.addf %460, %463 : vector<8x1xf32>
    %465 = math.rsqrt %464 : vector<8x1xf32>
    %466 = vector.broadcast %465 : vector<8x1xf32> to vector<8x32xf32>
    %467 = arith.mulf %462, %466 : vector<8x32xf32>
    %c3 = arith.constant 3 : index
    %c0_207 = arith.constant 0 : index
    %c0_208 = arith.constant 0 : index
    %468 = vector.load %arg21[%c3, %c0_207, %c0_208] : memref<4x1x32xf32, #tpu.memory_space<vmem>>, vector<1x1x32xf32>
    %469 = vector.shape_cast %468 : vector<1x1x32xf32> to vector<1x32xf32>
    %470 = vector.broadcast %469 : vector<1x32xf32> to vector<8x32xf32>
    %471 = arith.mulf %467, %470 : vector<8x32xf32>
    %c3_209 = arith.constant 3 : index
    %c0_210 = arith.constant 0 : index
    %c0_211 = arith.constant 0 : index
    %472 = vector.load %arg22[%c3_209, %c0_210, %c0_211] : memref<4x1x32xf32, #tpu.memory_space<vmem>>, vector<1x1x32xf32>
    %473 = vector.shape_cast %472 : vector<1x1x32xf32> to vector<1x32xf32>
    %474 = vector.broadcast %473 : vector<1x32xf32> to vector<8x32xf32>
    %475 = arith.addf %471, %474 : vector<8x32xf32>
    %c0_212 = arith.constant 0 : index
    %c0_213 = arith.constant 0 : index
    %c0_214 = arith.constant 0 : index
    %476 = vector.load %arg27[%c0_212, %c0_213, %c0_214] : memref<1x8x32xf32, #tpu.memory_space<vmem>>, vector<1x8x32xf32>
    %477 = vector.shape_cast %476 : vector<1x8x32xf32> to vector<8x32xf32>
    %478 = vector.shape_cast %475 : vector<8x32xf32> to vector<1x8x32xf32>
    tpu.vector_store %arg27[%c0_212, %c0_213, %c0_214], %478 {strides = array<i32>} : memref<1x8x32xf32, #tpu.memory_space<vmem>>, vector<1x8x32xf32>,
    return
  }
  func.func @transform_0(%arg0: i32) -> (i32, i32, i32) {
    %c0_i32 = arith.constant 0 : i32
    %c0_i32_0 = arith.constant 0 : i32
    %c0_i32_1 = arith.constant 0 : i32
    return %arg0, %c0_i32, %c0_i32_0 : i32, i32, i32
  }
  func.func @transform_1(%arg0: i32) -> (i32, i32, i32) {
    %c0_i32 = arith.constant 0 : i32
    %c0_i32_0 = arith.constant 0 : i32
    %c0_i32_1 = arith.constant 0 : i32
    return %arg0, %c0_i32, %c0_i32_0 : i32, i32, i32
  }
  func.func @transform_2(%arg0: i32) -> (i32, i32, i32) {
    %c0_i32 = arith.constant 0 : i32
    %c0_i32_0 = arith.constant 0 : i32
    %c0_i32_1 = arith.constant 0 : i32
    return %arg0, %c0_i32, %c0_i32_0 : i32, i32, i32
  }
  func.func @transform_3(%arg0: i32) -> (i32, i32, i32) {
    %c0_i32 = arith.constant 0 : i32
    %c0_i32_0 = arith.constant 0 : i32
    %c0_i32_1 = arith.constant 0 : i32
    return %arg0, %c0_i32, %c0_i32_0 : i32, i32, i32
  }
  func.func @transform_4(%arg0: i32) -> (i32, i32, i32) {
    %c0_i32 = arith.constant 0 : i32
    %c0_i32_0 = arith.constant 0 : i32
    %c0_i32_1 = arith.constant 0 : i32
    return %arg0, %c0_i32, %c0_i32_0 : i32, i32, i32
  }
  func.func @transform_5(%arg0: i32) -> (i32, i32, i32) {
    %c0_i32 = arith.constant 0 : i32
    %c0_i32_0 = arith.constant 0 : i32
    %c0_i32_1 = arith.constant 0 : i32
    return %arg0, %c0_i32, %c0_i32_0 : i32, i32, i32
  }
  func.func @transform_6(%arg0: i32) -> (i32, i32, i32) {
    %c0_i32 = arith.constant 0 : i32
    %c0_i32_0 = arith.constant 0 : i32
    %c0_i32_1 = arith.constant 0 : i32
    return %arg0, %c0_i32, %c0_i32_0 : i32, i32, i32
  }
  func.func @transform_7(%arg0: i32) -> (i32, i32, i32) {
    %c0_i32 = arith.constant 0 : i32
    %c0_i32_0 = arith.constant 0 : i32
    %c0_i32_1 = arith.constant 0 : i32
    return %arg0, %c0_i32, %c0_i32_0 : i32, i32, i32
  }
  func.func @transform_8(%arg0: i32) -> (i32, i32) {
    %c0_i32 = arith.constant 0 : i32
    %c0_i32_0 = arith.constant 0 : i32
    %c0_i32_1 = arith.constant 0 : i32
    return %c0_i32, %c0_i32_0 : i32, i32
  }
  func.func @transform_9(%arg0: i32) -> (i32, i32) {
    %c0_i32 = arith.constant 0 : i32
    %c0_i32_0 = arith.constant 0 : i32
    %c0_i32_1 = arith.constant 0 : i32
    return %c0_i32, %c0_i32_0 : i32, i32
  }
  func.func @transform_10(%arg0: i32) -> (i32, i32) {
    %c0_i32 = arith.constant 0 : i32
    %c0_i32_0 = arith.constant 0 : i32
    %c0_i32_1 = arith.constant 0 : i32
    return %c0_i32, %c0_i32_0 : i32, i32
  }
  func.func @transform_11(%arg0: i32) -> (i32, i32) {
    %c0_i32 = arith.constant 0 : i32
    %c0_i32_0 = arith.constant 0 : i32
    %c0_i32_1 = arith.constant 0 : i32
    return %c0_i32, %c0_i32_0 : i32, i32
  }
  func.func @transform_12(%arg0: i32) -> (i32, i32, i32) {
    %c0_i32 = arith.constant 0 : i32
    %c0_i32_0 = arith.constant 0 : i32
    %c0_i32_1 = arith.constant 0 : i32
    %c0_i32_2 = arith.constant 0 : i32
    return %c0_i32, %c0_i32_0, %c0_i32_1 : i32, i32, i32
  }
  func.func @transform_13(%arg0: i32) -> (i32, i32, i32) {
    %c0_i32 = arith.constant 0 : i32
    %c0_i32_0 = arith.constant 0 : i32
    %c0_i32_1 = arith.constant 0 : i32
    %c0_i32_2 = arith.constant 0 : i32
    return %c0_i32, %c0_i32_0, %c0_i32_1 : i32, i32, i32
  }
  func.func @transform_14(%arg0: i32) -> (i32, i32) {
    %c0_i32 = arith.constant 0 : i32
    %c0_i32_0 = arith.constant 0 : i32
    %c0_i32_1 = arith.constant 0 : i32
    return %c0_i32, %c0_i32_0 : i32, i32
  }
  func.func @transform_15(%arg0: i32) -> (i32, i32) {
    %c0_i32 = arith.constant 0 : i32
    %c0_i32_0 = arith.constant 0 : i32
    %c0_i32_1 = arith.constant 0 : i32
    return %c0_i32, %c0_i32_0 : i32, i32
  }
  func.func @transform_16(%arg0: i32) -> (i32, i32, i32) {
    %c0_i32 = arith.constant 0 : i32
    %c0_i32_0 = arith.constant 0 : i32
    %c0_i32_1 = arith.constant 0 : i32
    %c0_i32_2 = arith.constant 0 : i32
    return %c0_i32, %c0_i32_0, %c0_i32_1 : i32, i32, i32
  }
  func.func @transform_17(%arg0: i32) -> (i32, i32, i32) {
    %c0_i32 = arith.constant 0 : i32
    %c0_i32_0 = arith.constant 0 : i32
    %c0_i32_1 = arith.constant 0 : i32
    %c0_i32_2 = arith.constant 0 : i32
    return %c0_i32, %c0_i32_0, %c0_i32_1 : i32, i32, i32
  }
  func.func @transform_18(%arg0: i32) -> (i32, i32, i32) {
    %c0_i32 = arith.constant 0 : i32
    %c0_i32_0 = arith.constant 0 : i32
    %c0_i32_1 = arith.constant 0 : i32
    %c0_i32_2 = arith.constant 0 : i32
    return %c0_i32, %c0_i32_0, %c0_i32_1 : i32, i32, i32
  }
  func.func @transform_19(%arg0: i32) -> (i32, i32, i32) {
    %c0_i32 = arith.constant 0 : i32
    %c0_i32_0 = arith.constant 0 : i32
    %c0_i32_1 = arith.constant 0 : i32
    %c0_i32_2 = arith.constant 0 : i32
    return %c0_i32, %c0_i32_0, %c0_i32_1 : i32, i32, i32
  }
  func.func @transform_20(%arg0: i32) -> (i32, i32, i32) {
    %c0_i32 = arith.constant 0 : i32
    %c0_i32_0 = arith.constant 0 : i32
    %c0_i32_1 = arith.constant 0 : i32
    %c0_i32_2 = arith.constant 0 : i32
    return %c0_i32, %c0_i32_0, %c0_i32_1 : i32, i32, i32
  }
  func.func @transform_21(%arg0: i32) -> (i32, i32, i32) {
    %c0_i32 = arith.constant 0 : i32
    %c0_i32_0 = arith.constant 0 : i32
    %c0_i32_1 = arith.constant 0 : i32
    %c0_i32_2 = arith.constant 0 : i32
    return %c0_i32, %c0_i32_0, %c0_i32_1 : i32, i32, i32
  }
  func.func @transform_22(%arg0: i32) -> (i32, i32) {
    %c0_i32 = arith.constant 0 : i32
    %c0_i32_0 = arith.constant 0 : i32
    %c0_i32_1 = arith.constant 0 : i32
    return %c0_i32, %c0_i32_0 : i32, i32
  }
  func.func @transform_23(%arg0: i32) -> (i32, i32) {
    %c0_i32 = arith.constant 0 : i32
    %c0_i32_0 = arith.constant 0 : i32
    %c0_i32_1 = arith.constant 0 : i32
    return %c0_i32, %c0_i32_0 : i32, i32
  }
  func.func @transform_24(%arg0: i32) -> (i32, i32) {
    %c0_i32 = arith.constant 0 : i32
    %c0_i32_0 = arith.constant 0 : i32
    %c0_i32_1 = arith.constant 0 : i32
    return %c0_i32, %c0_i32_0 : i32, i32
  }
  func.func @transform_25(%arg0: i32) -> (i32, i32) {
    %c0_i32 = arith.constant 0 : i32
    %c0_i32_0 = arith.constant 0 : i32
    %c0_i32_1 = arith.constant 0 : i32
    return %c0_i32, %c0_i32_0 : i32, i32
  }
  func.func @transform_26(%arg0: i32) -> (i32, i32, i32) {
    %c0_i32 = arith.constant 0 : i32
    %c0_i32_0 = arith.constant 0 : i32
    %c0_i32_1 = arith.constant 0 : i32
    return %arg0, %c0_i32, %c0_i32_0 : i32, i32, i32
  }
}

module attributes {stable_mosaic.version = 11 : i64} {
  func.func @_decoder_layer_kernel(%arg0: i32, %arg1: memref<1x8x32xf32, #tpu.memory_space<vmem>>, %arg2: memref<1x10x32xf32, #tpu.memory_space<vmem>>, %arg3: memref<1x10x32xf32, #tpu.memory_space<vmem>>, %arg4: memref<1x12x32xf32, #tpu.memory_space<vmem>>, %arg5: memref<1x12x32xf32, #tpu.memory_space<vmem>>, %arg6: memref<1x1x8xf32, #tpu.memory_space<vmem>>, %arg7: memref<1x1x10xf32, #tpu.memory_space<vmem>>, %arg8: memref<1x1x12xf32, #tpu.memory_space<vmem>>, %arg9: memref<32x96xf32, #tpu.memory_space<vmem>>, %arg10: memref<1x96xf32, #tpu.memory_space<vmem>>, %arg11: memref<32x32xf32, #tpu.memory_space<vmem>>, %arg12: memref<1x32xf32, #tpu.memory_space<vmem>>, %arg13: memref<2x32x32xf32, #tpu.memory_space<vmem>>, %arg14: memref<2x1x32xf32, #tpu.memory_space<vmem>>, %arg15: memref<32x32xf32, #tpu.memory_space<vmem>>, %arg16: memref<1x32xf32, #tpu.memory_space<vmem>>, %arg17: memref<2x32x32xf32, #tpu.memory_space<vmem>>, %arg18: memref<2x1x32xf32, #tpu.memory_space<vmem>>, %arg19: memref<3x32x32xf32, #tpu.memory_space<vmem>>, %arg20: memref<3x1x32xf32, #tpu.memory_space<vmem>>, %arg21: memref<4x1x32xf32, #tpu.memory_space<vmem>>, %arg22: memref<4x1x32xf32, #tpu.memory_space<vmem>>, %arg23: memref<32x64xf32, #tpu.memory_space<vmem>>, %arg24: memref<1x64xf32, #tpu.memory_space<vmem>>, %arg25: memref<64x32xf32, #tpu.memory_space<vmem>>, %arg26: memref<1x32xf32, #tpu.memory_space<vmem>>, %arg27: memref<1x8x32xf32, #tpu.memory_space<vmem>>) attributes {dimension_semantics = [#tpu.dimension_semantics<parallel>], iteration_bounds = array<i64: 2>, scalar_prefetch = 0 : i64, scratch_operands = 0 : i64, tpu.core_type = #tpu.core_type<tc>, window_params = [{transform_indices = @transform_0, window_bounds = array<i64: 1, 8, 32>}, {transform_indices = @transform_1, window_bounds = array<i64: 1, 10, 32>}, {transform_indices = @transform_2, window_bounds = array<i64: 1, 10, 32>}, {transform_indices = @transform_3, window_bounds = array<i64: 1, 12, 32>}, {transform_indices = @transform_4, window_bounds = array<i64: 1, 12, 32>}, {transform_indices = @transform_5, window_bounds = array<i64: 1, 1, 8>}, {transform_indices = @transform_6, window_bounds = array<i64: 1, 1, 10>}, {transform_indices = @transform_7, window_bounds = array<i64: 1, 1, 12>}, {pipeline_mode = #tpu.pipeline_mode<synchronous>, transform_indices = @transform_8, window_bounds = array<i64: 32, 96>}, {pipeline_mode = #tpu.pipeline_mode<synchronous>, transform_indices = @transform_9, window_bounds = array<i64: 1, 96>}, {pipeline_mode = #tpu.pipeline_mode<synchronous>, transform_indices = @transform_10, window_bounds = array<i64: 32, 32>}, {pipeline_mode = #tpu.pipeline_mode<synchronous>, transform_indices = @transform_11, window_bounds = array<i64: 1, 32>}, {pipeline_mode = #tpu.pipeline_mode<synchronous>, transform_indices = @transform_12, window_bounds = array<i64: 2, 32, 32>}, {pipeline_mode = #tpu.pipeline_mode<synchronous>, transform_indices = @transform_13, window_bounds = array<i64: 2, 1, 32>}, {pipeline_mode = #tpu.pipeline_mode<synchronous>, transform_indices = @transform_14, window_bounds = array<i64: 32, 32>}, {pipeline_mode = #tpu.pipeline_mode<synchronous>, transform_indices = @transform_15, window_bounds = array<i64: 1, 32>}, {pipeline_mode = #tpu.pipeline_mode<synchronous>, transform_indices = @transform_16, window_bounds = array<i64: 2, 32, 32>}, {pipeline_mode = #tpu.pipeline_mode<synchronous>, transform_indices = @transform_17, window_bounds = array<i64: 2, 1, 32>}, {pipeline_mode = #tpu.pipeline_mode<synchronous>, transform_indices = @transform_18, window_bounds = array<i64: 3, 32, 32>}, {pipeline_mode = #tpu.pipeline_mode<synchronous>, transform_indices = @transform_19, window_bounds = array<i64: 3, 1, 32>}, {pipeline_mode = #tpu.pipeline_mode<synchronous>, transform_indices = @transform_20, window_bounds = array<i64: 4, 1, 32>}, {pipeline_mode = #tpu.pipeline_mode<synchronous>, transform_indices = @transform_21, window_bounds = array<i64: 4, 1, 32>}, {pipeline_mode = #tpu.pipeline_mode<synchronous>, transform_indices = @transform_22, window_bounds = array<i64: 32, 64>}, {pipeline_mode = #tpu.pipeline_mode<synchronous>, transform_indices = @transform_23, window_bounds = array<i64: 1, 64>}, {pipeline_mode = #tpu.pipeline_mode<synchronous>, transform_indices = @transform_24, window_bounds = array<i64: 64, 32>}, {pipeline_mode = #tpu.pipeline_mode<synchronous>, transform_indices = @transform_25, window_bounds = array<i64: 1, 32>}, {transform_indices = @transform_26, window_bounds = array<i64: 1, 8, 32>}]} {
    %c0 = arith.constant 0 : index
    %c0_0 = arith.constant 0 : index
    %c0_1 = arith.constant 0 : index
    %0 = vector.load %arg1[%c0, %c0_0, %c0_1] : memref<1x8x32xf32, #tpu.memory_space<vmem>>, vector<1x8x32xf32>
    %1 = vector.shape_cast %0 : vector<1x8x32xf32> to vector<8x32xf32>
    %2 = tpu.iota {dimensions = array<i32: 0>} : vector<8x8xi32>
    %3 = tpu.iota {dimensions = array<i32: 1>} : vector<8x8xi32>
    %4 = arith.cmpi sgt, %3, %2 : vector<8x8xi32>
    %cst = arith.constant -1.000000e+09 : f32
    %cst_2 = arith.constant 0.000000e+00 : f32
    %5 = vector.broadcast %cst : f32 to vector<8x8xf32>
    %6 = vector.broadcast %cst_2 : f32 to vector<8x8xf32>
    %7 = arith.select %4, %5, %6 : vector<8x8xi1>, vector<8x8xf32>
    %c0_3 = arith.constant 0 : index
    %c0_4 = arith.constant 0 : index
    %c0_5 = arith.constant 0 : index
    %8 = vector.load %arg6[%c0_3, %c0_4, %c0_5] : memref<1x1x8xf32, #tpu.memory_space<vmem>>, vector<1x1x8xf32>
    %9 = vector.shape_cast %8 : vector<1x1x8xf32> to vector<1x8xf32>
    %cst_6 = arith.constant 1.000000e+00 : f32
    %10 = vector.broadcast %cst_6 : f32 to vector<1x8xf32>
    %11 = arith.subf %10, %9 : vector<1x8xf32>
    %cst_7 = arith.constant -1.000000e+09 : f32
    %12 = vector.broadcast %cst_7 : f32 to vector<1x8xf32>
    %13 = arith.mulf %11, %12 : vector<1x8xf32>
    %14 = vector.broadcast %13 : vector<1x8xf32> to vector<8x8xf32>
    %15 = arith.addf %7, %14 : vector<8x8xf32>
    %c0_8 = arith.constant 0 : index
    %c0_9 = arith.constant 0 : index
    %16 = vector.load %arg9[%c0_8, %c0_9] : memref<32x96xf32, #tpu.memory_space<vmem>>, vector<32x96xf32>
    %cst_10 = arith.constant dense<0.000000e+00> : vector<8x96xf32>
    %17 = tpu.matmul %1, %16, %cst_10 {dimension_numbers = #tpu.dot_dimension_numbers<[1], [0], [0], [1], [0, 0, 1, 1], [], []>} : vector<8x32xf32>, vector<32x96xf32>, vector<8x96xf32> -> vector<8x96xf32>
    %c0_11 = arith.constant 0 : index
    %c0_12 = arith.constant 0 : index
    %18 = vector.load %arg10[%c0_11, %c0_12] : memref<1x96xf32, #tpu.memory_space<vmem>>, vector<1x96xf32>
    %19 = vector.broadcast %18 : vector<1x96xf32> to vector<8x96xf32>
    %20 = arith.addf %17, %19 : vector<8x96xf32>
    %21 = vector.extract_strided_slice %20 {offsets = [0, 0], sizes = [8, 32], strides = [1, 1]} : vector<8x96xf32> to vector<8x32xf32>
    %22 = vector.extract_strided_slice %20 {offsets = [0, 32], sizes = [8, 32], strides = [1, 1]} : vector<8x96xf32> to vector<8x32xf32>
    %23 = vector.extract_strided_slice %20 {offsets = [0, 64], sizes = [8, 32], strides = [1, 1]} : vector<8x96xf32> to vector<8x32xf32>
    %c0_13 = arith.constant 0 : index
    %c0_14 = arith.constant 0 : index
    %c0_15 = arith.constant 0 : index
    %24 = vector.load %arg19[%c0_13, %c0_14, %c0_15] : memref<3x32x32xf32, #tpu.memory_space<vmem>>, vector<1x32x32xf32>
    %25 = vector.shape_cast %24 : vector<1x32x32xf32> to vector<32x32xf32>
    %c0_16 = arith.constant 0 : index
    %c0_17 = arith.constant 0 : index
    %c0_18 = arith.constant 0 : index
    %26 = vector.load %arg20[%c0_16, %c0_17, %c0_18] : memref<3x1x32xf32, #tpu.memory_space<vmem>>, vector<1x1x32xf32>
    %27 = vector.shape_cast %26 : vector<1x1x32xf32> to vector<1x32xf32>
    %cst_19 = arith.constant 0.353553385 : f32
    %28 = vector.broadcast %cst_19 : f32 to vector<8x32xf32>
    %29 = arith.mulf %21, %28 : vector<8x32xf32>
    %cst_20 = arith.constant 0.000000e+00 : f32
    %30 = vector.broadcast %cst_20 : f32 to vector<8x32xf32>
    %31 = vector.extract_strided_slice %29 {offsets = [0, 0], sizes = [8, 8], strides = [1, 1]} : vector<8x32xf32> to vector<8x8xf32>
    %32 = vector.extract_strided_slice %22 {offsets = [0, 0], sizes = [8, 8], strides = [1, 1]} : vector<8x32xf32> to vector<8x8xf32>
    %cst_21 = arith.constant dense<0.000000e+00> : vector<8x8xf32>
    %33 = tpu.matmul %31, %32, %cst_21 {dimension_numbers = #tpu.dot_dimension_numbers<[1], [1], [0], [0], [0, 0, 1, 0], [], []>} : vector<8x8xf32>, vector<8x8xf32>, vector<8x8xf32> -> vector<8x8xf32>
    %34 = arith.addf %33, %15 : vector<8x8xf32>
    %cst_22 = arith.constant dense<0xFF800000> : vector<8xf32>
    %35 = vector.multi_reduction <maximumf>, %34, %cst_22 [1] : vector<8x8xf32> to vector<8xf32>
    %36 = vector.shape_cast %35 : vector<8xf32> to vector<8x1xf32>
    %37 = vector.broadcast %36 : vector<8x1xf32> to vector<8x8xf32>
    %38 = arith.subf %34, %37 : vector<8x8xf32>
    %39 = math.exp %38 : vector<8x8xf32>
    %cst_23 = arith.constant dense<0.000000e+00> : vector<8xf32>
    %40 = vector.multi_reduction <add>, %39, %cst_23 [1] : vector<8x8xf32> to vector<8xf32>
    %41 = vector.shape_cast %40 : vector<8xf32> to vector<8x1xf32>
    %42 = tpu.reciprocal %41 {approx = true} : vector<8x1xf32> -> vector<8x1xf32>
    %43 = vector.broadcast %42 : vector<8x1xf32> to vector<8x8xf32>
    %44 = arith.mulf %39, %43 : vector<8x8xf32>
    %45 = vector.extract_strided_slice %23 {offsets = [0, 0], sizes = [8, 8], strides = [1, 1]} : vector<8x32xf32> to vector<8x8xf32>
    %cst_24 = arith.constant dense<0.000000e+00> : vector<8x8xf32>
    %46 = tpu.matmul %44, %45, %cst_24 {dimension_numbers = #tpu.dot_dimension_numbers<[1], [0], [0], [1], [0, 0, 1, 1], [], []>} : vector<8x8xf32>, vector<8x8xf32>, vector<8x8xf32> -> vector<8x8xf32>
    %47 = vector.extract_strided_slice %25 {offsets = [0, 0], sizes = [8, 32], strides = [1, 1]} : vector<32x32xf32> to vector<8x32xf32>
    %cst_25 = arith.constant dense<0.000000e+00> : vector<8x32xf32>
    %48 = tpu.matmul %46, %47, %cst_25 {dimension_numbers = #tpu.dot_dimension_numbers<[1], [0], [0], [1], [0, 0, 1, 1], [], []>} : vector<8x8xf32>, vector<8x32xf32>, vector<8x32xf32> -> vector<8x32xf32>
    %49 = arith.addf %30, %48 : vector<8x32xf32>
    %50 = vector.extract_strided_slice %29 {offsets = [0, 8], sizes = [8, 8], strides = [1, 1]} : vector<8x32xf32> to vector<8x8xf32>
    %51 = vector.extract_strided_slice %22 {offsets = [0, 8], sizes = [8, 8], strides = [1, 1]} : vector<8x32xf32> to vector<8x8xf32>
    %cst_26 = arith.constant dense<0.000000e+00> : vector<8x8xf32>
    %52 = tpu.matmul %50, %51, %cst_26 {dimension_numbers = #tpu.dot_dimension_numbers<[1], [1], [0], [0], [0, 0, 1, 0], [], []>} : vector<8x8xf32>, vector<8x8xf32>, vector<8x8xf32> -> vector<8x8xf32>
    %53 = arith.addf %52, %15 : vector<8x8xf32>
    %cst_27 = arith.constant dense<0xFF800000> : vector<8xf32>
    %54 = vector.multi_reduction <maximumf>, %53, %cst_27 [1] : vector<8x8xf32> to vector<8xf32>
    %55 = vector.shape_cast %54 : vector<8xf32> to vector<8x1xf32>
    %56 = vector.broadcast %55 : vector<8x1xf32> to vector<8x8xf32>
    %57 = arith.subf %53, %56 : vector<8x8xf32>
    %58 = math.exp %57 : vector<8x8xf32>
    %cst_28 = arith.constant dense<0.000000e+00> : vector<8xf32>
    %59 = vector.multi_reduction <add>, %58, %cst_28 [1] : vector<8x8xf32> to vector<8xf32>
    %60 = vector.shape_cast %59 : vector<8xf32> to vector<8x1xf32>
    %61 = tpu.reciprocal %60 {approx = true} : vector<8x1xf32> -> vector<8x1xf32>
    %62 = vector.broadcast %61 : vector<8x1xf32> to vector<8x8xf32>
    %63 = arith.mulf %58, %62 : vector<8x8xf32>
    %64 = vector.extract_strided_slice %23 {offsets = [0, 8], sizes = [8, 8], strides = [1, 1]} : vector<8x32xf32> to vector<8x8xf32>
    %cst_29 = arith.constant dense<0.000000e+00> : vector<8x8xf32>
    %65 = tpu.matmul %63, %64, %cst_29 {dimension_numbers = #tpu.dot_dimension_numbers<[1], [0], [0], [1], [0, 0, 1, 1], [], []>} : vector<8x8xf32>, vector<8x8xf32>, vector<8x8xf32> -> vector<8x8xf32>
    %66 = vector.extract_strided_slice %25 {offsets = [8, 0], sizes = [8, 32], strides = [1, 1]} : vector<32x32xf32> to vector<8x32xf32>
    %cst_30 = arith.constant dense<0.000000e+00> : vector<8x32xf32>
    %67 = tpu.matmul %65, %66, %cst_30 {dimension_numbers = #tpu.dot_dimension_numbers<[1], [0], [0], [1], [0, 0, 1, 1], [], []>} : vector<8x8xf32>, vector<8x32xf32>, vector<8x32xf32> -> vector<8x32xf32>
    %68 = arith.addf %49, %67 : vector<8x32xf32>
    %69 = vector.extract_strided_slice %29 {offsets = [0, 16], sizes = [8, 8], strides = [1, 1]} : vector<8x32xf32> to vector<8x8xf32>
    %70 = vector.extract_strided_slice %22 {offsets = [0, 16], sizes = [8, 8], strides = [1, 1]} : vector<8x32xf32> to vector<8x8xf32>
    %cst_31 = arith.constant dense<0.000000e+00> : vector<8x8xf32>
    %71 = tpu.matmul %69, %70, %cst_31 {dimension_numbers = #tpu.dot_dimension_numbers<[1], [1], [0], [0], [0, 0, 1, 0], [], []>} : vector<8x8xf32>, vector<8x8xf32>, vector<8x8xf32> -> vector<8x8xf32>
    %72 = arith.addf %71, %15 : vector<8x8xf32>
    %cst_32 = arith.constant dense<0xFF800000> : vector<8xf32>
    %73 = vector.multi_reduction <maximumf>, %72, %cst_32 [1] : vector<8x8xf32> to vector<8xf32>
    %74 = vector.shape_cast %73 : vector<8xf32> to vector<8x1xf32>
    %75 = vector.broadcast %74 : vector<8x1xf32> to vector<8x8xf32>
    %76 = arith.subf %72, %75 : vector<8x8xf32>
    %77 = math.exp %76 : vector<8x8xf32>
    %cst_33 = arith.constant dense<0.000000e+00> : vector<8xf32>
    %78 = vector.multi_reduction <add>, %77, %cst_33 [1] : vector<8x8xf32> to vector<8xf32>
    %79 = vector.shape_cast %78 : vector<8xf32> to vector<8x1xf32>
    %80 = tpu.reciprocal %79 {approx = true} : vector<8x1xf32> -> vector<8x1xf32>
    %81 = vector.broadcast %80 : vector<8x1xf32> to vector<8x8xf32>
    %82 = arith.mulf %77, %81 : vector<8x8xf32>
    %83 = vector.extract_strided_slice %23 {offsets = [0, 16], sizes = [8, 8], strides = [1, 1]} : vector<8x32xf32> to vector<8x8xf32>
    %cst_34 = arith.constant dense<0.000000e+00> : vector<8x8xf32>
    %84 = tpu.matmul %82, %83, %cst_34 {dimension_numbers = #tpu.dot_dimension_numbers<[1], [0], [0], [1], [0, 0, 1, 1], [], []>} : vector<8x8xf32>, vector<8x8xf32>, vector<8x8xf32> -> vector<8x8xf32>
    %85 = vector.extract_strided_slice %25 {offsets = [16, 0], sizes = [8, 32], strides = [1, 1]} : vector<32x32xf32> to vector<8x32xf32>
    %cst_35 = arith.constant dense<0.000000e+00> : vector<8x32xf32>
    %86 = tpu.matmul %84, %85, %cst_35 {dimension_numbers = #tpu.dot_dimension_numbers<[1], [0], [0], [1], [0, 0, 1, 1], [], []>} : vector<8x8xf32>, vector<8x32xf32>, vector<8x32xf32> -> vector<8x32xf32>
    %87 = arith.addf %68, %86 : vector<8x32xf32>
    %88 = vector.extract_strided_slice %29 {offsets = [0, 24], sizes = [8, 8], strides = [1, 1]} : vector<8x32xf32> to vector<8x8xf32>
    %89 = vector.extract_strided_slice %22 {offsets = [0, 24], sizes = [8, 8], strides = [1, 1]} : vector<8x32xf32> to vector<8x8xf32>
    %cst_36 = arith.constant dense<0.000000e+00> : vector<8x8xf32>
    %90 = tpu.matmul %88, %89, %cst_36 {dimension_numbers = #tpu.dot_dimension_numbers<[1], [1], [0], [0], [0, 0, 1, 0], [], []>} : vector<8x8xf32>, vector<8x8xf32>, vector<8x8xf32> -> vector<8x8xf32>
    %91 = arith.addf %90, %15 : vector<8x8xf32>
    %cst_37 = arith.constant dense<0xFF800000> : vector<8xf32>
    %92 = vector.multi_reduction <maximumf>, %91, %cst_37 [1] : vector<8x8xf32> to vector<8xf32>
    %93 = vector.shape_cast %92 : vector<8xf32> to vector<8x1xf32>
    %94 = vector.broadcast %93 : vector<8x1xf32> to vector<8x8xf32>
    %95 = arith.subf %91, %94 : vector<8x8xf32>
    %96 = math.exp %95 : vector<8x8xf32>
    %cst_38 = arith.constant dense<0.000000e+00> : vector<8xf32>
    %97 = vector.multi_reduction <add>, %96, %cst_38 [1] : vector<8x8xf32> to vector<8xf32>
    %98 = vector.shape_cast %97 : vector<8xf32> to vector<8x1xf32>
    %99 = tpu.reciprocal %98 {approx = true} : vector<8x1xf32> -> vector<8x1xf32>
    %100 = vector.broadcast %99 : vector<8x1xf32> to vector<8x8xf32>
    %101 = arith.mulf %96, %100 : vector<8x8xf32>
    %102 = vector.extract_strided_slice %23 {offsets = [0, 24], sizes = [8, 8], strides = [1, 1]} : vector<8x32xf32> to vector<8x8xf32>
    %cst_39 = arith.constant dense<0.000000e+00> : vector<8x8xf32>
    %103 = tpu.matmul %101, %102, %cst_39 {dimension_numbers = #tpu.dot_dimension_numbers<[1], [0], [0], [1], [0, 0, 1, 1], [], []>} : vector<8x8xf32>, vector<8x8xf32>, vector<8x8xf32> -> vector<8x8xf32>
    %104 = vector.extract_strided_slice %25 {offsets = [24, 0], sizes = [8, 32], strides = [1, 1]} : vector<32x32xf32> to vector<8x32xf32>
    %cst_40 = arith.constant dense<0.000000e+00> : vector<8x32xf32>
    %105 = tpu.matmul %103, %104, %cst_40 {dimension_numbers = #tpu.dot_dimension_numbers<[1], [0], [0], [1], [0, 0, 1, 1], [], []>} : vector<8x8xf32>, vector<8x32xf32>, vector<8x32xf32> -> vector<8x32xf32>
    %106 = arith.addf %87, %105 : vector<8x32xf32>
    %107 = vector.broadcast %27 : vector<1x32xf32> to vector<8x32xf32>
    %108 = arith.addf %106, %107 : vector<8x32xf32>
    %109 = arith.addf %108, %1 : vector<8x32xf32>
    %cst_41 = arith.constant dense<0.000000e+00> : vector<8xf32>
    %110 = vector.multi_reduction <add>, %109, %cst_41 [1] : vector<8x32xf32> to vector<8xf32>
    %111 = vector.shape_cast %110 : vector<8xf32> to vector<8x1xf32>
    %cst_42 = arith.constant 3.200000e+01 : f32
    %112 = vector.broadcast %cst_42 : f32 to vector<8x1xf32>
    %113 = arith.divf %111, %112 : vector<8x1xf32>
    %114 = vector.broadcast %113 : vector<8x1xf32> to vector<8x32xf32>
    %115 = arith.subf %109, %114 : vector<8x32xf32>
    %116 = arith.mulf %115, %115 : vector<8x32xf32>
    %cst_43 = arith.constant dense<0.000000e+00> : vector<8xf32>
    %117 = vector.multi_reduction <add>, %116, %cst_43 [1] : vector<8x32xf32> to vector<8xf32>
    %118 = vector.shape_cast %117 : vector<8xf32> to vector<8x1xf32>
    %cst_44 = arith.constant 3.200000e+01 : f32
    %119 = vector.broadcast %cst_44 : f32 to vector<8x1xf32>
    %120 = arith.divf %118, %119 : vector<8x1xf32>
    %121 = vector.broadcast %113 : vector<8x1xf32> to vector<8x32xf32>
    %122 = arith.subf %109, %121 : vector<8x32xf32>
    %cst_45 = arith.constant 9.99999996E-13 : f32
    %123 = vector.broadcast %cst_45 : f32 to vector<8x1xf32>
    %124 = arith.addf %120, %123 : vector<8x1xf32>
    %125 = math.rsqrt %124 : vector<8x1xf32>
    %126 = vector.broadcast %125 : vector<8x1xf32> to vector<8x32xf32>
    %127 = arith.mulf %122, %126 : vector<8x32xf32>
    %c0_46 = arith.constant 0 : index
    %c0_47 = arith.constant 0 : index
    %c0_48 = arith.constant 0 : index
    %128 = vector.load %arg21[%c0_46, %c0_47, %c0_48] : memref<4x1x32xf32, #tpu.memory_space<vmem>>, vector<1x1x32xf32>
    %129 = vector.shape_cast %128 : vector<1x1x32xf32> to vector<1x32xf32>
    %130 = vector.broadcast %129 : vector<1x32xf32> to vector<8x32xf32>
    %131 = arith.mulf %127, %130 : vector<8x32xf32>
    %c0_49 = arith.constant 0 : index
    %c0_50 = arith.constant 0 : index
    %c0_51 = arith.constant 0 : index
    %132 = vector.load %arg22[%c0_49, %c0_50, %c0_51] : memref<4x1x32xf32, #tpu.memory_space<vmem>>, vector<1x1x32xf32>
    %133 = vector.shape_cast %132 : vector<1x1x32xf32> to vector<1x32xf32>
    %134 = vector.broadcast %133 : vector<1x32xf32> to vector<8x32xf32>
    %135 = arith.addf %131, %134 : vector<8x32xf32>
    %c0_52 = arith.constant 0 : index
    %c0_53 = arith.constant 0 : index
    %136 = vector.load %arg11[%c0_52, %c0_53] : memref<32x32xf32, #tpu.memory_space<vmem>>, vector<32x32xf32>
    %cst_54 = arith.constant dense<0.000000e+00> : vector<8x32xf32>
    %137 = tpu.matmul %135, %136, %cst_54 {dimension_numbers = #tpu.dot_dimension_numbers<[1], [0], [0], [1], [0, 0, 1, 1], [], []>} : vector<8x32xf32>, vector<32x32xf32>, vector<8x32xf32> -> vector<8x32xf32>
    %c0_55 = arith.constant 0 : index
    %c0_56 = arith.constant 0 : index
    %138 = vector.load %arg12[%c0_55, %c0_56] : memref<1x32xf32, #tpu.memory_space<vmem>>, vector<1x32xf32>
    %139 = vector.broadcast %138 : vector<1x32xf32> to vector<8x32xf32>
    %140 = arith.addf %137, %139 : vector<8x32xf32>
    %c0_57 = arith.constant 0 : index
    %c0_58 = arith.constant 0 : index
    %c0_59 = arith.constant 0 : index
    %141 = vector.load %arg2[%c0_57, %c0_58, %c0_59] : memref<1x10x32xf32, #tpu.memory_space<vmem>>, vector<1x10x32xf32>
    %142 = vector.shape_cast %141 : vector<1x10x32xf32> to vector<10x32xf32>
    %c0_60 = arith.constant 0 : index
    %c0_61 = arith.constant 0 : index
    %c0_62 = arith.constant 0 : index
    %143 = vector.load %arg13[%c0_60, %c0_61, %c0_62] : memref<2x32x32xf32, #tpu.memory_space<vmem>>, vector<1x32x32xf32>
    %144 = vector.shape_cast %143 : vector<1x32x32xf32> to vector<32x32xf32>
    %cst_63 = arith.constant dense<0.000000e+00> : vector<10x32xf32>
    %145 = tpu.matmul %142, %144, %cst_63 {dimension_numbers = #tpu.dot_dimension_numbers<[1], [0], [0], [1], [0, 0, 1, 1], [], []>} : vector<10x32xf32>, vector<32x32xf32>, vector<10x32xf32> -> vector<10x32xf32>
    %c0_64 = arith.constant 0 : index
    %c0_65 = arith.constant 0 : index
    %c0_66 = arith.constant 0 : index
    %146 = vector.load %arg14[%c0_64, %c0_65, %c0_66] : memref<2x1x32xf32, #tpu.memory_space<vmem>>, vector<1x1x32xf32>
    %147 = vector.shape_cast %146 : vector<1x1x32xf32> to vector<1x32xf32>
    %148 = vector.broadcast %147 : vector<1x32xf32> to vector<10x32xf32>
    %149 = arith.addf %145, %148 : vector<10x32xf32>
    %c0_67 = arith.constant 0 : index
    %c0_68 = arith.constant 0 : index
    %c0_69 = arith.constant 0 : index
    %150 = vector.load %arg3[%c0_67, %c0_68, %c0_69] : memref<1x10x32xf32, #tpu.memory_space<vmem>>, vector<1x10x32xf32>
    %151 = vector.shape_cast %150 : vector<1x10x32xf32> to vector<10x32xf32>
    %c1 = arith.constant 1 : index
    %c0_70 = arith.constant 0 : index
    %c0_71 = arith.constant 0 : index
    %152 = vector.load %arg13[%c1, %c0_70, %c0_71] : memref<2x32x32xf32, #tpu.memory_space<vmem>>, vector<1x32x32xf32>
    %153 = vector.shape_cast %152 : vector<1x32x32xf32> to vector<32x32xf32>
    %cst_72 = arith.constant dense<0.000000e+00> : vector<10x32xf32>
    %154 = tpu.matmul %151, %153, %cst_72 {dimension_numbers = #tpu.dot_dimension_numbers<[1], [0], [0], [1], [0, 0, 1, 1], [], []>} : vector<10x32xf32>, vector<32x32xf32>, vector<10x32xf32> -> vector<10x32xf32>
    %c1_73 = arith.constant 1 : index
    %c0_74 = arith.constant 0 : index
    %c0_75 = arith.constant 0 : index
    %155 = vector.load %arg14[%c1_73, %c0_74, %c0_75] : memref<2x1x32xf32, #tpu.memory_space<vmem>>, vector<1x1x32xf32>
    %156 = vector.shape_cast %155 : vector<1x1x32xf32> to vector<1x32xf32>
    %157 = vector.broadcast %156 : vector<1x32xf32> to vector<10x32xf32>
    %158 = arith.addf %154, %157 : vector<10x32xf32>
    %c0_76 = arith.constant 0 : index
    %c0_77 = arith.constant 0 : index
    %c0_78 = arith.constant 0 : index
    %159 = vector.load %arg7[%c0_76, %c0_77, %c0_78] : memref<1x1x10xf32, #tpu.memory_space<vmem>>, vector<1x1x10xf32>
    %160 = vector.shape_cast %159 : vector<1x1x10xf32> to vector<1x10xf32>
    %cst_79 = arith.constant 1.000000e+00 : f32
    %161 = vector.broadcast %cst_79 : f32 to vector<1x10xf32>
    %162 = arith.subf %161, %160 : vector<1x10xf32>
    %cst_80 = arith.constant -1.000000e+09 : f32
    %163 = vector.broadcast %cst_80 : f32 to vector<1x10xf32>
    %164 = arith.mulf %162, %163 : vector<1x10xf32>
    %c1_81 = arith.constant 1 : index
    %c0_82 = arith.constant 0 : index
    %c0_83 = arith.constant 0 : index
    %165 = vector.load %arg19[%c1_81, %c0_82, %c0_83] : memref<3x32x32xf32, #tpu.memory_space<vmem>>, vector<1x32x32xf32>
    %166 = vector.shape_cast %165 : vector<1x32x32xf32> to vector<32x32xf32>
    %c1_84 = arith.constant 1 : index
    %c0_85 = arith.constant 0 : index
    %c0_86 = arith.constant 0 : index
    %167 = vector.load %arg20[%c1_84, %c0_85, %c0_86] : memref<3x1x32xf32, #tpu.memory_space<vmem>>, vector<1x1x32xf32>
    %168 = vector.shape_cast %167 : vector<1x1x32xf32> to vector<1x32xf32>
    %cst_87 = arith.constant 0.353553385 : f32
    %169 = vector.broadcast %cst_87 : f32 to vector<8x32xf32>
    %170 = arith.mulf %140, %169 : vector<8x32xf32>
    %cst_88 = arith.constant 0.000000e+00 : f32
    %171 = vector.broadcast %cst_88 : f32 to vector<8x32xf32>
    %172 = vector.extract_strided_slice %170 {offsets = [0, 0], sizes = [8, 8], strides = [1, 1]} : vector<8x32xf32> to vector<8x8xf32>
    %173 = vector.extract_strided_slice %149 {offsets = [0, 0], sizes = [10, 8], strides = [1, 1]} : vector<10x32xf32> to vector<10x8xf32>
    %cst_89 = arith.constant dense<0.000000e+00> : vector<8x10xf32>
    %174 = tpu.matmul %172, %173, %cst_89 {dimension_numbers = #tpu.dot_dimension_numbers<[1], [1], [0], [0], [0, 0, 1, 0], [], []>} : vector<8x8xf32>, vector<10x8xf32>, vector<8x10xf32> -> vector<8x10xf32>
    %175 = vector.broadcast %164 : vector<1x10xf32> to vector<8x10xf32>
    %176 = arith.addf %174, %175 : vector<8x10xf32>
    %cst_90 = arith.constant dense<0xFF800000> : vector<8xf32>
    %177 = vector.multi_reduction <maximumf>, %176, %cst_90 [1] : vector<8x10xf32> to vector<8xf32>
    %178 = vector.shape_cast %177 : vector<8xf32> to vector<8x1xf32>
    %179 = vector.broadcast %178 : vector<8x1xf32> to vector<8x10xf32>
    %180 = arith.subf %176, %179 : vector<8x10xf32>
    %181 = math.exp %180 : vector<8x10xf32>
    %cst_91 = arith.constant dense<0.000000e+00> : vector<8xf32>
    %182 = vector.multi_reduction <add>, %181, %cst_91 [1] : vector<8x10xf32> to vector<8xf32>
    %183 = vector.shape_cast %182 : vector<8xf32> to vector<8x1xf32>
    %184 = tpu.reciprocal %183 {approx = true} : vector<8x1xf32> -> vector<8x1xf32>
    %185 = vector.broadcast %184 : vector<8x1xf32> to vector<8x10xf32>
    %186 = arith.mulf %181, %185 : vector<8x10xf32>
    %187 = vector.extract_strided_slice %158 {offsets = [0, 0], sizes = [10, 8], strides = [1, 1]} : vector<10x32xf32> to vector<10x8xf32>
    %cst_92 = arith.constant dense<0.000000e+00> : vector<8x8xf32>
    %188 = tpu.matmul %186, %187, %cst_92 {dimension_numbers = #tpu.dot_dimension_numbers<[1], [0], [0], [1], [0, 0, 1, 1], [], []>} : vector<8x10xf32>, vector<10x8xf32>, vector<8x8xf32> -> vector<8x8xf32>
    %189 = vector.extract_strided_slice %166 {offsets = [0, 0], sizes = [8, 32], strides = [1, 1]} : vector<32x32xf32> to vector<8x32xf32>
    %cst_93 = arith.constant dense<0.000000e+00> : vector<8x32xf32>
    %190 = tpu.matmul %188, %189, %cst_93 {dimension_numbers = #tpu.dot_dimension_numbers<[1], [0], [0], [1], [0, 0, 1, 1], [], []>} : vector<8x8xf32>, vector<8x32xf32>, vector<8x32xf32> -> vector<8x32xf32>
    %191 = arith.addf %171, %190 : vector<8x32xf32>
    %192 = vector.extract_strided_slice %170 {offsets = [0, 8], sizes = [8, 8], strides = [1, 1]} : vector<8x32xf32> to vector<8x8xf32>
    %193 = vector.extract_strided_slice %149 {offsets = [0, 8], sizes = [10, 8], strides = [1, 1]} : vector<10x32xf32> to vector<10x8xf32>
    %cst_94 = arith.constant dense<0.000000e+00> : vector<8x10xf32>
    %194 = tpu.matmul %192, %193, %cst_94 {dimension_numbers = #tpu.dot_dimension_numbers<[1], [1], [0], [0], [0, 0, 1, 0], [], []>} : vector<8x8xf32>, vector<10x8xf32>, vector<8x10xf32> -> vector<8x10xf32>
    %195 = vector.broadcast %164 : vector<1x10xf32> to vector<8x10xf32>
    %196 = arith.addf %194, %195 : vector<8x10xf32>
    %cst_95 = arith.constant dense<0xFF800000> : vector<8xf32>
    %197 = vector.multi_reduction <maximumf>, %196, %cst_95 [1] : vector<8x10xf32> to vector<8xf32>
    %198 = vector.shape_cast %197 : vector<8xf32> to vector<8x1xf32>
    %199 = vector.broadcast %198 : vector<8x1xf32> to vector<8x10xf32>
    %200 = arith.subf %196, %199 : vector<8x10xf32>
    %201 = math.exp %200 : vector<8x10xf32>
    %cst_96 = arith.constant dense<0.000000e+00> : vector<8xf32>
    %202 = vector.multi_reduction <add>, %201, %cst_96 [1] : vector<8x10xf32> to vector<8xf32>
    %203 = vector.shape_cast %202 : vector<8xf32> to vector<8x1xf32>
    %204 = tpu.reciprocal %203 {approx = true} : vector<8x1xf32> -> vector<8x1xf32>
    %205 = vector.broadcast %204 : vector<8x1xf32> to vector<8x10xf32>
    %206 = arith.mulf %201, %205 : vector<8x10xf32>
    %207 = vector.extract_strided_slice %158 {offsets = [0, 8], sizes = [10, 8], strides = [1, 1]} : vector<10x32xf32> to vector<10x8xf32>
    %cst_97 = arith.constant dense<0.000000e+00> : vector<8x8xf32>
    %208 = tpu.matmul %206, %207, %cst_97 {dimension_numbers = #tpu.dot_dimension_numbers<[1], [0], [0], [1], [0, 0, 1, 1], [], []>} : vector<8x10xf32>, vector<10x8xf32>, vector<8x8xf32> -> vector<8x8xf32>
    %209 = vector.extract_strided_slice %166 {offsets = [8, 0], sizes = [8, 32], strides = [1, 1]} : vector<32x32xf32> to vector<8x32xf32>
    %cst_98 = arith.constant dense<0.000000e+00> : vector<8x32xf32>
    %210 = tpu.matmul %208, %209, %cst_98 {dimension_numbers = #tpu.dot_dimension_numbers<[1], [0], [0], [1], [0, 0, 1, 1], [], []>} : vector<8x8xf32>, vector<8x32xf32>, vector<8x32xf32> -> vector<8x32xf32>
    %211 = arith.addf %191, %210 : vector<8x32xf32>
    %212 = vector.extract_strided_slice %170 {offsets = [0, 16], sizes = [8, 8], strides = [1, 1]} : vector<8x32xf32> to vector<8x8xf32>
    %213 = vector.extract_strided_slice %149 {offsets = [0, 16], sizes = [10, 8], strides = [1, 1]} : vector<10x32xf32> to vector<10x8xf32>
    %cst_99 = arith.constant dense<0.000000e+00> : vector<8x10xf32>
    %214 = tpu.matmul %212, %213, %cst_99 {dimension_numbers = #tpu.dot_dimension_numbers<[1], [1], [0], [0], [0, 0, 1, 0], [], []>} : vector<8x8xf32>, vector<10x8xf32>, vector<8x10xf32> -> vector<8x10xf32>
    %215 = vector.broadcast %164 : vector<1x10xf32> to vector<8x10xf32>
    %216 = arith.addf %214, %215 : vector<8x10xf32>
    %cst_100 = arith.constant dense<0xFF800000> : vector<8xf32>
    %217 = vector.multi_reduction <maximumf>, %216, %cst_100 [1] : vector<8x10xf32> to vector<8xf32>
    %218 = vector.shape_cast %217 : vector<8xf32> to vector<8x1xf32>
    %219 = vector.broadcast %218 : vector<8x1xf32> to vector<8x10xf32>
    %220 = arith.subf %216, %219 : vector<8x10xf32>
    %221 = math.exp %220 : vector<8x10xf32>
    %cst_101 = arith.constant dense<0.000000e+00> : vector<8xf32>
    %222 = vector.multi_reduction <add>, %221, %cst_101 [1] : vector<8x10xf32> to vector<8xf32>
    %223 = vector.shape_cast %222 : vector<8xf32> to vector<8x1xf32>
    %224 = tpu.reciprocal %223 {approx = true} : vector<8x1xf32> -> vector<8x1xf32>
    %225 = vector.broadcast %224 : vector<8x1xf32> to vector<8x10xf32>
    %226 = arith.mulf %221, %225 : vector<8x10xf32>
    %227 = vector.extract_strided_slice %158 {offsets = [0, 16], sizes = [10, 8], strides = [1, 1]} : vector<10x32xf32> to vector<10x8xf32>
    %cst_102 = arith.constant dense<0.000000e+00> : vector<8x8xf32>
    %228 = tpu.matmul %226, %227, %cst_102 {dimension_numbers = #tpu.dot_dimension_numbers<[1], [0], [0], [1], [0, 0, 1, 1], [], []>} : vector<8x10xf32>, vector<10x8xf32>, vector<8x8xf32> -> vector<8x8xf32>
    %229 = vector.extract_strided_slice %166 {offsets = [16, 0], sizes = [8, 32], strides = [1, 1]} : vector<32x32xf32> to vector<8x32xf32>
    %cst_103 = arith.constant dense<0.000000e+00> : vector<8x32xf32>
    %230 = tpu.matmul %228, %229, %cst_103 {dimension_numbers = #tpu.dot_dimension_numbers<[1], [0], [0], [1], [0, 0, 1, 1], [], []>} : vector<8x8xf32>, vector<8x32xf32>, vector<8x32xf32> -> vector<8x32xf32>
    %231 = arith.addf %211, %230 : vector<8x32xf32>
    %232 = vector.extract_strided_slice %170 {offsets = [0, 24], sizes = [8, 8], strides = [1, 1]} : vector<8x32xf32> to vector<8x8xf32>
    %233 = vector.extract_strided_slice %149 {offsets = [0, 24], sizes = [10, 8], strides = [1, 1]} : vector<10x32xf32> to vector<10x8xf32>
    %cst_104 = arith.constant dense<0.000000e+00> : vector<8x10xf32>
    %234 = tpu.matmul %232, %233, %cst_104 {dimension_numbers = #tpu.dot_dimension_numbers<[1], [1], [0], [0], [0, 0, 1, 0], [], []>} : vector<8x8xf32>, vector<10x8xf32>, vector<8x10xf32> -> vector<8x10xf32>
    %235 = vector.broadcast %164 : vector<1x10xf32> to vector<8x10xf32>
    %236 = arith.addf %234, %235 : vector<8x10xf32>
    %cst_105 = arith.constant dense<0xFF800000> : vector<8xf32>
    %237 = vector.multi_reduction <maximumf>, %236, %cst_105 [1] : vector<8x10xf32> to vector<8xf32>
    %238 = vector.shape_cast %237 : vector<8xf32> to vector<8x1xf32>
    %239 = vector.broadcast %238 : vector<8x1xf32> to vector<8x10xf32>
    %240 = arith.subf %236, %239 : vector<8x10xf32>
    %241 = math.exp %240 : vector<8x10xf32>
    %cst_106 = arith.constant dense<0.000000e+00> : vector<8xf32>
    %242 = vector.multi_reduction <add>, %241, %cst_106 [1] : vector<8x10xf32> to vector<8xf32>
    %243 = vector.shape_cast %242 : vector<8xf32> to vector<8x1xf32>
    %244 = tpu.reciprocal %243 {approx = true} : vector<8x1xf32> -> vector<8x1xf32>
    %245 = vector.broadcast %244 : vector<8x1xf32> to vector<8x10xf32>
    %246 = arith.mulf %241, %245 : vector<8x10xf32>
    %247 = vector.extract_strided_slice %158 {offsets = [0, 24], sizes = [10, 8], strides = [1, 1]} : vector<10x32xf32> to vector<10x8xf32>
    %cst_107 = arith.constant dense<0.000000e+00> : vector<8x8xf32>
    %248 = tpu.matmul %246, %247, %cst_107 {dimension_numbers = #tpu.dot_dimension_numbers<[1], [0], [0], [1], [0, 0, 1, 1], [], []>} : vector<8x10xf32>, vector<10x8xf32>, vector<8x8xf32> -> vector<8x8xf32>
    %249 = vector.extract_strided_slice %166 {offsets = [24, 0], sizes = [8, 32], strides = [1, 1]} : vector<32x32xf32> to vector<8x32xf32>
    %cst_108 = arith.constant dense<0.000000e+00> : vector<8x32xf32>
    %250 = tpu.matmul %248, %249, %cst_108 {dimension_numbers = #tpu.dot_dimension_numbers<[1], [0], [0], [1], [0, 0, 1, 1], [], []>} : vector<8x8xf32>, vector<8x32xf32>, vector<8x32xf32> -> vector<8x32xf32>
    %251 = arith.addf %231, %250 : vector<8x32xf32>
    %252 = vector.broadcast %168 : vector<1x32xf32> to vector<8x32xf32>
    %253 = arith.addf %251, %252 : vector<8x32xf32>
    %254 = arith.addf %253, %135 : vector<8x32xf32>
    %cst_109 = arith.constant dense<0.000000e+00> : vector<8xf32>
    %255 = vector.multi_reduction <add>, %254, %cst_109 [1] : vector<8x32xf32> to vector<8xf32>
    %256 = vector.shape_cast %255 : vector<8xf32> to vector<8x1xf32>
    %cst_110 = arith.constant 3.200000e+01 : f32
    %257 = vector.broadcast %cst_110 : f32 to vector<8x1xf32>
    %258 = arith.divf %256, %257 : vector<8x1xf32>
    %259 = vector.broadcast %258 : vector<8x1xf32> to vector<8x32xf32>
    %260 = arith.subf %254, %259 : vector<8x32xf32>
    %261 = arith.mulf %260, %260 : vector<8x32xf32>
    %cst_111 = arith.constant dense<0.000000e+00> : vector<8xf32>
    %262 = vector.multi_reduction <add>, %261, %cst_111 [1] : vector<8x32xf32> to vector<8xf32>
    %263 = vector.shape_cast %262 : vector<8xf32> to vector<8x1xf32>
    %cst_112 = arith.constant 3.200000e+01 : f32
    %264 = vector.broadcast %cst_112 : f32 to vector<8x1xf32>
    %265 = arith.divf %263, %264 : vector<8x1xf32>
    %266 = vector.broadcast %258 : vector<8x1xf32> to vector<8x32xf32>
    %267 = arith.subf %254, %266 : vector<8x32xf32>
    %cst_113 = arith.constant 9.99999996E-13 : f32
    %268 = vector.broadcast %cst_113 : f32 to vector<8x1xf32>
    %269 = arith.addf %265, %268 : vector<8x1xf32>
    %270 = math.rsqrt %269 : vector<8x1xf32>
    %271 = vector.broadcast %270 : vector<8x1xf32> to vector<8x32xf32>
    %272 = arith.mulf %267, %271 : vector<8x32xf32>
    %c1_114 = arith.constant 1 : index
    %c0_115 = arith.constant 0 : index
    %c0_116 = arith.constant 0 : index
    %273 = vector.load %arg21[%c1_114, %c0_115, %c0_116] : memref<4x1x32xf32, #tpu.memory_space<vmem>>, vector<1x1x32xf32>
    %274 = vector.shape_cast %273 : vector<1x1x32xf32> to vector<1x32xf32>
    %275 = vector.broadcast %274 : vector<1x32xf32> to vector<8x32xf32>
    %276 = arith.mulf %272, %275 : vector<8x32xf32>
    %c1_117 = arith.constant 1 : index
    %c0_118 = arith.constant 0 : index
    %c0_119 = arith.constant 0 : index
    %277 = vector.load %arg22[%c1_117, %c0_118, %c0_119] : memref<4x1x32xf32, #tpu.memory_space<vmem>>, vector<1x1x32xf32>
    %278 = vector.shape_cast %277 : vector<1x1x32xf32> to vector<1x32xf32>
    %279 = vector.broadcast %278 : vector<1x32xf32> to vector<8x32xf32>
    %280 = arith.addf %276, %279 : vector<8x32xf32>
    %c0_120 = arith.constant 0 : index
    %c0_121 = arith.constant 0 : index
    %281 = vector.load %arg15[%c0_120, %c0_121] : memref<32x32xf32, #tpu.memory_space<vmem>>, vector<32x32xf32>
    %cst_122 = arith.constant dense<0.000000e+00> : vector<8x32xf32>
    %282 = tpu.matmul %280, %281, %cst_122 {dimension_numbers = #tpu.dot_dimension_numbers<[1], [0], [0], [1], [0, 0, 1, 1], [], []>} : vector<8x32xf32>, vector<32x32xf32>, vector<8x32xf32> -> vector<8x32xf32>
    %c0_123 = arith.constant 0 : index
    %c0_124 = arith.constant 0 : index
    %283 = vector.load %arg16[%c0_123, %c0_124] : memref<1x32xf32, #tpu.memory_space<vmem>>, vector<1x32xf32>
    %284 = vector.broadcast %283 : vector<1x32xf32> to vector<8x32xf32>
    %285 = arith.addf %282, %284 : vector<8x32xf32>
    %c0_125 = arith.constant 0 : index
    %c0_126 = arith.constant 0 : index
    %c0_127 = arith.constant 0 : index
    %286 = vector.load %arg4[%c0_125, %c0_126, %c0_127] : memref<1x12x32xf32, #tpu.memory_space<vmem>>, vector<1x12x32xf32>
    %287 = vector.shape_cast %286 : vector<1x12x32xf32> to vector<12x32xf32>
    %c0_128 = arith.constant 0 : index
    %c0_129 = arith.constant 0 : index
    %c0_130 = arith.constant 0 : index
    %288 = vector.load %arg17[%c0_128, %c0_129, %c0_130] : memref<2x32x32xf32, #tpu.memory_space<vmem>>, vector<1x32x32xf32>
    %289 = vector.shape_cast %288 : vector<1x32x32xf32> to vector<32x32xf32>
    %cst_131 = arith.constant dense<0.000000e+00> : vector<12x32xf32>
    %290 = tpu.matmul %287, %289, %cst_131 {dimension_numbers = #tpu.dot_dimension_numbers<[1], [0], [0], [1], [0, 0, 1, 1], [], []>} : vector<12x32xf32>, vector<32x32xf32>, vector<12x32xf32> -> vector<12x32xf32>
    %c0_132 = arith.constant 0 : index
    %c0_133 = arith.constant 0 : index
    %c0_134 = arith.constant 0 : index
    %291 = vector.load %arg18[%c0_132, %c0_133, %c0_134] : memref<2x1x32xf32, #tpu.memory_space<vmem>>, vector<1x1x32xf32>
    %292 = vector.shape_cast %291 : vector<1x1x32xf32> to vector<1x32xf32>
    %293 = vector.broadcast %292 : vector<1x32xf32> to vector<12x32xf32>
    %294 = arith.addf %290, %293 : vector<12x32xf32>
    %c0_135 = arith.constant 0 : index
    %c0_136 = arith.constant 0 : index
    %c0_137 = arith.constant 0 : index
    %295 = vector.load %arg5[%c0_135, %c0_136, %c0_137] : memref<1x12x32xf32, #tpu.memory_space<vmem>>, vector<1x12x32xf32>
    %296 = vector.shape_cast %295 : vector<1x12x32xf32> to vector<12x32xf32>
    %c1_138 = arith.constant 1 : index
    %c0_139 = arith.constant 0 : index
    %c0_140 = arith.constant 0 : index
    %297 = vector.load %arg17[%c1_138, %c0_139, %c0_140] : memref<2x32x32xf32, #tpu.memory_space<vmem>>, vector<1x32x32xf32>
    %298 = vector.shape_cast %297 : vector<1x32x32xf32> to vector<32x32xf32>
    %cst_141 = arith.constant dense<0.000000e+00> : vector<12x32xf32>
    %299 = tpu.matmul %296, %298, %cst_141 {dimension_numbers = #tpu.dot_dimension_numbers<[1], [0], [0], [1], [0, 0, 1, 1], [], []>} : vector<12x32xf32>, vector<32x32xf32>, vector<12x32xf32> -> vector<12x32xf32>
    %c1_142 = arith.constant 1 : index
    %c0_143 = arith.constant 0 : index
    %c0_144 = arith.constant 0 : index
    %300 = vector.load %arg18[%c1_142, %c0_143, %c0_144] : memref<2x1x32xf32, #tpu.memory_space<vmem>>, vector<1x1x32xf32>
    %301 = vector.shape_cast %300 : vector<1x1x32xf32> to vector<1x32xf32>
    %302 = vector.broadcast %301 : vector<1x32xf32> to vector<12x32xf32>
    %303 = arith.addf %299, %302 : vector<12x32xf32>
    %c0_145 = arith.constant 0 : index
    %c0_146 = arith.constant 0 : index
    %c0_147 = arith.constant 0 : index
    %304 = vector.load %arg8[%c0_145, %c0_146, %c0_147] : memref<1x1x12xf32, #tpu.memory_space<vmem>>, vector<1x1x12xf32>
    %305 = vector.shape_cast %304 : vector<1x1x12xf32> to vector<1x12xf32>
    %cst_148 = arith.constant 1.000000e+00 : f32
    %306 = vector.broadcast %cst_148 : f32 to vector<1x12xf32>
    %307 = arith.subf %306, %305 : vector<1x12xf32>
    %cst_149 = arith.constant -1.000000e+09 : f32
    %308 = vector.broadcast %cst_149 : f32 to vector<1x12xf32>
    %309 = arith.mulf %307, %308 : vector<1x12xf32>
    %c2 = arith.constant 2 : index
    %c0_150 = arith.constant 0 : index
    %c0_151 = arith.constant 0 : index
    %310 = vector.load %arg19[%c2, %c0_150, %c0_151] : memref<3x32x32xf32, #tpu.memory_space<vmem>>, vector<1x32x32xf32>
    %311 = vector.shape_cast %310 : vector<1x32x32xf32> to vector<32x32xf32>
    %c2_152 = arith.constant 2 : index
    %c0_153 = arith.constant 0 : index
    %c0_154 = arith.constant 0 : index
    %312 = vector.load %arg20[%c2_152, %c0_153, %c0_154] : memref<3x1x32xf32, #tpu.memory_space<vmem>>, vector<1x1x32xf32>
    %313 = vector.shape_cast %312 : vector<1x1x32xf32> to vector<1x32xf32>
    %cst_155 = arith.constant 0.353553385 : f32
    %314 = vector.broadcast %cst_155 : f32 to vector<8x32xf32>
    %315 = arith.mulf %285, %314 : vector<8x32xf32>
    %cst_156 = arith.constant 0.000000e+00 : f32
    %316 = vector.broadcast %cst_156 : f32 to vector<8x32xf32>
    %317 = vector.extract_strided_slice %315 {offsets = [0, 0], sizes = [8, 8], strides = [1, 1]} : vector<8x32xf32> to vector<8x8xf32>
    %318 = vector.extract_strided_slice %294 {offsets = [0, 0], sizes = [12, 8], strides = [1, 1]} : vector<12x32xf32> to vector<12x8xf32>
    %cst_157 = arith.constant dense<0.000000e+00> : vector<8x12xf32>
    %319 = tpu.matmul %317, %318, %cst_157 {dimension_numbers = #tpu.dot_dimension_numbers<[1], [1], [0], [0], [0, 0, 1, 0], [], []>} : vector<8x8xf32>, vector<12x8xf32>, vector<8x12xf32> -> vector<8x12xf32>
    %320 = vector.broadcast %309 : vector<1x12xf32> to vector<8x12xf32>
    %321 = arith.addf %319, %320 : vector<8x12xf32>
    %cst_158 = arith.constant dense<0xFF800000> : vector<8xf32>
    %322 = vector.multi_reduction <maximumf>, %321, %cst_158 [1] : vector<8x12xf32> to vector<8xf32>
    %323 = vector.shape_cast %322 : vector<8xf32> to vector<8x1xf32>
    %324 = vector.broadcast %323 : vector<8x1xf32> to vector<8x12xf32>
    %325 = arith.subf %321, %324 : vector<8x12xf32>
    %326 = math.exp %325 : vector<8x12xf32>
    %cst_159 = arith.constant dense<0.000000e+00> : vector<8xf32>
    %327 = vector.multi_reduction <add>, %326, %cst_159 [1] : vector<8x12xf32> to vector<8xf32>
    %328 = vector.shape_cast %327 : vector<8xf32> to vector<8x1xf32>
    %329 = tpu.reciprocal %328 {approx = true} : vector<8x1xf32> -> vector<8x1xf32>
    %330 = vector.broadcast %329 : vector<8x1xf32> to vector<8x12xf32>
    %331 = arith.mulf %326, %330 : vector<8x12xf32>
    %332 = vector.extract_strided_slice %303 {offsets = [0, 0], sizes = [12, 8], strides = [1, 1]} : vector<12x32xf32> to vector<12x8xf32>
    %cst_160 = arith.constant dense<0.000000e+00> : vector<8x8xf32>
    %333 = tpu.matmul %331, %332, %cst_160 {dimension_numbers = #tpu.dot_dimension_numbers<[1], [0], [0], [1], [0, 0, 1, 1], [], []>} : vector<8x12xf32>, vector<12x8xf32>, vector<8x8xf32> -> vector<8x8xf32>
    %334 = vector.extract_strided_slice %311 {offsets = [0, 0], sizes = [8, 32], strides = [1, 1]} : vector<32x32xf32> to vector<8x32xf32>
    %cst_161 = arith.constant dense<0.000000e+00> : vector<8x32xf32>
    %335 = tpu.matmul %333, %334, %cst_161 {dimension_numbers = #tpu.dot_dimension_numbers<[1], [0], [0], [1], [0, 0, 1, 1], [], []>} : vector<8x8xf32>, vector<8x32xf32>, vector<8x32xf32> -> vector<8x32xf32>
    %336 = arith.addf %316, %335 : vector<8x32xf32>
    %337 = vector.extract_strided_slice %315 {offsets = [0, 8], sizes = [8, 8], strides = [1, 1]} : vector<8x32xf32> to vector<8x8xf32>
    %338 = vector.extract_strided_slice %294 {offsets = [0, 8], sizes = [12, 8], strides = [1, 1]} : vector<12x32xf32> to vector<12x8xf32>
    %cst_162 = arith.constant dense<0.000000e+00> : vector<8x12xf32>
    %339 = tpu.matmul %337, %338, %cst_162 {dimension_numbers = #tpu.dot_dimension_numbers<[1], [1], [0], [0], [0, 0, 1, 0], [], []>} : vector<8x8xf32>, vector<12x8xf32>, vector<8x12xf32> -> vector<8x12xf32>
    %340 = vector.broadcast %309 : vector<1x12xf32> to vector<8x12xf32>
    %341 = arith.addf %339, %340 : vector<8x12xf32>
    %cst_163 = arith.constant dense<0xFF800000> : vector<8xf32>
    %342 = vector.multi_reduction <maximumf>, %341, %cst_163 [1] : vector<8x12xf32> to vector<8xf32>
    %343 = vector.shape_cast %342 : vector<8xf32> to vector<8x1xf32>
    %344 = vector.broadcast %343 : vector<8x1xf32> to vector<8x12xf32>
    %345 = arith.subf %341, %344 : vector<8x12xf32>
    %346 = math.exp %345 : vector<8x12xf32>
    %cst_164 = arith.constant dense<0.000000e+00> : vector<8xf32>
    %347 = vector.multi_reduction <add>, %346, %cst_164 [1] : vector<8x12xf32> to vector<8xf32>
    %348 = vector.shape_cast %347 : vector<8xf32> to vector<8x1xf32>
    %349 = tpu.reciprocal %348 {approx = true} : vector<8x1xf32> -> vector<8x1xf32>
    %350 = vector.broadcast %349 : vector<8x1xf32> to vector<8x12xf32>
    %351 = arith.mulf %346, %350 : vector<8x12xf32>
    %352 = vector.extract_strided_slice %303 {offsets = [0, 8], sizes = [12, 8], strides = [1, 1]} : vector<12x32xf32> to vector<12x8xf32>
    %cst_165 = arith.constant dense<0.000000e+00> : vector<8x8xf32>
    %353 = tpu.matmul %351, %352, %cst_165 {dimension_numbers = #tpu.dot_dimension_numbers<[1], [0], [0], [1], [0, 0, 1, 1], [], []>} : vector<8x12xf32>, vector<12x8xf32>, vector<8x8xf32> -> vector<8x8xf32>
    %354 = vector.extract_strided_slice %311 {offsets = [8, 0], sizes = [8, 32], strides = [1, 1]} : vector<32x32xf32> to vector<8x32xf32>
    %cst_166 = arith.constant dense<0.000000e+00> : vector<8x32xf32>
    %355 = tpu.matmul %353, %354, %cst_166 {dimension_numbers = #tpu.dot_dimension_numbers<[1], [0], [0], [1], [0, 0, 1, 1], [], []>} : vector<8x8xf32>, vector<8x32xf32>, vector<8x32xf32> -> vector<8x32xf32>
    %356 = arith.addf %336, %355 : vector<8x32xf32>
    %357 = vector.extract_strided_slice %315 {offsets = [0, 16], sizes = [8, 8], strides = [1, 1]} : vector<8x32xf32> to vector<8x8xf32>
    %358 = vector.extract_strided_slice %294 {offsets = [0, 16], sizes = [12, 8], strides = [1, 1]} : vector<12x32xf32> to vector<12x8xf32>
    %cst_167 = arith.constant dense<0.000000e+00> : vector<8x12xf32>
    %359 = tpu.matmul %357, %358, %cst_167 {dimension_numbers = #tpu.dot_dimension_numbers<[1], [1], [0], [0], [0, 0, 1, 0], [], []>} : vector<8x8xf32>, vector<12x8xf32>, vector<8x12xf32> -> vector<8x12xf32>
    %360 = vector.broadcast %309 : vector<1x12xf32> to vector<8x12xf32>
    %361 = arith.addf %359, %360 : vector<8x12xf32>
    %cst_168 = arith.constant dense<0xFF800000> : vector<8xf32>
    %362 = vector.multi_reduction <maximumf>, %361, %cst_168 [1] : vector<8x12xf32> to vector<8xf32>
    %363 = vector.shape_cast %362 : vector<8xf32> to vector<8x1xf32>
    %364 = vector.broadcast %363 : vector<8x1xf32> to vector<8x12xf32>
    %365 = arith.subf %361, %364 : vector<8x12xf32>
    %366 = math.exp %365 : vector<8x12xf32>
    %cst_169 = arith.constant dense<0.000000e+00> : vector<8xf32>
    %367 = vector.multi_reduction <add>, %366, %cst_169 [1] : vector<8x12xf32> to vector<8xf32>
    %368 = vector.shape_cast %367 : vector<8xf32> to vector<8x1xf32>
    %369 = tpu.reciprocal %368 {approx = true} : vector<8x1xf32> -> vector<8x1xf32>
    %370 = vector.broadcast %369 : vector<8x1xf32> to vector<8x12xf32>
    %371 = arith.mulf %366, %370 : vector<8x12xf32>
    %372 = vector.extract_strided_slice %303 {offsets = [0, 16], sizes = [12, 8], strides = [1, 1]} : vector<12x32xf32> to vector<12x8xf32>
    %cst_170 = arith.constant dense<0.000000e+00> : vector<8x8xf32>
    %373 = tpu.matmul %371, %372, %cst_170 {dimension_numbers = #tpu.dot_dimension_numbers<[1], [0], [0], [1], [0, 0, 1, 1], [], []>} : vector<8x12xf32>, vector<12x8xf32>, vector<8x8xf32> -> vector<8x8xf32>
    %374 = vector.extract_strided_slice %311 {offsets = [16, 0], sizes = [8, 32], strides = [1, 1]} : vector<32x32xf32> to vector<8x32xf32>
    %cst_171 = arith.constant dense<0.000000e+00> : vector<8x32xf32>
    %375 = tpu.matmul %373, %374, %cst_171 {dimension_numbers = #tpu.dot_dimension_numbers<[1], [0], [0], [1], [0, 0, 1, 1], [], []>} : vector<8x8xf32>, vector<8x32xf32>, vector<8x32xf32> -> vector<8x32xf32>
    %376 = arith.addf %356, %375 : vector<8x32xf32>
    %377 = vector.extract_strided_slice %315 {offsets = [0, 24], sizes = [8, 8], strides = [1, 1]} : vector<8x32xf32> to vector<8x8xf32>
    %378 = vector.extract_strided_slice %294 {offsets = [0, 24], sizes = [12, 8], strides = [1, 1]} : vector<12x32xf32> to vector<12x8xf32>
    %cst_172 = arith.constant dense<0.000000e+00> : vector<8x12xf32>
    %379 = tpu.matmul %377, %378, %cst_172 {dimension_numbers = #tpu.dot_dimension_numbers<[1], [1], [0], [0], [0, 0, 1, 0], [], []>} : vector<8x8xf32>, vector<12x8xf32>, vector<8x12xf32> -> vector<8x12xf32>
    %380 = vector.broadcast %309 : vector<1x12xf32> to vector<8x12xf32>
    %381 = arith.addf %379, %380 : vector<8x12xf32>
    %cst_173 = arith.constant dense<0xFF800000> : vector<8xf32>
    %382 = vector.multi_reduction <maximumf>, %381, %cst_173 [1] : vector<8x12xf32> to vector<8xf32>
    %383 = vector.shape_cast %382 : vector<8xf32> to vector<8x1xf32>
    %384 = vector.broadcast %383 : vector<8x1xf32> to vector<8x12xf32>
    %385 = arith.subf %381, %384 : vector<8x12xf32>
    %386 = math.exp %385 : vector<8x12xf32>
    %cst_174 = arith.constant dense<0.000000e+00> : vector<8xf32>
    %387 = vector.multi_reduction <add>, %386, %cst_174 [1] : vector<8x12xf32> to vector<8xf32>
    %388 = vector.shape_cast %387 : vector<8xf32> to vector<8x1xf32>
    %389 = tpu.reciprocal %388 {approx = true} : vector<8x1xf32> -> vector<8x1xf32>
    %390 = vector.broadcast %389 : vector<8x1xf32> to vector<8x12xf32>
    %391 = arith.mulf %386, %390 : vector<8x12xf32>
    %392 = vector.extract_strided_slice %303 {offsets = [0, 24], sizes = [12, 8], strides = [1, 1]} : vector<12x32xf32> to vector<12x8xf32>
    %cst_175 = arith.constant dense<0.000000e+00> : vector<8x8xf32>
    %393 = tpu.matmul %391, %392, %cst_175 {dimension_numbers = #tpu.dot_dimension_numbers<[1], [0], [0], [1], [0, 0, 1, 1], [], []>} : vector<8x12xf32>, vector<12x8xf32>, vector<8x8xf32> -> vector<8x8xf32>
    %394 = vector.extract_strided_slice %311 {offsets = [24, 0], sizes = [8, 32], strides = [1, 1]} : vector<32x32xf32> to vector<8x32xf32>
    %cst_176 = arith.constant dense<0.000000e+00> : vector<8x32xf32>
    %395 = tpu.matmul %393, %394, %cst_176 {dimension_numbers = #tpu.dot_dimension_numbers<[1], [0], [0], [1], [0, 0, 1, 1], [], []>} : vector<8x8xf32>, vector<8x32xf32>, vector<8x32xf32> -> vector<8x32xf32>
    %396 = arith.addf %376, %395 : vector<8x32xf32>
    %397 = vector.broadcast %313 : vector<1x32xf32> to vector<8x32xf32>
    %398 = arith.addf %396, %397 : vector<8x32xf32>
    %399 = arith.addf %398, %280 : vector<8x32xf32>
    %cst_177 = arith.constant dense<0.000000e+00> : vector<8xf32>
    %400 = vector.multi_reduction <add>, %399, %cst_177 [1] : vector<8x32xf32> to vector<8xf32>
    %401 = vector.shape_cast %400 : vector<8xf32> to vector<8x1xf32>
    %cst_178 = arith.constant 3.200000e+01 : f32
    %402 = vector.broadcast %cst_178 : f32 to vector<8x1xf32>
    %403 = arith.divf %401, %402 : vector<8x1xf32>
    %404 = vector.broadcast %403 : vector<8x1xf32> to vector<8x32xf32>
    %405 = arith.subf %399, %404 : vector<8x32xf32>
    %406 = arith.mulf %405, %405 : vector<8x32xf32>
    %cst_179 = arith.constant dense<0.000000e+00> : vector<8xf32>
    %407 = vector.multi_reduction <add>, %406, %cst_179 [1] : vector<8x32xf32> to vector<8xf32>
    %408 = vector.shape_cast %407 : vector<8xf32> to vector<8x1xf32>
    %cst_180 = arith.constant 3.200000e+01 : f32
    %409 = vector.broadcast %cst_180 : f32 to vector<8x1xf32>
    %410 = arith.divf %408, %409 : vector<8x1xf32>
    %411 = vector.broadcast %403 : vector<8x1xf32> to vector<8x32xf32>
    %412 = arith.subf %399, %411 : vector<8x32xf32>
    %cst_181 = arith.constant 9.99999996E-13 : f32
    %413 = vector.broadcast %cst_181 : f32 to vector<8x1xf32>
    %414 = arith.addf %410, %413 : vector<8x1xf32>
    %415 = math.rsqrt %414 : vector<8x1xf32>
    %416 = vector.broadcast %415 : vector<8x1xf32> to vector<8x32xf32>
    %417 = arith.mulf %412, %416 : vector<8x32xf32>
    %c2_182 = arith.constant 2 : index
    %c0_183 = arith.constant 0 : index
    %c0_184 = arith.constant 0 : index
    %418 = vector.load %arg21[%c2_182, %c0_183, %c0_184] : memref<4x1x32xf32, #tpu.memory_space<vmem>>, vector<1x1x32xf32>
    %419 = vector.shape_cast %418 : vector<1x1x32xf32> to vector<1x32xf32>
    %420 = vector.broadcast %419 : vector<1x32xf32> to vector<8x32xf32>
    %421 = arith.mulf %417, %420 : vector<8x32xf32>
    %c2_185 = arith.constant 2 : index
    %c0_186 = arith.constant 0 : index
    %c0_187 = arith.constant 0 : index
    %422 = vector.load %arg22[%c2_185, %c0_186, %c0_187] : memref<4x1x32xf32, #tpu.memory_space<vmem>>, vector<1x1x32xf32>
    %423 = vector.shape_cast %422 : vector<1x1x32xf32> to vector<1x32xf32>
    %424 = vector.broadcast %423 : vector<1x32xf32> to vector<8x32xf32>
    %425 = arith.addf %421, %424 : vector<8x32xf32>
    %c0_188 = arith.constant 0 : index
    %c0_189 = arith.constant 0 : index
    %426 = vector.load %arg23[%c0_188, %c0_189] : memref<32x64xf32, #tpu.memory_space<vmem>>, vector<32x64xf32>
    %cst_190 = arith.constant dense<0.000000e+00> : vector<8x64xf32>
    %427 = tpu.matmul %425, %426, %cst_190 {dimension_numbers = #tpu.dot_dimension_numbers<[1], [0], [0], [1], [0, 0, 1, 1], [], []>} : vector<8x32xf32>, vector<32x64xf32>, vector<8x64xf32> -> vector<8x64xf32>
    %c0_191 = arith.constant 0 : index
    %c0_192 = arith.constant 0 : index
    %428 = vector.load %arg24[%c0_191, %c0_192] : memref<1x64xf32, #tpu.memory_space<vmem>>, vector<1x64xf32>
    %429 = vector.broadcast %428 : vector<1x64xf32> to vector<8x64xf32>
    %430 = arith.addf %427, %429 : vector<8x64xf32>
    %cst_193 = arith.constant 5.000000e-01 : f32
    %431 = vector.broadcast %cst_193 : f32 to vector<8x64xf32>
    %432 = arith.mulf %431, %430 : vector<8x64xf32>
    %cst_194 = arith.constant 4.471500e-02 : f32
    %433 = vector.broadcast %cst_194 : f32 to vector<8x64xf32>
    %434 = arith.mulf %433, %430 : vector<8x64xf32>
    %435 = arith.mulf %434, %430 : vector<8x64xf32>
    %436 = arith.mulf %435, %430 : vector<8x64xf32>
    %437 = arith.addf %430, %436 : vector<8x64xf32>
    %cst_195 = arith.constant 0.797884583 : f32
    %438 = vector.broadcast %cst_195 : f32 to vector<8x64xf32>
    %439 = arith.mulf %438, %437 : vector<8x64xf32>
    %440 = math.tanh %439 : vector<8x64xf32>
    %cst_196 = arith.constant 1.000000e+00 : f32
    %441 = vector.broadcast %cst_196 : f32 to vector<8x64xf32>
    %442 = arith.addf %441, %440 : vector<8x64xf32>
    %443 = arith.mulf %432, %442 : vector<8x64xf32>
    %c0_197 = arith.constant 0 : index
    %c0_198 = arith.constant 0 : index
    %444 = vector.load %arg25[%c0_197, %c0_198] : memref<64x32xf32, #tpu.memory_space<vmem>>, vector<64x32xf32>
    %cst_199 = arith.constant dense<0.000000e+00> : vector<8x32xf32>
    %445 = tpu.matmul %443, %444, %cst_199 {dimension_numbers = #tpu.dot_dimension_numbers<[1], [0], [0], [1], [0, 0, 1, 1], [], []>} : vector<8x64xf32>, vector<64x32xf32>, vector<8x32xf32> -> vector<8x32xf32>
    %c0_200 = arith.constant 0 : index
    %c0_201 = arith.constant 0 : index
    %446 = vector.load %arg26[%c0_200, %c0_201] : memref<1x32xf32, #tpu.memory_space<vmem>>, vector<1x32xf32>
    %447 = vector.broadcast %446 : vector<1x32xf32> to vector<8x32xf32>
    %448 = arith.addf %445, %447 : vector<8x32xf32>
    %449 = arith.addf %448, %425 : vector<8x32xf32>
    %cst_202 = arith.constant dense<0.000000e+00> : vector<8xf32>
    %450 = vector.multi_reduction <add>, %449, %cst_202 [1] : vector<8x32xf32> to vector<8xf32>
    %451 = vector.shape_cast %450 : vector<8xf32> to vector<8x1xf32>
    %cst_203 = arith.constant 3.200000e+01 : f32
    %452 = vector.broadcast %cst_203 : f32 to vector<8x1xf32>
    %453 = arith.divf %451, %452 : vector<8x1xf32>
    %454 = vector.broadcast %453 : vector<8x1xf32> to vector<8x32xf32>
    %455 = arith.subf %449, %454 : vector<8x32xf32>
    %456 = arith.mulf %455, %455 : vector<8x32xf32>
    %cst_204 = arith.constant dense<0.000000e+00> : vector<8xf32>
    %457 = vector.multi_reduction <add>, %456, %cst_204 [1] : vector<8x32xf32> to vector<8xf32>
    %458 = vector.shape_cast %457 : vector<8xf32> to vector<8x1xf32>
    %cst_205 = arith.constant 3.200000e+01 : f32
    %459 = vector.broadcast %cst_205 : f32 to vector<8x1xf32>
    %460 = arith.divf %458, %459 : vector<8x1xf32>
    %461 = vector.broadcast %453 : vector<8x1xf32> to vector<8x32xf32>
    %462 = arith.subf %449, %461 : vector<8x32xf32>
    %cst_206 = arith.constant 9.99999996E-13 : f32
    %463 = vector.broadcast %cst_206 : f32 to vector<8x1xf32>
    %464 = arith.addf %460, %463 : vector<8x1xf32>
    %465 = math.rsqrt %464 : vector<8x1xf32>
    %466 = vector.broadcast %465 : vector<8x1xf32> to vector<8x32xf32>
    %467 = arith.mulf %462, %466 : vector<8x32xf32>
    %c3 = arith.constant 3 : index
    %c0_207 = arith.constant 0 : index
    %c0_208 = arith.constant 0 : index
    %468 = vector.load %arg21[%c3, %c0_207, %c0_208] : memref<4x1x32xf32, #tpu.memory_space<vmem>>, vector<1x1x32xf32>
    %469 = vector.shape_cast %468 : vector<1x1x32xf32> to vector<1x32xf32>
    %470 = vector.broadcast %469 : vector<1x32xf32> to vector<8x32xf32>
    %471 = arith.mulf %467, %470 : vector<8x32xf32>
    %c3_209 = arith.constant 3 : index
    %c0_210 = arith.constant 0 : index
    %c0_211 = arith.constant 0 : index
    %472 = vector.load %arg22[%c3_209, %c0_210, %c0_211] : memref<4x1x32xf32, #tpu.memory_space<vmem>>, vector<1x1x32xf32>
    %473 = vector.shape_cast %472 : vector<1x1x32xf32> to vector<1x32xf32>
    %474 = vector.broadcast %473 : vector<1x32xf32> to vector<8x32xf32>
    %475 = arith.addf %471, %474 : vector<8x32xf32>
    %c0_212 = arith.constant 0 : index
    %c0_213 = arith.constant 0 : index
    %c0_214 = arith.constant 0 : index
    %476 = vector.load %arg27[%c0_212, %c0_213, %c0_214] : memref<1x8x32xf32, #tpu.memory_space<vmem>>, vector<1x8x32xf32>
    %477 = vector.shape_cast %476 : vector<1x8x32xf32> to vector<8x32xf32>
    %478 = vector.shape_cast %475 : vector<8x32xf32> to vector<1x8x32xf32>
    tpu.vector_store %arg27[%c0_212, %c0_213, %c0_214], %478 {strides = array<i32>} : memref<1x8x32xf32, #tpu.memory_space<vmem>>, vector<1x8x32xf32>,
    return
  }
  func.func @transform_0(%arg0: i32) -> (i32, i32, i32) {
    %c0_i32 = arith.constant 0 : i32
    %c0_i32_0 = arith.constant 0 : i32
    %c0_i32_1 = arith.constant 0 : i32
    return %arg0, %c0_i32, %c0_i32_0 : i32, i32, i32
  }
  func.func @transform_1(%arg0: i32) -> (i32, i32, i32) {
    %c0_i32 = arith.constant 0 : i32
    %c0_i32_0 = arith.constant 0 : i32
    %c0_i32_1 = arith.constant 0 : i32
    return %arg0, %c0_i32, %c0_i32_0 : i32, i32, i32
  }
  func.func @transform_2(%arg0: i32) -> (i32, i32, i32) {
    %c0_i32 = arith.constant 0 : i32
    %c0_i32_0 = arith.constant 0 : i32
    %c0_i32_1 = arith.constant 0 : i32
    return %arg0, %c0_i32, %c0_i32_0 : i32, i32, i32
  }
  func.func @transform_3(%arg0: i32) -> (i32, i32, i32) {
    %c0_i32 = arith.constant 0 : i32
    %c0_i32_0 = arith.constant 0 : i32
    %c0_i32_1 = arith.constant 0 : i32
    return %arg0, %c0_i32, %c0_i32_0 : i32, i32, i32
  }
  func.func @transform_4(%arg0: i32) -> (i32, i32, i32) {
    %c0_i32 = arith.constant 0 : i32
    %c0_i32_0 = arith.constant 0 : i32
    %c0_i32_1 = arith.constant 0 : i32
    return %arg0, %c0_i32, %c0_i32_0 : i32, i32, i32
  }
  func.func @transform_5(%arg0: i32) -> (i32, i32, i32) {
    %c0_i32 = arith.constant 0 : i32
    %c0_i32_0 = arith.constant 0 : i32
    %c0_i32_1 = arith.constant 0 : i32
    return %arg0, %c0_i32, %c0_i32_0 : i32, i32, i32
  }
  func.func @transform_6(%arg0: i32) -> (i32, i32, i32) {
    %c0_i32 = arith.constant 0 : i32
    %c0_i32_0 = arith.constant 0 : i32
    %c0_i32_1 = arith.constant 0 : i32
    return %arg0, %c0_i32, %c0_i32_0 : i32, i32, i32
  }
  func.func @transform_7(%arg0: i32) -> (i32, i32, i32) {
    %c0_i32 = arith.constant 0 : i32
    %c0_i32_0 = arith.constant 0 : i32
    %c0_i32_1 = arith.constant 0 : i32
    return %arg0, %c0_i32, %c0_i32_0 : i32, i32, i32
  }
  func.func @transform_8(%arg0: i32) -> (i32, i32) {
    %c0_i32 = arith.constant 0 : i32
    %c0_i32_0 = arith.constant 0 : i32
    %c0_i32_1 = arith.constant 0 : i32
    return %c0_i32, %c0_i32_0 : i32, i32
  }
  func.func @transform_9(%arg0: i32) -> (i32, i32) {
    %c0_i32 = arith.constant 0 : i32
    %c0_i32_0 = arith.constant 0 : i32
    %c0_i32_1 = arith.constant 0 : i32
    return %c0_i32, %c0_i32_0 : i32, i32
  }
  func.func @transform_10(%arg0: i32) -> (i32, i32) {
    %c0_i32 = arith.constant 0 : i32
    %c0_i32_0 = arith.constant 0 : i32
    %c0_i32_1 = arith.constant 0 : i32
    return %c0_i32, %c0_i32_0 : i32, i32
  }
  func.func @transform_11(%arg0: i32) -> (i32, i32) {
    %c0_i32 = arith.constant 0 : i32
    %c0_i32_0 = arith.constant 0 : i32
    %c0_i32_1 = arith.constant 0 : i32
    return %c0_i32, %c0_i32_0 : i32, i32
  }
  func.func @transform_12(%arg0: i32) -> (i32, i32, i32) {
    %c0_i32 = arith.constant 0 : i32
    %c0_i32_0 = arith.constant 0 : i32
    %c0_i32_1 = arith.constant 0 : i32
    %c0_i32_2 = arith.constant 0 : i32
    return %c0_i32, %c0_i32_0, %c0_i32_1 : i32, i32, i32
  }
  func.func @transform_13(%arg0: i32) -> (i32, i32, i32) {
    %c0_i32 = arith.constant 0 : i32
    %c0_i32_0 = arith.constant 0 : i32
    %c0_i32_1 = arith.constant 0 : i32
    %c0_i32_2 = arith.constant 0 : i32
    return %c0_i32, %c0_i32_0, %c0_i32_1 : i32, i32, i32
  }
  func.func @transform_14(%arg0: i32) -> (i32, i32) {
    %c0_i32 = arith.constant 0 : i32
    %c0_i32_0 = arith.constant 0 : i32
    %c0_i32_1 = arith.constant 0 : i32
    return %c0_i32, %c0_i32_0 : i32, i32
  }
  func.func @transform_15(%arg0: i32) -> (i32, i32) {
    %c0_i32 = arith.constant 0 : i32
    %c0_i32_0 = arith.constant 0 : i32
    %c0_i32_1 = arith.constant 0 : i32
    return %c0_i32, %c0_i32_0 : i32, i32
  }
  func.func @transform_16(%arg0: i32) -> (i32, i32, i32) {
    %c0_i32 = arith.constant 0 : i32
    %c0_i32_0 = arith.constant 0 : i32
    %c0_i32_1 = arith.constant 0 : i32
    %c0_i32_2 = arith.constant 0 : i32
    return %c0_i32, %c0_i32_0, %c0_i32_1 : i32, i32, i32
  }
  func.func @transform_17(%arg0: i32) -> (i32, i32, i32) {
    %c0_i32 = arith.constant 0 : i32
    %c0_i32_0 = arith.constant 0 : i32
    %c0_i32_1 = arith.constant 0 : i32
    %c0_i32_2 = arith.constant 0 : i32
    return %c0_i32, %c0_i32_0, %c0_i32_1 : i32, i32, i32
  }
  func.func @transform_18(%arg0: i32) -> (i32, i32, i32) {
    %c0_i32 = arith.constant 0 : i32
    %c0_i32_0 = arith.constant 0 : i32
    %c0_i32_1 = arith.constant 0 : i32
    %c0_i32_2 = arith.constant 0 : i32
    return %c0_i32, %c0_i32_0, %c0_i32_1 : i32, i32, i32
  }
  func.func @transform_19(%arg0: i32) -> (i32, i32, i32) {
    %c0_i32 = arith.constant 0 : i32
    %c0_i32_0 = arith.constant 0 : i32
    %c0_i32_1 = arith.constant 0 : i32
    %c0_i32_2 = arith.constant 0 : i32
    return %c0_i32, %c0_i32_0, %c0_i32_1 : i32, i32, i32
  }
  func.func @transform_20(%arg0: i32) -> (i32, i32, i32) {
    %c0_i32 = arith.constant 0 : i32
    %c0_i32_0 = arith.constant 0 : i32
    %c0_i32_1 = arith.constant 0 : i32
    %c0_i32_2 = arith.constant 0 : i32
    return %c0_i32, %c0_i32_0, %c0_i32_1 : i32, i32, i32
  }
  func.func @transform_21(%arg0: i32) -> (i32, i32, i32) {
    %c0_i32 = arith.constant 0 : i32
    %c0_i32_0 = arith.constant 0 : i32
    %c0_i32_1 = arith.constant 0 : i32
    %c0_i32_2 = arith.constant 0 : i32
    return %c0_i32, %c0_i32_0, %c0_i32_1 : i32, i32, i32
  }
  func.func @transform_22(%arg0: i32) -> (i32, i32) {
    %c0_i32 = arith.constant 0 : i32
    %c0_i32_0 = arith.constant 0 : i32
    %c0_i32_1 = arith.constant 0 : i32
    return %c0_i32, %c0_i32_0 : i32, i32
  }
  func.func @transform_23(%arg0: i32) -> (i32, i32) {
    %c0_i32 = arith.constant 0 : i32
    %c0_i32_0 = arith.constant 0 : i32
    %c0_i32_1 = arith.constant 0 : i32
    return %c0_i32, %c0_i32_0 : i32, i32
  }
  func.func @transform_24(%arg0: i32) -> (i32, i32) {
    %c0_i32 = arith.constant 0 : i32
    %c0_i32_0 = arith.constant 0 : i32
    %c0_i32_1 = arith.constant 0 : i32
    return %c0_i32, %c0_i32_0 : i32, i32
  }
  func.func @transform_25(%arg0: i32) -> (i32, i32) {
    %c0_i32 = arith.constant 0 : i32
    %c0_i32_0 = arith.constant 0 : i32
    %c0_i32_1 = arith.constant 0 : i32
    return %c0_i32, %c0_i32_0 : i32, i32
  }
  func.func @transform_26(%arg0: i32) -> (i32, i32, i32) {
    %c0_i32 = arith.constant 0 : i32
    %c0_i32_0 = arith.constant 0 : i32
    %c0_i32_1 = arith.constant 0 : i32
    return %arg0, %c0_i32, %c0_i32_0 : i32, i32, i32
  }
}

</mosaic_0001>

<bundles_post_ra>
// kernel: multimodal_decoder_forward.3
= control target key start
LH: loop header
LB: loop body
LE: loop exit
PB: predicated region body
PF: predicated region fallthrough
CT: control target
= control target key end

     0   :  { %s6832_s0 = inlined_call_operand.vmem [shape: f32[2,8,32], index: 0, kind: input, shape index: {}]   ;;  %s6833_s1 = inlined_call_operand.vmem [shape: f32[2,10,32], index: 1, kind: input, shape index: {}]   ;;  %s6834_s2 = inlined_call_operand.vmem [shape: f32[2,10,32], index: 2, kind: input, shape index: {}]   ;;  %s6835_s3 = inlined_call_operand.vmem [shape: f32[2,12,32], index: 3, kind: input, shape index: {}]   ;;  %s6836_s4 = inlined_call_operand.vmem [shape: f32[2,12,32], index: 4, kind: input, shape index: {}]   ;;  %s6837_s5 = inlined_call_operand.vmem [shape: f32[2,1,8], index: 5, kind: input, shape index: {}]   ;;  %s6838_s6 = inlined_call_operand.vmem [shape: f32[2,1,10], index: 6, kind: input, shape index: {}]   ;;  %s6839_s7 = inlined_call_operand.vmem [shape: f32[2,1,12], index: 7, kind: input, shape index: {}]   ;;  %s6840_s8 = inlined_call_operand.vmem [shape: f32[32,96], index: 8, kind: input, shape index: {}]   ;;  %s6841_s9 = inlined_call_operand.vmem [shape: f32[1,96], index: 9, kind: input, shape index: {}]   ;;  %s6842_s10 = inlined_call_operand.vmem [shape: f32[32,32], index: 10, kind: input, shape index: {}]   ;;  %s6843_s11 = inlined_call_operand.vmem [shape: f32[1,32], index: 11, kind: input, shape index: {}]   ;;  %s6844_s12 = inlined_call_operand.vmem [shape: f32[2,32,32], index: 12, kind: input, shape index: {}]   ;;  %s6845_s13 = inlined_call_operand.vmem [shape: f32[2,1,32], index: 13, kind: input, shape index: {}]   ;;  %s6846_s14 = inlined_call_operand.vmem [shape: f32[32,32], index: 14, kind: input, shape index: {}]   ;;  %s6847_s15 = inlined_call_operand.vmem [shape: f32[1,32], index: 15, kind: input, shape index: {}]   ;;  %s6848_s16 = inlined_call_operand.vmem [shape: f32[2,32,32], index: 16, kind: input, shape index: {}]   ;;  %s6849_s17 = inlined_call_operand.vmem [shape: f32[2,1,32], index: 17, kind: input, shape index: {}]   ;;  %s6850_s18 = inlined_call_operand.vmem [shape: f32[3,32,32], index: 18, kind: input, shape index: {}]   ;;  %s6851_s19 = inlined_call_operand.vmem [shape: f32[3,1,32], index: 19, kind: input, shape index: {}]   ;;  %s6852_s20 = inlined_call_operand.vmem [shape: f32[4,1,32], index: 20, kind: input, shape index: {}]   ;;  %s6853_s21 = inlined_call_operand.vmem [shape: f32[4,1,32], index: 21, kind: input, shape index: {}]   ;;  %s6854_s22 = inlined_call_operand.vmem [shape: f32[32,64], index: 22, kind: input, shape index: {}]   ;;  %s6855_s23 = inlined_call_operand.vmem [shape: f32[1,64], index: 23, kind: input, shape index: {}]   ;;  %s6856_s24 = inlined_call_operand.vmem [shape: f32[64,32], index: 24, kind: input, shape index: {}]   ;;  %s6857_s25 = inlined_call_operand.vmem [shape: f32[1,32], index: 25, kind: input, shape index: {}]   ;;  %s6858_s26 = inlined_call_operand.hbm [shape: f32[2,8,32], index: 26, kind: output, shape index: {}]  }
   0x1   :  { %6878 = sst [smem:[#allocation12_spill]] %s6832_s0 }
   0x2   :  { %6879 = sst [smem:[#allocation13_spill]] %s6833_s1 }
   0x3   :  { %6880 = sst [smem:[#allocation14_spill]] %s6834_s2 }
   0x4   :  { %6881 = sst [smem:[#allocation15_spill]] %s6835_s3 }
   0x5   :  { %6882 = sst [smem:[#allocation16_spill]] %s6836_s4 }
   0x6   :  { %6883 = sst [smem:[#allocation17_spill]] %s6837_s5 }
   0x7   :  { %6884 = sst [smem:[#allocation18_spill]] %s6838_s6 }
   0x8   :  { %6885 = sst [smem:[#allocation19_spill]] %s6839_s7 }
   0x9   :  { %6886 = sst [smem:[#allocation20_spill]] %s6840_s8 }
   0xa   :  { %6887 = sst [smem:[#allocation21_spill]] %s6841_s9 }
   0xb   :  { %6888 = sst [smem:[#allocation22_spill]] %s6842_s10 }
   0xc   :  { %6889 = sst [smem:[#allocation23_spill]] %s6843_s11 }
   0xd   :  { %6890 = sst [smem:[#allocation24_spill]] %s6844_s12 }
   0xe   :  { %6891 = sst [smem:[#allocation25_spill]] %s6845_s13 }
   0xf   :  { %6892 = sst [smem:[#allocation26_spill]] %s6858_s26 }
  0x10   :  { %31 = vsyncpa [#allocation3], 0 }
  0x11   :  { %33 = vsyncpa [#allocation3 + $0x1], 0  ;;  %s6121_s27 = smov 0   ;;  %s6123_s3 = smov 0  }
  0x12   :  { %s6125_s7 = smov 0   ;;  %s6127_s28 = smov 0  }
  0x13 LB: > { %6893 = sst [smem:[#allocation5_spill]] %s5956_s27  ;;  %s6142_s8 = sadd.s32 4294967295, %s5968_s28   ;;  %s5968_s28 = sphi %s6127_s28, %s6930_s28   ;;  %s5964_s7 = sphi %s6125_s7, %s6932_s7   ;;  %s5960_s3 = sphi %s6123_s3, %s6934_s3   ;;  %s5956_s27 = sphi %s6121_s27, %s6933_s27  }
  0x14   : > { %6894 = sst [smem:[#allocation6_spill]] %s5964_s7  ;;  %s4997_s4 = sadd.s32 4294967294, %s5968_s28  }
  0x15   : > { %6895 = sst [smem:[#allocation7_spill]] %s5968_s28  ;;  %s6146_s29 = sadd.s32 1, %s5968_s28  }
  0x16   : > { %6896 = sst [smem:[#allocation8_spill]] %s6146_s29  ;;  %s632_s0 = sadd.s32 1, %s5964_s7 }
  0x17   : > { %s629_s9 = ssub.s32 %s5968_s28, %s6146_s29  ;;  %p642_p0 = scmp.ne.s32.totalorder %s5964_s7, %s5960_s3 }
  0x18   : > { %p630_p1 = scmp.eq.s32.totalorder %s629_s9, 0  ;;  %p643_p2 = scmp.eq.s32.totalorder %s6142_s8, 1 }
  0x19   : > { %p648_p3 = scmp.ne.s32.totalorder %s5960_s3, %s5956_s27  ;;  %p649_p4 = scmp.eq.s32.totalorder %s4997_s4, 1 }
  0x1a   : > { %s6157_s30 = scalar_select %p630_p1, %s5964_s7, %s632_s0  }
  0x1b   : > { %p6159_p5 = por %p643_p2, %p642_p0  ;;  %p6163_p6 = por %p649_p4, %p648_p3 }
  0x1c   : > { %6897 = sst [smem:[#allocation9_spill]] %s6157_s30  ;;  %p5000_p7 = scmp.ge.s32.totalorder %s5968_s28, 1 }
  0x1d   : > { %s6898_s2 = scalar_select %p6159_p5, 1, 0 }
  0x1e   : > { %s6900_s5 = scalar_select %p6163_p6, 1, 0 }
  0x1f   : > { %6899 = sst [smem:[#allocation10_spill]] %s6898_s2  ;;  %p778_p8 = scmp.lt.s32.totalorder %s5968_s28, 3 }
  0x20   : > { %6901 = sst [smem:[#allocation11_spill]] %s6900_s5 }
  0x21   : > { %p779_p9 = pnand %p5000_p7, %p778_p8 }
  0x22   : > { %s6902_s1 = sld [smem:[#allocation20_spill]] (!%p779_p9)  ;;  %v5970_v3 = vmov (!%p779_p9), 0.0|0.0   ;;  %vm5971_vm0 = vmmov (!%p779_p9), 0   ;;  %v5972_v6 = vmov (!%p779_p9), 0.0   ;;  %p876_p10 = scmp.lt.s32.totalorder (!%p779_p9), %s6142_s8, 1  ;;  %vm937_vm1 = vcmask (!%p779_p9), 261120  }
  0x23   : > { %782 = sbr.rel (%p779_p9) target bundleno = 8847 (0x228f), region = 124  ;;  %5602 = vmatprep.subr.bf16.mxu0 (!%p779_p9), %v5970_v3  ;;  %5291 = vmatprep.mubr.msk.f32.mxu0 (!%p779_p9), %vm5971_vm0, %v5972_v6  ;;  %s6903_s6 = sld [smem:[#allocation12_spill]] (!%p779_p9)  ;;  %vm1020_vm2 = vcmask (!%p779_p9), 64512   ;;  %v910_v17 = vlaneseq (!%p779_p9)  ;;  %v1012_v45 = vld [vmem:[%s6850_s18 + $0x8] sm:$0xff] (!%p779_p9)  ;;  %v1011_v54 = vld [vmem:[%s6850_s18] sm:$0xff] (!%p779_p9)  ;;  %vm2380_vm5 = vcmask (!%p779_p9), 80896  }
  0x24   : > { %5299 = vmatprep.subr.mxu1 (!%p779_p9), %v5972_v6  ;;  %5301 = vmatprep.mubr.msk.f32.mxu1 (!%p779_p9), %vm5971_vm0, %v5972_v6  ;;  %s6869_s29 = smov (!%p779_p9), 120   ;;  %s5975_s10 = smov (!%p779_p9), 88   ;;  %vm6367_vm4 = vmpackc.low (!%p779_p9), %vm1020_vm2, %vm1020_vm2  ;;  %vm2395_vm6 = vcmask (!%p779_p9), 1041408   ;;  %vm5984_vm7 = vmmov (!%p779_p9), 1   ;;  %vm3692_vm9 = vcmask (!%p779_p9), 97280   ;;  %vm3707_vm10 = vcmask (!%p779_p9), 1043456  }
  0x25   : > { %v911_v19 = vshrl.u32 (!%p779_p9), %v910_v17, 7  ;;  %v913_v21 = vand.u32 (!%p779_p9), 127, %v910_v17  ;;  %s5976_s9 = smov (!%p779_p9), 56   ;;  %s6906_s12 = sld [smem:[#allocation24_spill]] (!%p779_p9)  ;;  %vm6434_vm8 = vmpackc.low (!%p779_p9), %vm2395_vm6, %vm5984_vm7  ;;  %vm4742_vm12 = vcmask (!%p779_p9), 523264  }
  0x26   : > { %s6909_s13 = sld [smem:[#allocation25_spill]] (!%p779_p9)  ;;  %s6913_s11 = sld [smem:[#allocation23_spill]] (!%p779_p9)  ;;  %vm6629_vm11 = vmpackc.low (!%p779_p9), %vm3707_vm10, %vm5984_vm7 }
  0x27   : > { %v6230_v23 = vsub.s32 (!%p779_p9), 0, %v911_v19  ;;  %vm914_vm3 = vcmp.gt.s32.totalorder (!%p779_p9), %v913_v21, %v911_v19  ;;  %v1013_v21 = vld [vmem:[%s6850_s18 + $0x10] sm:$0xff] (!%p779_p9)  ;;  %s6915_s2 = sld [smem:[#allocation18_spill]] (!%p779_p9)  ;;  %s873_s26 = sand.u32 (!%p779_p9), 1, %s5960_s3  }
  0x28   : > { %v926_v0 = vld [vmem:[%s6902_s1] sm:$0xff] (!%p779_p9)  ;;  %v927_v1 = vld [vmem:[%s6902_s1 + $0x8] sm:$0xff] (!%p779_p9)  ;;  %v928_v2 = vld [vmem:[%s6902_s1 + $0x10] sm:$0xff] (!%p779_p9)  ;;  %v915_v25 = vsel (!%p779_p9), %vm914_vm3, -1e+09, %v5972_v6 }
  0x29   : > { %v5603_v4 = vpack.c.bf16 (!%p779_p9), %v927_v1, %v926_v0  ;;  %v929_v5 = vld [vmem:[%s6902_s1 + $0x18] sm:$0xff] (!%p779_p9)  ;;  %s6904_s1 = sld [smem:[#allocation21_spill]] (!%p779_p9) }
  0x2a   : > { %v5606_v7 = vpack.c.bf16 %v929_v5, %v928_v2  ;;  %s6189_s30 = scalar_select %p876_p10, %s6142_s8, 1 }
  0x2b   : > { %5604 = vmatpush3.bf16.msra.mxu0 %v5603_v4 }
  0x2c   : > { %5605 = vmatprep.subr.bf16.mxu0 %v5970_v3  ;;  %s5002_s7 = sshll.u32 %s6189_s30, 3  ;;  %s6328_s5 = sshll.u32 %s6189_s30, 4 }
  0x2d   : > { %s879_s4 = scalar_lea.vmem %s6903_s6, %s5002_s7  ;;  %s5973_s7 = smov 96  }
  0x2e   : > { %v6196_v8 = vld [vmem:[%s879_s4] sm:$0xff]  ;;  %s6905_s4 = sld [smem:[#allocation17_spill]]  ;;  %s5982_s6 = smov 48  }
  0x2f   : > { %5607 = vmatpush3.bf16.msra.mxu0 %v5606_v7  ;;  %v5011_v9 = vld [vmem:[%s6904_s1] ss:$0 sm:$0xff]  ;;  %s6867_s1 = smov 112  }
  0x30   : > { %5294 = vmatprep.subr.mxu0 %v5972_v6 }
  0x32   : > { %5292 = vmatmul.mubr.msk.f32.vlgmr.msra.gmra.mrb[0].mxu0 %vm937_vm1, %v6196_v8 }
  0x33   : > { %5296 = vmatprep.mubr.msk.f32.mxu0 %vm5971_vm0, %v5972_v6 }
  0x34   : > { %s902_s0 = scalar_lea.vmem %s6905_s4, %s6189_s30 }
  0x35   : > { %v916_v18 = vld [vmem:[%s902_s0] sm:$0x1] }
  0x36   : > { %v917_v20 = vsub.f32 1.0, %v916_v18 }
  0x38   : > { %v918_v22 = vmul.f32 -1e+09, %v917_v20 }
  0x3a   : > { %v923_v24 = vrot.slane %v918_v22, %v6230_v23 }
  0x3c   : > { %v6234_v26 = vadd.f32 %v923_v24, %v915_v25 }
 0x105   : > { %v1007_v10 = vpop.f32.mrb[0].mxu0 }
 0x106   : > { %v6206_v11 = vadd.f32 %v5011_v9, %v1007_v10  ;;  %v5293_v12 = vpop.f32.mrb[1].mxu0 }
 0x108   : > { %1018 = vrot.lane.b32.xlu0 %v6206_v11, %s5973_s7  ;;  %v6210_v13 = vmul.f32 0.35355338, %v6206_v11  ;;  %s5977_s7 = smov 64  }
 0x10a   : > { %1183 = vrot.lane.b32.xlu1 %v6210_v13, %s6869_s29  ;;  %s6917_s29 = smov 104  }
 0x10c   : > { %1185 = vrot.lane.b32.xlu0 %v6206_v11, %s5975_s10  ;;  %s5978_s10 = smov 80  }
 0x17a   : > { %v1019_v14 = vpop.permute.xlu0 %1018 }
 0x17b   : > { %5295 = vmatpush3.xpose.msk.msra.mxu0 %vm1020_vm2, %v1019_v14 }
 0x17c   : > { %5304 = vmatprep.subr.mxu0 %v5972_v6  ;;  %v1184_v16 = vpop.permute.xlu1 %1183 }
 0x17e   : > { %v1186_v15 = vpop.permute.xlu0 %1185  ;;  %5297 = vmatmul.mubr.msk.f32.vlgmr.msra.gmra.mrb[2].mxu0 %vm1020_vm2, %v6210_v13 }
 0x17f   : > { %5305 = vmatpush3.xpose.msk.msra.mxu0 %vm1020_vm2, %v1186_v15  ;;  %5306 = vmatprep.mubr.msk.f32.mxu0 %vm5971_vm0, %v5972_v6 }
 0x180   : > { %5314 = vmatprep.subr.mxu0 %v5972_v6 }
 0x182   : > { %5307 = vmatmul.mubr.msk.f32.vlgmr.msra.gmra.mrb[4].mxu0 %vm1020_vm2, %v1184_v16 }
 0x183   : > { %5316 = vmatprep.mubr.msk.f32.mxu0 %vm5971_vm0, %v5972_v6  ;;  %5315 = vmatpush3.msra.mxu0 %v1012_v45 }
 0x184   : > { %5324 = vmatprep.subr.mxu0 %v5972_v6 }
 0x251   : > { %v1092_v27 = vpop.f32.mrb[2].mxu0 }
 0x252   : > { %v1093_v28 = vadd.f32 %v1092_v27, %v6234_v26  ;;  %v5298_v29 = vpop.f32.mrb[3].mxu0 }
 0x254   : > { %v1096_v30 = vsel %vm1020_vm2, %v1093_v28, -inf }
 0x255   : > { %1097 = vmax.xlane.f32.xlu1 %v1096_v30  ;;  %v1257_v31 = vpop.f32.mrb[4].mxu0 }
 0x256   : > { %v1258_v32 = vadd.f32 %v1257_v31, %v6234_v26  ;;  %v5308_v33 = vpop.f32.mrb[5].mxu0 }
 0x258   : > { %v1261_v34 = vsel %vm1020_vm2, %v1258_v32, -inf }
 0x259   : > { %1262 = vmax.xlane.f32.xlu0 %v1261_v34 }
 0x2e2   : > { %v1098_v35 = vpop.xlane.xlu1 %1097 }
 0x2e3   : > { %v1099_v36 = vsub.f32 %v1093_v28, %v1098_v35 }
 0x2e5   : > { %v1100_v37 = vmul.f32 1.442695, %v1099_v36 }
 0x2e6   : > { %v1263_v38 = vpop.xlane.xlu0 %1262 }
 0x2e7   : > { %5848 = vpow2.f32 %v1100_v37  ;;  %v1264_v39 = vsub.f32 %v1258_v32, %v1263_v38 }
 0x2e9   : > { %v1265_v40 = vmul.f32 1.442695, %v1264_v39 }
 0x2eb   : > { %5850 = vpow2.f32 %v1265_v40 }
 0x2f1   : > { %v5849_v41 = vpop.eup %5848 }
 0x2f2   : > { %v1102_v42 = vsel %vm1020_vm2, %v5849_v41, 0.0 }
 0x2f3   : > { %1103 = vadd.xlane.f32.xlu0 %v1102_v42 }
 0x2f5   : > { %v5851_v43 = vpop.eup %5850 }
 0x2f6   : > { %v1267_v44 = vsel %vm1020_vm2, %v5851_v43, 0.0 }
 0x2f7   : > { %1268 = vadd.xlane.f32.xlu1 %v1267_v44 }
 0x308   : > { %1272 = vrot.lane.b32.xlu1 %v6206_v11, %s5976_s9  ;;  %s5983_s9 = smov 40  }
 0x309   : > { %1107 = vrot.lane.b32.xlu0 %v6206_v11, %s5977_s7  ;;  %s5980_s7 = smov 72  }
 0x30c   : > { %1496 = vrot.lane.b32.xlu1 %v6206_v11, %s5978_s10  ;;  %s6865_s10 = smov 104  }
 0x30d   : > { %1494 = vrot.lane.b32.xlu0 %v6210_v13, %s6867_s1 }
 0x380   : > { %v1104_v46 = vpop.xlane.xlu0 %1103 }
 0x381   : > { %5852 = vrcp.f32 %v1104_v46 }
 0x384   : > { %v1269_v47 = vpop.xlane.xlu1 %1268  ;;  %v1108_v48 = vpop.permute.xlu0 %1107 }
 0x385   : > { %5854 = vrcp.f32 %v1269_v47  ;;  %5300 = vmatpush3.msra.mxu1 %v1108_v48 }
 0x386   : > { %5309 = vmatprep.subr.mxu1 %v5972_v6 }
 0x388   : > { %v1273_v51 = vpop.permute.xlu1 %1272  ;;  %v1495_v60 = vpop.permute.xlu0 %1494 }
 0x38b   : > { %v5853_v49 = vpop.eup %5852 }
 0x38c   : > { %v1106_v50 = vmul.f32 %v5853_v49, %v5849_v41  ;;  %v1497_v58 = vpop.permute.xlu1 %1496 }
 0x38e   : > { %5302 = vmatmul.mubr.msk.f32.vlgmr.msra.gmra.mrb[0].mxu1 %vm1020_vm2, %v1106_v50 }
 0x38f   : > { %v5855_v52 = vpop.eup %5854  ;;  %5310 = vmatpush3.msra.mxu1 %v1273_v51  ;;  %5311 = vmatprep.mubr.msk.f32.mxu1 %vm5971_vm0, %v5972_v6 }
 0x390   : > { %v1271_v53 = vmul.f32 %v5855_v52, %v5851_v43  ;;  %5319 = vmatprep.subr.mxu1 %v5972_v6  ;;  %v5029_v43 = vld [vmem:[%s6851_s19] ss:$0 sm:$0xff] }
 0x392   : > { %5312 = vmatmul.mubr.msk.f32.vlgmr.msra.gmra.mrb[2].mxu1 %vm1020_vm2, %v1271_v53 }
 0x393   : > { %5321 = vmatprep.mubr.msk.f32.mxu1 %vm5971_vm0, %v5972_v6  ;;  %5320 = vmatpush3.msra.mxu1 %v1011_v54 }
 0x394   : > { %5329 = vmatprep.subr.mxu1 %v5972_v6 }
 0x461   : > { %v1179_v55 = vpop.f32.mrb[0].mxu1 }
 0x462   : > { %v5303_v56 = vpop.f32.mrb[1].mxu1  ;;  %5322 = vmatmul.mubr.msk.f32.vlgmr.msra.gmra.mrb[4].mxu1 %vm1020_vm2, %v1179_v55  ;;  %v2096_v55 = vld [vmem:[%s6906_s12] sm:$0xff] }
 0x463   : > { %5331 = vmatprep.mubr.msk.f32.mxu1 %vm5971_vm0, %v5972_v6  ;;  %v2097_v56 = vld [vmem:[%s6906_s12 + $0x8] sm:$0xff] }
 0x465   : > { %v1344_v57 = vpop.f32.mrb[2].mxu1 }
 0x466   : > { %v5313_v59 = vpop.f32.mrb[3].mxu1  ;;  %5317 = vmatmul.mubr.msk.f32.vlgmr.msra.gmra.mrb[6].mxu0 %vm1020_vm2, %v1344_v57  ;;  %v2098_v57 = vld [vmem:[%s6906_s12 + $0x10] sm:$0xff] }
 0x467   : > { %5325 = vmatpush3.xpose.msk.msra.mxu0 %vm1020_vm2, %v1497_v58  ;;  %5326 = vmatprep.mubr.msk.f32.mxu0 %vm5971_vm0, %v5972_v6  ;;  %v2099_v58 = vld [vmem:[%s6906_s12 + $0x18] sm:$0xff] }
 0x468   : > { %5334 = vmatprep.subr.mxu0 %v5972_v6  ;;  %v5618_v59 = vpack.c.bf16 %v2099_v58, %v2098_v57  ;;  %v5042_v58 = vld [vmem:[%s6909_s13 + $0x1] ss:$0 sm:$0xff] }
 0x46a   : > { %5327 = vmatmul.mubr.msk.f32.vlgmr.msra.gmra.mrb[8].mxu0 %vm1020_vm2, %v1495_v60 }
 0x46b   : > { %5336 = vmatprep.mubr.msk.f32.mxu0 %vm5971_vm0, %v5972_v6  ;;  %5335 = vmatpush3.msra.mxu0 %v1013_v21 }
 0x46c   : > { %5344 = vmatprep.subr.mxu0 %v5972_v6 }
 0x535   : > { %v1490_v61 = vpop.f32.mrb[4].mxu1 }
 0x536   : > { %v5323_v62 = vpop.f32.mrb[5].mxu1 }
 0x539   : > { %v1417_v63 = vpop.f32.mrb[6].mxu0 }
 0x53a   : > { %v1491_v0 = vadd.f32 %v1490_v61, %v1417_v63  ;;  %v5318_v1 = vpop.f32.mrb[7].mxu0 }
 0x53d   : > { %v1568_v2 = vpop.f32.mrb[8].mxu0 }
 0x53e   : > { %v1569_v4 = vadd.f32 %v1568_v2, %v6234_v26  ;;  %v5328_v5 = vpop.f32.mrb[9].mxu0 }
 0x540   : > { %v1572_v7 = vsel %vm1020_vm2, %v1569_v4, -inf }
 0x541   : > { %1573 = vmax.xlane.f32.xlu1 %v1572_v7 }
 0x552   : > { %1735 = vrot.lane.b32.xlu1 %v6206_v11, %s5980_s7 }
 0x556   : > { %1733 = vrot.lane.b32.xlu1 %v6210_v13, %s6865_s10  ;;  %s6908_s10 = sld [smem:[#allocation22_spill]] }
 0x55c   : > { %v2010_v62 = vld [vmem:[%s6908_s10] sm:$0xff]  ;;  %v2011_v63 = vld [vmem:[%s6908_s10 + $0x8] sm:$0xff]  ;;  %v2012_v1 = vld [vmem:[%s6908_s10 + $0x10] sm:$0xff] }
 0x55d   : > { %v2013_v2 = vld [vmem:[%s6908_s10 + $0x18] sm:$0xff]  ;;  %s905_s10 = scalar_lea.vmem %s6915_s2, %s6189_s30  ;;  %s6921_s2 = sld [smem:[#allocation16_spill]] }
 0x5ce   : > { %v1574_v9 = vpop.xlane.xlu1 %1573 }
 0x5cf   : > { %v1575_v10 = vsub.f32 %v1569_v4, %v1574_v9  ;;  %v5612_v4 = vpack.c.bf16 %v2013_v2, %v2012_v1 }
 0x5d1   : > { %v1576_v12 = vmul.f32 1.442695, %v1575_v10 }
 0x5d2   : > { %v1736_v19 = vpop.permute.xlu1 %1735 }
 0x5d3   : > { %5856 = vpow2.f32 %v1576_v12  ;;  %v5030_v12 = vld [vmem:[%s6852_s20] ss:$0 sm:$0xff] }
 0x5d6   : > { %v1734_v20 = vpop.permute.xlu1 %1733 }
 0x5dd   : > { %v5857_v14 = vpop.eup %5856 }
 0x5de   : > { %v1578_v15 = vsel %vm1020_vm2, %v5857_v14, 0.0 }
 0x5df   : > { %1579 = vadd.xlane.f32.xlu0 %v1578_v15  ;;  %v5031_v15 = vld [vmem:[%s6853_s21] ss:$0 sm:$0xff] }
 0x5f5   : > { %1583 = vrot.lane.b32.xlu0 %v6206_v11, %s5982_s6  ;;  %s6907_s6 = sld [smem:[#allocation13_spill]] }
 0x5fb   : > { %s884_s4 = scalar_lea.vmem %s6907_s6, %s6328_s5  ;;  %s6912_s6 = smov 120  }
 0x5fc   : > { %v2094_v60 = vld [vmem:[%s884_s4] sm:$0xff]  ;;  %v2095_v61 = vld [vmem:[%s884_s4 + $0x8] sm:$0x3]  ;;  %s6926_s4 = sld [smem:[#allocation26_spill]] }
 0x66c   : > { %v1580_v16 = vpop.xlane.xlu0 %1579 }
 0x66d   : > { %5858 = vrcp.f32 %v1580_v16 }
 0x670   : > { %v1584_v17 = vpop.permute.xlu0 %1583 }
 0x671   : > { %5330 = vmatpush3.msra.mxu1 %v1584_v17 }
 0x672   : > { %5339 = vmatprep.subr.mxu1 %v5972_v6 }
 0x677   : > { %v5859_v18 = vpop.eup %5858 }
 0x678   : > { %v1582_v13 = vmul.f32 %v5859_v18, %v5857_v14  ;;  %v5034_v18 = vld [vmem:[%s6909_s13] ss:$0 sm:$0xff] }
 0x67a   : > { %5332 = vmatmul.mubr.msk.f32.vlgmr.msra.gmra.mrb[6].mxu1 %vm1020_vm2, %v1582_v13 }
 0x67b   : > { %5340 = vmatpush3.xpose.msk.msra.mxu1 %vm1020_vm2, %v1736_v19  ;;  %5341 = vmatprep.mubr.msk.f32.mxu1 %vm5971_vm0, %v5972_v6 }
 0x67c   : > { %5349 = vmatprep.subr.mxu1 %v5972_v6 }
 0x67e   : > { %5342 = vmatmul.mubr.msk.f32.vlgmr.msra.gmra.mrb[8].mxu1 %vm1020_vm2, %v1734_v20 }
 0x67f   : > { %5351 = vmatprep.mubr.msk.f32.mxu1 %vm5971_vm0, %v5972_v6 }
 0x74d   : > { %v1655_v22 = vpop.f32.mrb[6].mxu1 }
 0x74e   : > { %v5333_v24 = vpop.f32.mrb[7].mxu1  ;;  %5337 = vmatmul.mubr.msk.f32.vlgmr.msra.gmra.mrb[10].mxu0 %vm1020_vm2, %v1655_v22 }
 0x74f   : > { %5346 = vmatprep.mubr.msk.f32.mxu0 %vm5971_vm0, %v5972_v6 }
 0x751   : > { %v1807_v25 = vpop.f32.mrb[8].mxu1 }
 0x752   : > { %v1808_v27 = vadd.f32 %v1807_v25, %v6234_v26  ;;  %v5343_v28 = vpop.f32.mrb[9].mxu1  ;;  %v1014_v26 = vld [vmem:[%s6850_s18 + $0x18] sm:$0xff] }
 0x753   : > { %5350 = vmatpush3.msra.mxu1 %v1014_v26  ;;  %v5032_v28 = vld [vmem:[%s6913_s11] ss:$0 sm:$0xff]  ;;  %s6914_s11 = sld [smem:[#allocation14_spill]] }
 0x754   : > { %v1811_v29 = vsel %vm1020_vm2, %v1808_v27, -inf  ;;  %v5037_v26 = vld [vmem:[%s6906_s12 + $0x20] sm:$0xff] }
 0x755   : > { %1812 = vmax.xlane.f32.xlu0 %v1811_v29 }
 0x759   : > { %s889_s28 = scalar_lea.vmem %s6914_s11, %s6328_s5  ;;  %s4850_s11 = scalar_lea.sflag [#allocation3], %s873_s26 }
 0x76b   : > { %1822 = vrot.lane.b32.xlu0 %v6206_v11, %s5983_s9  ;;  %s6920_s9 = sld [smem:[#allocation15_spill]] }
 0x771   : > { %s894_s7 = scalar_lea.vmem %s6920_s9, %s6328_s5 }
 0x7e2   : > { %v1813_v30 = vpop.xlane.xlu0 %1812 }
 0x7e3   : > { %v1814_v31 = vsub.f32 %v1808_v27, %v1813_v30 }
 0x7e5   : > { %v1815_v32 = vmul.f32 1.442695, %v1814_v31 }
 0x7e6   : > { %v1823_v33 = vpop.permute.xlu0 %1822 }
 0x7e7   : > { %5860 = vpow2.f32 %v1815_v32  ;;  %5345 = vmatpush3.msra.mxu0 %v1823_v33 }
 0x7e8   : > { %5608 = vmatprep.subr.bf16.mxu0 %v5970_v3 }
 0x7f1   : > { %v5861_v34 = vpop.eup %5860 }
 0x7f2   : > { %v1817_v35 = vsel %vm1020_vm2, %v5861_v34, 0.0 }
 0x7f3   : > { %1818 = vadd.xlane.f32.xlu1 %v1817_v35 }
 0x821   : > { %v1728_v36 = vpop.f32.mrb[10].mxu0 }
 0x822   : > { %v1732_v37 = vadd.f32 %v1728_v36, %v1491_v0  ;;  %v5338_v11 = vpop.f32.mrb[11].mxu0  ;;  %v5609_v0 = vpack.c.bf16 %v2011_v63, %v2010_v62  ;;  %v5038_v36 = vld [vmem:[%s6906_s12 + $0x28] sm:$0xff] }
 0x823   : > { %v5622_v11 = vpack.c.bf16 %v5038_v36, %v5037_v26 }
 0x880   : > { %v1819_v38 = vpop.xlane.xlu1 %1818 }
 0x881   : > { %5862 = vrcp.f32 %v1819_v38  ;;  %v5040_v38 = vld [vmem:[%s6906_s12 + $0x38] sm:$0xff] }
 0x88b   : > { %v5863_v39 = vpop.eup %5862 }
 0x88c   : > { %v1821_v40 = vmul.f32 %v5863_v39, %v5861_v34  ;;  %v2188_v39 = vld [vmem:[%s889_s28] sm:$0xff] }
 0x88e   : > { %5347 = vmatmul.mubr.msk.f32.vlgmr.msra.gmra.mrb[12].mxu0 %vm1020_vm2, %v1821_v40 }
 0x88f   : > { %5362 = vmatprep.mubr.msk.f32.mxu0 %vm5971_vm0, %v5972_v6  ;;  %5610 = vmatpush3.bf16.msra.mxu0 %v5609_v0 }
 0x890   : > { %5611 = vmatprep.subr.bf16.mxu0 %v5970_v3 }
 0x893   : > { %5613 = vmatpush3.bf16.msra.mxu0 %v5612_v4 }
 0x894   : > { %5623 = vmatprep.subr.bf16.mxu0 %v5622_v11 }
 0x961   : > { %v1894_v41 = vpop.f32.mrb[12].mxu0 }
 0x962   : > { %v5348_v42 = vpop.f32.mrb[13].mxu0  ;;  %5352 = vmatmul.mubr.msk.f32.vlgmr.msra.gmra.mrb[10].mxu1 %vm1020_vm2, %v1894_v41  ;;  %v2189_v41 = vld [vmem:[%s889_s28 + $0x8] sm:$0x3]  ;;  %s6916_s28 = smov 112  }
 0x963   : > { %5373 = vmatprep.mubr.msk.f32.mxu1 %vm937_vm1, %v2094_v60 }
 0xa35   : > { %v1967_v44 = vpop.f32.mrb[10].mxu1 }
 0xa36   : > { %v1971_v45 = vadd.f32 %v1967_v44, %v1732_v37  ;;  %v5353_v46 = vpop.f32.mrb[11].mxu1  ;;  %v5039_v37 = vld [vmem:[%s6906_s12 + $0x30] sm:$0xff] }
 0xa37   : > { %v5626_v40 = vpack.c.bf16 %v5040_v38, %v5039_v37 }
 0xa38   : > { %v1978_v47 = vadd.f32 %v5029_v43, %v1971_v45  ;;  %v2284_v43 = vld [vmem:[%s905_s10] sm:$0x1]  ;;  %s899_s10 = scalar_lea.vmem %s6921_s2, %s6328_s5  ;;  %s6922_s5 = sld [smem:[#allocation19_spill]] }
 0xa39   : > { %v2285_v44 = vsub.f32 1.0, %v2284_v43  ;;  %s5001_s2 = sshll.u32 %s873_s26, 3 }
 0xa3a   : > { %v1979_v48 = vadd.f32 %v1978_v47, %v6196_v8  ;;  %v5614_v8 = vpack.c.bf16 %v2097_v56, %v2096_v55  ;;  %s875_s0 = scalar_lea.vmem [#allocation2], %s5001_s2 }
 0xa3b   : > { %v2286_v45 = vmul.f32 -1e+09, %v2285_v44  ;;  %s4863_s9 = sshll.u32 %s875_s0, 4  ;;  %s6791_s9 = int_to_ptr.vmem [resolvable:$true] %s4863_s9 }
 0xa3c   : > { %v1980_v49 = vsel %vm937_vm1, %v1979_v48, 0.0  ;;  %5615 = vmatprep.subr.bf16.mxu1 %v5614_v8 }
 0xa3d   : > { %1981 = vadd.xlane.f32.xlu1 %v1980_v49  ;;  %5617 = vmatpush3.bf16.msra.mxu1 %v5614_v8  ;;  %v6417_v46 = vrot.slane %v2286_v45, %v6230_v23 }
 0xa3e   : > { %5619 = vmatprep.subr.bf16.mxu1 %v5618_v59  ;;  %s908_s1 = scalar_lea.vmem %s6922_s5, %s6189_s30  ;;  %s5135_s30 = sshll.u32 %s6142_s8, 7 }
 0xa3f   : > { %s6789_s27 = scalar_lea.hbm %s6926_s4, %s5135_s30  ;;  %s5985_s8 = smov [#allocation2]  }
 0xa41   : > { %5621 = vmatpush3.bf16.msra.mxu1 %v5618_v59 }
 0xa42   : > { %5630 = vmatprep.subr.bf16.mxu1 %v5970_v3 }
 0xa44   : > { %5374 = vmatmul.mubr.msk.f32.vlgmr.msra.gmra.mrb[12].mxu1 %vm937_vm1, %v2095_v61 }
 0xa45   : > { %5391 = vmatprep.mubr.msk.f32.mxu1 %vm5971_vm0, %v5972_v6 }
 0xaca   : > { %v1982_v50 = vpop.xlane.xlu1 %1981 }
 0xacb   : > { %v1984_v51 = vmul.f32 0.03125, %v1982_v50 }
 0xacd   : > { %v1985_v52 = vsub.f32 %v1979_v48, %v1984_v51 }
 0xacf   : > { %v1986_v53 = vmul.f32 %v1985_v52, %v1985_v52 }
 0xad1   : > { %v1987_v54 = vsel %vm937_vm1, %v1986_v53, 0.0 }
 0xad2   : > { %1988 = vadd.xlane.f32.xlu1 %v1987_v54 }
 0xb17   : > { %v5375_v19 = vpop.f32.mrb[12].mxu1 }
 0xb18   : > { %v2185_v13 = vadd.f32 %v5375_v19, %v5034_v18  ;;  %v2179_v20 = vpop.f32.mrb[13].mxu1 }
 0xb19   : > { %v2180_v21 = vadd.f32 %v5034_v18, %v2179_v20 }
 0xb1b   : > { %v5631_v24 = vpack.c.bf16 %v2185_v13, %v2180_v21  ;;  %v6371_v25 = vpack.i.bf16 %v2185_v13, %v2180_v21 }
 0xb1d   : > { %5789 = vrot.lane.b32.xlu1 %v6371_v25, %s6912_s6  ;;  %5633 = vmatpush3.bf16.xpose.msk.msra.mxu1 %vm6367_vm4, %v5631_v24 }
 0xb1e   : > { %5638 = vmatprep.subr.bf16.mxu1 %v5970_v3 }
 0xb5f   : > { %v1989_v5 = vpop.xlane.xlu1 %1988 }
 0xb60   : > { %v1990_v7 = vmul.f32 0.03125, %v1989_v5 }
 0xb62   : > { %v1991_v9 = vadd.f32 1e-12, %v1990_v7 }
 0xb64   : > { %5864 = vrsqrt.f32 %v1991_v9 }
 0xb6e   : > { %v5865_v10 = vpop.eup %5864 }
 0xb6f   : > { %v1993_v14 = vmul.f32 %v5865_v10, %v1985_v52 }
 0xb71   : > { %v2001_v16 = vmul.f32 %v5030_v12, %v1993_v14 }
 0xb73   : > { %v6358_v17 = vadd.f32 %v5031_v15, %v2001_v16  ;;  %v5045_v16 = vld [vmem:[%s6850_s18 + $0x20] sm:$0xff] }
 0xb75   : > { %5363 = vmatmul.mubr.msk.f32.vlgmr.msra.gmra.mrb[14].mxu0 %vm937_vm1, %v6358_v17 }
 0xb76   : > { %5384 = vmatprep.mubr.msk.f32.mxu0 %vm937_vm1, %v2188_v39  ;;  %5625 = vmatpush3.bf16.msra.mxu0 %v5622_v11 }
 0xb77   : > { %5627 = vmatprep.subr.bf16.mxu0 %v5626_v40 }
 0xb7a   : > { %5629 = vmatpush3.bf16.msra.mxu0 %v5626_v40 }
 0xb7b   : > { %5634 = vmatprep.subr.bf16.mxu0 %v5970_v3 }
 0xb7d   : > { %5385 = vmatmul.mubr.msk.f32.vlgmr.msra.gmra.mrb[16].mxu0 %vm937_vm1, %v2189_v41 }
 0xb7e   : > { %5398 = vmatprep.mubr.msk.f32.mxu0 %vm5971_vm0, %v5972_v6 }
 0xb8f   : > { %v5790_v27 = vpop.permute.xlu1 %5789 }
 0xb90   : > { %v5792_v29 = vunpack.i.h.bf16 %v5790_v27  ;;  %v5791_v30 = vunpack.i.l.bf16 %v5790_v27  ;;  %v5046_v27 = vld [vmem:[%s6850_s18 + $0x28] sm:$0xff] }
 0xb92   : > { %v5639_v34 = vpack.c.bf16 %v5792_v29, %v5791_v30 }
 0xc48   : > { %v2090_v31 = vpop.f32.mrb[14].mxu0 }
 0xc49   : > { %v2091_v32 = vadd.f32 %v5032_v28, %v2090_v31  ;;  %v5364_v33 = vpop.f32.mrb[15].mxu0 }
 0xc4b   : > { %v2294_v35 = vmul.f32 0.35355338, %v2091_v32 }
 0xc4d   : > { %2469 = vrot.lane.b32.xlu0 %v2294_v35, %s6912_s6  ;;  %5392 = vmatmul.mubr.msk.f32.vlgmr.msra.gmra.mrb[14].mxu1 %vm1020_vm2, %v2294_v35 }
 0xc4e   : > { %5641 = vmatpush3.bf16.xpose.msk.msra.mxu1 %vm6367_vm4, %v5639_v34  ;;  %5405 = vmatprep.mubr.msk.f32.mxu1 %vm5971_vm0, %v5972_v6 }
 0xc4f   : > { %5420 = vmatprep.subr.mxu1 %v5972_v6 }
 0xc50   : > { %v5386_v57 = vpop.f32.mrb[16].mxu0 }
 0xc51   : > { %v2281_v59 = vadd.f32 %v5386_v57, %v5042_v58  ;;  %v2275_v60 = vpop.f32.mrb[17].mxu0 }
 0xc52   : > { %v2276_v61 = vadd.f32 %v5042_v58, %v2275_v60 }
 0xc54   : > { %v5635_v62 = vpack.c.bf16 %v2281_v59, %v2276_v61  ;;  %v6430_v63 = vpack.i.bf16 %v2281_v59, %v2276_v61 }
 0xc56   : > { %5637 = vmatpush3.bf16.msk.msra.mxu0 %vm6434_vm8, %v5635_v62 }
 0xc57   : > { %5642 = vmatprep.subr.bf16.mxu0 %v5970_v3 }
 0xcbf   : > { %v2470_v42 = vpop.permute.xlu0 %2469 }
 0xcc0   : > { %5406 = vmatmul.mubr.msk.f32.vlgmr.msra.gmra.mrb[16].mxu1 %vm1020_vm2, %v2470_v42 }
 0xcc1   : > { %5422 = vmatprep.mubr.msk.f32.mxu1 %vm5971_vm0, %v5972_v6  ;;  %5421 = vmatpush3.msra.mxu1 %v5045_v16 }
 0xcc2   : > { %5650 = vmatprep.subr.bf16.mxu1 %v5970_v3 }
 0xd20   : > { %v2376_v47 = vpop.f32.mrb[14].mxu1 }
 0xd21   : > { %v2377_v48 = vadd.f32 %v2376_v47, %v6417_v46  ;;  %v5393_v49 = vpop.f32.mrb[15].mxu1 }
 0xd23   : > { %v2381_v50 = vsel %vm2380_vm5, %v2377_v48, -inf }
 0xd24   : > { %2382 = vmax.xlane.f32.xlu0 %v2381_v50 }
 0xd93   : > { %v2547_v51 = vpop.f32.mrb[16].mxu1 }
 0xd94   : > { %v2548_v52 = vadd.f32 %v2547_v51, %v6417_v46  ;;  %v5407_v53 = vpop.f32.mrb[17].mxu1 }
 0xd96   : > { %v2551_v54 = vsel %vm2380_vm5, %v2548_v52, -inf }
 0xd97   : > { %2552 = vmax.xlane.f32.xlu1 %v2551_v54 }
 0xda8   : > { %5799 = vrot.lane.b32.xlu1 %v6371_v25, %s6916_s28 }
 0xdac   : > { %2789 = vrot.lane.b32.xlu1 %v2294_v35, %s6916_s28 }
 0xdb0   : > { %3036 = vrot.lane.b32.xlu1 %v2294_v35, %s6917_s29 }
 0xdb1   : > { %v2383_v55 = vpop.xlane.xlu0 %2382 }
 0xdb2   : > { %v2384_v56 = vsub.f32 %v2377_v48, %v2383_v55 }
 0xdb4   : > { %v2385_v8 = vmul.f32 1.442695, %v2384_v56 }
 0xdb6   : > { %5866 = vpow2.f32 %v2385_v8 }
 0xdc0   : > { %v5867_v0 = vpop.eup %5866 }
 0xdc1   : > { %v2387_v1 = vsel %vm2380_vm5, %v5867_v0, 0.0 }
 0xdc2   : > { %2388 = vadd.xlane.f32.xlu0 %v2387_v1 }
 0xe24   : > { %v2553_v4 = vpop.xlane.xlu1 %2552 }
 0xe25   : > { %v2554_v5 = vsub.f32 %v2548_v52, %v2553_v4 }
 0xe27   : > { %v2555_v7 = vmul.f32 1.442695, %v2554_v5 }
 0xe28   : > { %v5800_v30 = vpop.permute.xlu1 %5799 }
 0xe29   : > { %5868 = vpow2.f32 %v2555_v7  ;;  %v5802_v31 = vunpack.i.h.bf16 %v5800_v30  ;;  %v5801_v32 = vunpack.i.l.bf16 %v5800_v30 }
 0xe2b   : > { %v5647_v33 = vpack.c.bf16 %v5802_v31, %v5801_v32 }
 0xe2c   : > { %v2790_v11 = vpop.permute.xlu1 %2789 }
 0xe30   : > { %v3037_v39 = vpop.permute.xlu1 %3036 }
 0xe33   : > { %v5869_v9 = vpop.eup %5868 }
 0xe34   : > { %v2557_v10 = vsel %vm2380_vm5, %v5869_v9, 0.0 }
 0xe35   : > { %2558 = vadd.xlane.f32.xlu0 %v2557_v10  ;;  %v5047_v10 = vld [vmem:[%s6850_s18 + $0x30] sm:$0xff] }
 0xe4b   : > { %5794 = vrot.lane.b32.xlu0 %v6430_v63, %s6912_s6 }
 0xe4f   : > { %v2389_v12 = vpop.xlane.xlu0 %2388  ;;  %5804 = vrot.lane.b32.xlu0 %v6371_v25, %s6917_s29 }
 0xe50   : > { %5870 = vrcp.f32 %v2389_v12 }
 0xe5a   : > { %v5871_v14 = vpop.eup %5870 }
 0xe5b   : > { %v2391_v15 = vmul.f32 %v5871_v14, %v5867_v0 }
 0xe5d   : > { %5399 = vmatmul.mubr.msk.f32.vlgmr.msra.gmra.mrb[18].mxu0 %vm2380_vm5, %v2391_v15 }
 0xe5e   : > { %5412 = vmatprep.mubr.msk.f32.mxu0 %vm5971_vm0, %v5972_v6 }
 0xec2   : > { %v2559_v18 = vpop.xlane.xlu0 %2558 }
 0xec3   : > { %5872 = vrcp.f32 %v2559_v18 }
 0xec6   : > { %v5795_v19 = vpop.permute.xlu0 %5794 }
 0xec7   : > { %v5797_v13 = vunpack.i.h.bf16 %v5795_v19  ;;  %v5796_v20 = vunpack.i.l.bf16 %v5795_v19 }
 0xec9   : > { %v5643_v21 = vpack.c.bf16 %v5797_v13, %v5796_v20 }
 0xeca   : > { %v5805_v35 = vpop.permute.xlu0 %5804 }
 0xecb   : > { %5645 = vmatpush3.bf16.msk.msra.mxu0 %vm6434_vm8, %v5643_v21  ;;  %v5807_v36 = vunpack.i.h.bf16 %v5805_v35  ;;  %v5806_v37 = vunpack.i.l.bf16 %v5805_v35  ;;  %v5048_v21 = vld [vmem:[%s6850_s18 + $0x38] sm:$0xff] }
 0xecc   : > { %5415 = vmatprep.subr.mxu0 %v5972_v6 }
 0xecd   : > { %v5873_v24 = vpop.eup %5872  ;;  %v5655_v38 = vpack.c.bf16 %v5807_v36, %v5806_v37 }
 0xece   : > { %v2561_v25 = vmul.f32 %v5873_v24, %v5869_v9 }
 0xed0   : > { %5413 = vmatmul.mubr.msk.f32.vlgmr.msra.gmra.mrb[20].mxu0 %vm2380_vm5, %v2561_v25 }
 0xed1   : > { %5416 = vmatpush3.msra.mxu0 %v5046_v27  ;;  %5417 = vmatprep.mubr.msk.f32.mxu0 %vm5971_vm0, %v5972_v6 }
 0xed2   : > { %5646 = vmatprep.subr.bf16.mxu0 %v5970_v3 }
 0xf30   : > { %v2465_v28 = vpop.f32.mrb[18].mxu0 }
 0xf31   : > { %v5400_v29 = vpop.f32.mrb[19].mxu0  ;;  %5423 = vmatmul.mubr.msk.f32.vlgmr.msra.gmra.mrb[18].mxu1 %vm1020_vm2, %v2465_v28 }
 0xf32   : > { %5436 = vmatprep.mubr.msk.f32.mxu1 %vm5971_vm0, %v5972_v6  ;;  %v5074_v29 = vld [vmem:[%s6851_s19 + $0x1] ss:$0 sm:$0xff] }
 0xfa3   : > { %v2639_v34 = vpop.f32.mrb[20].mxu0 }
 0xfa4   : > { %v5414_v26 = vpop.f32.mrb[21].mxu0  ;;  %5418 = vmatmul.mubr.msk.f32.vlgmr.msra.gmra.mrb[22].mxu0 %vm1020_vm2, %v2639_v34 }
 0xfa5   : > { %5649 = vmatpush3.bf16.xpose.msk.msra.mxu0 %vm6367_vm4, %v5647_v33  ;;  %5429 = vmatprep.mubr.msk.f32.mxu0 %vm5971_vm0, %v5972_v6 }
 0xfa6   : > { %5654 = vmatprep.subr.bf16.mxu0 %v5970_v3 }
 0xfac   : > { %5430 = vmatmul.mubr.msk.f32.vlgmr.msra.gmra.mrb[24].mxu0 %vm1020_vm2, %v2790_v11 }
 0xfad   : > { %5657 = vmatpush3.bf16.xpose.msk.msra.mxu0 %vm6367_vm4, %v5655_v38  ;;  %5448 = vmatprep.mubr.msk.f32.mxu0 %vm5971_vm0, %v5972_v6 }
 0xfae   : > { %5662 = vmatprep.subr.bf16.mxu0 %v5970_v3 }
 0xfb4   : > { %5449 = vmatmul.mubr.msk.f32.vlgmr.msra.gmra.mrb[26].mxu0 %vm1020_vm2, %v3037_v39  ;;  %v3408_v39 = vld [vmem:[%s6848_s16] sm:$0xff] }
 0xfb5   : > { %5471 = vmatprep.mubr.msk.f32.mxu0 %vm5971_vm0, %v5972_v6 }
0x1004   : > { %v2785_v40 = vpop.f32.mrb[18].mxu1 }
0x1005   : > { %v5424_v41 = vpop.f32.mrb[19].mxu1 }
0x1006   : > { %v3410_v41 = vld [vmem:[%s6848_s16 + $0x10] sm:$0xff] }
0x1077   : > { %v2712_v42 = vpop.f32.mrb[22].mxu0 }
0x1078   : > { %v2786_v43 = vadd.f32 %v2785_v40, %v2712_v42  ;;  %v5419_v44 = vpop.f32.mrb[23].mxu0  ;;  %v3409_v40 = vld [vmem:[%s6848_s16 + $0x8] sm:$0xff]  ;;  %v3411_v42 = vld [vmem:[%s6848_s16 + $0x18] sm:$0xff] }
0x1079   : > { %v3406_v44 = vld [vmem:[%s894_s7] sm:$0xff] }
0x107f   : > { %v2867_v45 = vpop.f32.mrb[24].mxu0 }
0x1080   : > { %v2868_v47 = vadd.f32 %v2867_v45, %v6417_v46  ;;  %v5431_v48 = vpop.f32.mrb[25].mxu0  ;;  %v3407_v45 = vld [vmem:[%s894_s7 + $0x8] sm:$0xf] }
0x1081   : > { %v3323_v48 = vld [vmem:[%s6846_s14 + $0x8] sm:$0xff] }
0x1082   : > { %v2871_v49 = vsel %vm2380_vm5, %v2868_v47, -inf }
0x1083   : > { %2872 = vmax.xlane.f32.xlu0 %v2871_v49 }
0x1087   : > { %v3114_v50 = vpop.f32.mrb[26].mxu0 }
0x1088   : > { %v5450_v51 = vpop.f32.mrb[27].mxu0  ;;  %v3115_v59 = vadd.f32 %v3114_v50, %v6417_v46  ;;  %v3324_v50 = vld [vmem:[%s6846_s14 + $0x10] sm:$0xff] }
0x1089   : > { %v3325_v51 = vld [vmem:[%s6846_s14 + $0x18] sm:$0xff] }
0x108a   : > { %v3118_v61 = vsel %vm2380_vm5, %v3115_v59, -inf }
0x1099   : > { %5809 = vrot.lane.b32.xlu0 %v6430_v63, %s6916_s28 }
0x1110   : > { %v2873_v52 = vpop.xlane.xlu0 %2872 }
0x1111   : > { %v2874_v53 = vsub.f32 %v2868_v47, %v2873_v52  ;;  %v3322_v47 = vld [vmem:[%s6846_s14] sm:$0xff]  ;;  %v5666_v52 = vpack.c.bf16 %v3325_v51, %v3324_v50 }
0x1112   : > { %v5663_v49 = vpack.c.bf16 %v3323_v48, %v3322_v47 }
0x1113   : > { %v2875_v54 = vmul.f32 1.442695, %v2874_v53 }
0x1114   : > { %v5810_v55 = vpop.permute.xlu0 %5809  ;;  %5664 = vmatpush3.bf16.msra.mxu0 %v5663_v49 }
0x1115   : > { %5874 = vpow2.f32 %v2875_v54  ;;  %v5812_v56 = vunpack.i.h.bf16 %v5810_v55  ;;  %v5811_v8 = vunpack.i.l.bf16 %v5810_v55  ;;  %5665 = vmatprep.subr.bf16.mxu0 %v5970_v3 }
0x1117   : > { %v5651_v57 = vpack.c.bf16 %v5812_v56, %v5811_v8  ;;  %v5076_v8 = vld [vmem:[%s6852_s20 + $0x1] ss:$0 sm:$0xff] }
0x1118   : > { %5667 = vmatpush3.bf16.msra.mxu0 %v5666_v52 }
0x1119   : > { %5653 = vmatpush3.bf16.msk.msra.mxu1 %vm6434_vm8, %v5651_v57 }
0x111a   : > { %5439 = vmatprep.subr.mxu1 %v5972_v6 }
0x111f   : > { %v5875_v58 = vpop.eup %5874 }
0x1120   : > { %v2877_v60 = vsel %vm2380_vm5, %v5875_v58, 0.0 }
0x1121   : > { %2878 = vadd.xlane.f32.xlu1 %v2877_v60 }
0x1125   : > { %3119 = vmax.xlane.f32.xlu1 %v3118_v61  ;;  %v5081_v61 = vld [vmem:[%s6849_s17] ss:$0 sm:$0xff] }
0x11ae   : > { %v2879_v62 = vpop.xlane.xlu1 %2878 }
0x11af   : > { %5876 = vrcp.f32 %v2879_v62 }
0x11b2   : > { %v3120_v0 = vpop.xlane.xlu1 %3119 }
0x11b3   : > { %v3121_v1 = vsub.f32 %v3115_v59, %v3120_v0 }
0x11b5   : > { %v3122_v4 = vmul.f32 1.442695, %v3121_v1 }
0x11b7   : > { %5878 = vpow2.f32 %v3122_v4 }
0x11b9   : > { %v5877_v5 = vpop.eup %5876 }
0x11ba   : > { %v2881_v7 = vmul.f32 %v5877_v5, %v5875_v58  ;;  %v5078_v58 = vld [vmem:[%s6853_s21 + $0x1] ss:$0 sm:$0xff] }
0x11bc   : > { %5437 = vmatmul.mubr.msk.f32.vlgmr.msra.gmra.mrb[20].mxu1 %vm2380_vm5, %v2881_v7 }
0x11bd   : > { %5441 = vmatprep.mubr.msk.f32.mxu1 %vm5971_vm0, %v5972_v6  ;;  %5440 = vmatpush3.msra.mxu1 %v5047_v10 }
0x11be   : > { %5658 = vmatprep.subr.bf16.mxu1 %v5970_v3 }
0x11c1   : > { %v5879_v46 = vpop.eup %5878 }
0x11c2   : > { %v3124_v9 = vsel %vm2380_vm5, %v5879_v46, 0.0 }
0x11c3   : > { %3125 = vadd.xlane.f32.xlu1 %v3124_v9  ;;  %v5079_v9 = vld [vmem:[%s6847_s15] ss:$0 sm:$0xff] }
0x11d4   : > { %5814 = vrot.lane.b32.xlu1 %v6430_v63, %s6917_s29 }
0x1250   : > { %v3126_v12 = vpop.xlane.xlu1 %3125 }
0x1251   : > { %5880 = vrcp.f32 %v3126_v12 }
0x1254   : > { %v5815_v14 = vpop.permute.xlu1 %5814 }
0x1255   : > { %v5817_v15 = vunpack.i.h.bf16 %v5815_v14  ;;  %v5816_v16 = vunpack.i.l.bf16 %v5815_v14 }
0x1257   : > { %v5659_v19 = vpack.c.bf16 %v5817_v15, %v5816_v16 }
0x125b   : > { %v5881_v18 = vpop.eup %5880 }
0x125c   : > { %v3128_v63 = vmul.f32 %v5881_v18, %v5879_v46 }
0x128f   : > { %v2958_v13 = vpop.f32.mrb[20].mxu1 }
0x1290   : > { %v5438_v20 = vpop.f32.mrb[21].mxu1  ;;  %5442 = vmatmul.mubr.msk.f32.vlgmr.msra.gmra.mrb[22].mxu1 %vm1020_vm2, %v2958_v13  ;;  %v5084_v13 = vld [vmem:[%s6848_s16 + $0x20] sm:$0xff] }
0x1291   : > { %5661 = vmatpush3.bf16.msk.msra.mxu1 %vm6434_vm8, %v5659_v19  ;;  %5455 = vmatprep.mubr.msk.f32.mxu1 %vm5971_vm0, %v5972_v6  ;;  %v5085_v20 = vld [vmem:[%s6848_s16 + $0x28] sm:$0xff] }
0x1292   : > { %5458 = vmatprep.subr.mxu1 %v5972_v6 }
0x1294   : > { %5456 = vmatmul.mubr.msk.f32.vlgmr.msra.gmra.mrb[24].mxu1 %vm2380_vm5, %v3128_v63  ;;  %v5086_v63 = vld [vmem:[%s6848_s16 + $0x30] sm:$0xff] }
0x1295   : > { %5460 = vmatprep.mubr.msk.f32.mxu1 %vm5971_vm0, %v5972_v6  ;;  %5459 = vmatpush3.msra.mxu1 %v5048_v21  ;;  %v5676_v21 = vpack.c.bf16 %v5085_v20, %v5084_v13 }
0x1297   : > { %5677 = vmatprep.subr.bf16.mxu0 %v5676_v21 }
0x1363   : > { %v3031_v24 = vpop.f32.mrb[22].mxu1 }
0x1364   : > { %v3035_v25 = vadd.f32 %v3031_v24, %v2786_v43  ;;  %v5443_v2 = vpop.f32.mrb[23].mxu1  ;;  %v5672_v43 = vpack.c.bf16 %v3411_v42, %v3410_v41  ;;  %v5087_v24 = vld [vmem:[%s6848_s16 + $0x38] sm:$0xff]  ;;  %v5089_v41 = vld [vmem:[%s6849_s17 + $0x1] ss:$0 sm:$0xff] }
0x1365   : > { %v5680_v2 = vpack.c.bf16 %v5087_v24, %v5086_v63 }
0x1367   : > { %v3205_v27 = vpop.f32.mrb[24].mxu1 }
0x1368   : > { %v5457_v28 = vpop.f32.mrb[25].mxu1  ;;  %5461 = vmatmul.mubr.msk.f32.vlgmr.msra.gmra.mrb[26].mxu1 %vm1020_vm2, %v3205_v27  ;;  %v3501_v27 = vld [vmem:[%s899_s10 + $0x8] sm:$0xf] }
0x1369   : > { %5482 = vmatprep.mubr.msk.f32.mxu1 %vm937_vm1, %v3406_v44 }
0x143b   : > { %v3278_v30 = vpop.f32.mrb[26].mxu1 }
0x143c   : > { %v3282_v31 = vadd.f32 %v3278_v30, %v3035_v25  ;;  %v5462_v32 = vpop.f32.mrb[27].mxu1  ;;  %v3500_v25 = vld [vmem:[%s899_s10] sm:$0xff] }
0x143e   : > { %v3289_v33 = vadd.f32 %v5074_v29, %v3282_v31  ;;  %v3596_v29 = vld [vmem:[%s908_s1] sm:$0x1] }
0x143f   : > { %v3597_v30 = vsub.f32 1.0, %v3596_v29 }
0x1440   : > { %v3290_v34 = vadd.f32 %v3289_v33, %v6358_v17  ;;  %v5668_v17 = vpack.c.bf16 %v3409_v40, %v3408_v39 }
0x1441   : > { %v3598_v31 = vmul.f32 -1e+09, %v3597_v30 }
0x1442   : > { %v3291_v35 = vsel %vm937_vm1, %v3290_v34, 0.0  ;;  %5669 = vmatprep.subr.bf16.mxu1 %v5668_v17 }
0x1443   : > { %3292 = vadd.xlane.f32.xlu0 %v3291_v35  ;;  %5671 = vmatpush3.bf16.msra.mxu1 %v5668_v17  ;;  %v6614_v32 = vrot.slane %v3598_v31, %v6230_v23 }
0x1444   : > { %5673 = vmatprep.subr.bf16.mxu1 %v5672_v43 }
0x1447   : > { %5675 = vmatpush3.bf16.msra.mxu1 %v5672_v43 }
0x1448   : > { %5684 = vmatprep.subr.bf16.mxu1 %v5970_v3 }
0x144a   : > { %5483 = vmatmul.mubr.msk.f32.vlgmr.msra.gmra.mrb[28].mxu1 %vm937_vm1, %v3407_v45 }
0x144b   : > { %5500 = vmatprep.mubr.msk.f32.mxu1 %vm5971_vm0, %v5972_v6 }
0x14d0   : > { %v3293_v26 = vpop.xlane.xlu0 %3292 }
0x14d1   : > { %v3294_v36 = vmul.f32 0.03125, %v3293_v26 }
0x14d3   : > { %v3295_v37 = vsub.f32 %v3290_v34, %v3294_v36 }
0x14d5   : > { %v3296_v11 = vmul.f32 %v3295_v37, %v3295_v37 }
0x14d7   : > { %v3297_v38 = vsel %vm937_vm1, %v3296_v11, 0.0 }
0x14d8   : > { %3298 = vadd.xlane.f32.xlu1 %v3297_v38 }
0x151d   : > { %v5484_v62 = vpop.f32.mrb[28].mxu1 }
0x151e   : > { %v3497_v0 = vadd.f32 %v5484_v62, %v5081_v61  ;;  %v3491_v1 = vpop.f32.mrb[29].mxu1 }
0x151f   : > { %v3492_v4 = vadd.f32 %v5081_v61, %v3491_v1 }
0x1521   : > { %v5685_v5 = vpack.c.bf16 %v3497_v0, %v3492_v4  ;;  %v5818_v7 = vpack.i.bf16 %v3497_v0, %v3492_v4 }
0x1523   : > { %5819 = vrot.lane.b32.xlu0 %v5818_v7, %s6912_s6  ;;  %5687 = vmatpush3.bf16.xpose.msk.msra.mxu1 %vm6367_vm4, %v5685_v5 }
0x1524   : > { %5692 = vmatprep.subr.bf16.mxu1 %v5970_v3 }
0x1565   : > { %v3299_v53 = vpop.xlane.xlu1 %3298 }
0x1566   : > { %v3300_v54 = vmul.f32 0.03125, %v3299_v53 }
0x1568   : > { %v3301_v55 = vadd.f32 1e-12, %v3300_v54 }
0x156a   : > { %5882 = vrsqrt.f32 %v3301_v55 }
0x1574   : > { %v5883_v56 = vpop.eup %5882 }
0x1575   : > { %v3303_v57 = vmul.f32 %v5883_v56, %v3295_v37 }
0x1577   : > { %v3312_v59 = vmul.f32 %v5076_v8, %v3303_v57 }
0x1579   : > { %v6560_v60 = vadd.f32 %v5078_v58, %v3312_v59  ;;  %v5092_v58 = vld [vmem:[%s6850_s18 + $0x40] sm:$0xff] }
0x157b   : > { %5472 = vmatmul.mubr.msk.f32.vlgmr.msra.gmra.mrb[28].mxu0 %vm937_vm1, %v6560_v60 }
0x157c   : > { %5493 = vmatprep.mubr.msk.f32.mxu0 %vm937_vm1, %v3500_v25  ;;  %5679 = vmatpush3.bf16.msra.mxu0 %v5676_v21 }
0x157d   : > { %5681 = vmatprep.subr.bf16.mxu0 %v5680_v2 }
0x1580   : > { %5683 = vmatpush3.bf16.msra.mxu0 %v5680_v2 }
0x1581   : > { %5688 = vmatprep.subr.bf16.mxu0 %v5970_v3 }
0x1583   : > { %5494 = vmatmul.mubr.msk.f32.vlgmr.msra.gmra.mrb[30].mxu0 %vm937_vm1, %v3501_v27 }
0x1584   : > { %5507 = vmatprep.mubr.msk.f32.mxu0 %vm5971_vm0, %v5972_v6 }
0x1595   : > { %v5820_v46 = vpop.permute.xlu0 %5819 }
0x1596   : > { %v5822_v10 = vunpack.i.h.bf16 %v5820_v46  ;;  %v5821_v12 = vunpack.i.l.bf16 %v5820_v46 }
0x1598   : > { %v5693_v18 = vpack.c.bf16 %v5822_v10, %v5821_v12 }
0x164e   : > { %v3402_v14 = vpop.f32.mrb[28].mxu0 }
0x164f   : > { %v3403_v15 = vadd.f32 %v5079_v9, %v3402_v14  ;;  %v5473_v16 = vpop.f32.mrb[29].mxu0 }
0x1651   : > { %v6574_v19 = vmul.f32 0.35355338, %v3403_v15 }
0x1653   : > { %3781 = vrot.lane.b32.xlu1 %v6574_v19, %s6912_s6  ;;  %5501 = vmatmul.mubr.msk.f32.vlgmr.msra.gmra.mrb[30].mxu1 %vm1020_vm2, %v6574_v19 }
0x1654   : > { %5695 = vmatpush3.bf16.xpose.msk.msra.mxu1 %vm6367_vm4, %v5693_v18  ;;  %5514 = vmatprep.mubr.msk.f32.mxu1 %vm5971_vm0, %v5972_v6 }
0x1655   : > { %5529 = vmatprep.subr.mxu1 %v5972_v6 }
0x1656   : > { %v5495_v17 = vpop.f32.mrb[30].mxu0 }
0x1657   : > { %v3593_v42 = vadd.f32 %v5495_v17, %v5089_v41  ;;  %v3587_v43 = vpop.f32.mrb[31].mxu0 }
0x1658   : > { %v3588_v44 = vadd.f32 %v5089_v41, %v3587_v43 }
0x165a   : > { %v5689_v45 = vpack.c.bf16 %v3593_v42, %v3588_v44  ;;  %v6625_v47 = vpack.i.bf16 %v3593_v42, %v3588_v44 }
0x165c   : > { %5691 = vmatpush3.bf16.msk.msra.mxu0 %vm6629_vm11, %v5689_v45 }
0x165d   : > { %5696 = vmatprep.subr.bf16.mxu0 %v5970_v3 }
0x16c5   : > { %v3782_v28 = vpop.permute.xlu1 %3781 }
0x16c6   : > { %5515 = vmatmul.mubr.msk.f32.vlgmr.msra.gmra.mrb[32].mxu1 %vm1020_vm2, %v3782_v28 }
0x16c7   : > { %5531 = vmatprep.mubr.msk.f32.mxu1 %vm5971_vm0, %v5972_v6  ;;  %5530 = vmatpush3.msra.mxu1 %v5092_v58 }
0x16c8   : > { %5704 = vmatprep.subr.bf16.mxu1 %v5970_v3 }
0x1726   : > { %v3688_v33 = vpop.f32.mrb[30].mxu1 }
0x1727   : > { %v3689_v34 = vadd.f32 %v3688_v33, %v6614_v32  ;;  %v5502_v35 = vpop.f32.mrb[31].mxu1 }
0x1729   : > { %v3693_v26 = vsel %vm3692_vm9, %v3689_v34, -inf }
0x172a   : > { %3694 = vmax.xlane.f32.xlu0 %v3693_v26 }
0x1799   : > { %v3859_v36 = vpop.f32.mrb[32].mxu1 }
0x179a   : > { %v3860_v37 = vadd.f32 %v3859_v36, %v6614_v32  ;;  %v5516_v11 = vpop.f32.mrb[33].mxu1 }
0x179c   : > { %v3863_v38 = vsel %vm3692_vm9, %v3860_v37, -inf }
0x179d   : > { %3864 = vmax.xlane.f32.xlu1 %v3863_v38 }
0x17ae   : > { %5829 = vrot.lane.b32.xlu1 %v5818_v7, %s6916_s28 }
0x17b2   : > { %5834 = vrot.lane.b32.xlu1 %v5818_v7, %s6917_s29  ;;  %v5093_v7 = vld [vmem:[%s6850_s18 + $0x48] sm:$0xff] }
0x17b7   : > { %v3695_v23 = vpop.xlane.xlu0 %3694 }
0x17b8   : > { %v3696_v39 = vsub.f32 %v3689_v34, %v3695_v23 }
0x17ba   : > { %v3697_v40 = vmul.f32 1.442695, %v3696_v39 }
0x17bc   : > { %5884 = vpow2.f32 %v3697_v40 }
0x17c6   : > { %v5885_v48 = vpop.eup %5884 }
0x17c7   : > { %v3699_v49 = vsel %vm3692_vm9, %v5885_v48, 0.0 }
0x17c8   : > { %3700 = vadd.xlane.f32.xlu0 %v3699_v49 }
0x182a   : > { %v3865_v51 = vpop.xlane.xlu1 %3864 }
0x182b   : > { %v3866_v52 = vsub.f32 %v3860_v37, %v3865_v51 }
0x182d   : > { %v3867_v53 = vmul.f32 1.442695, %v3866_v52 }
0x182e   : > { %v5830_v10 = vpop.permute.xlu1 %5829 }
0x182f   : > { %5886 = vpow2.f32 %v3867_v53  ;;  %v5832_v12 = vunpack.i.h.bf16 %v5830_v10  ;;  %v5831_v14 = vunpack.i.l.bf16 %v5830_v10  ;;  %v5094_v53 = vld [vmem:[%s6850_s18 + $0x50] sm:$0xff] }
0x1831   : > { %v5701_v15 = vpack.c.bf16 %v5832_v12, %v5831_v14 }
0x1832   : > { %v5835_v18 = vpop.permute.xlu1 %5834 }
0x1833   : > { %v5837_v13 = vunpack.i.h.bf16 %v5835_v18  ;;  %v5836_v20 = vunpack.i.l.bf16 %v5835_v18 }
0x1835   : > { %v5709_v63 = vpack.c.bf16 %v5837_v13, %v5836_v20 }
0x1839   : > { %v5887_v54 = vpop.eup %5886 }
0x183a   : > { %v3869_v55 = vsel %vm3692_vm9, %v5887_v54, 0.0 }
0x183b   : > { %3870 = vadd.xlane.f32.xlu0 %v3869_v55 }
0x1851   : > { %5824 = vrot.lane.b32.xlu0 %v6625_v47, %s6912_s6 }
0x1855   : > { %v3701_v56 = vpop.xlane.xlu0 %3700  ;;  %4101 = vrot.lane.b32.xlu0 %v6574_v19, %s6916_s28 }
0x1856   : > { %5888 = vrcp.f32 %v3701_v56 }
0x1859   : > { %4348 = vrot.lane.b32.xlu0 %v6574_v19, %s6917_s29 }
0x1860   : > { %v5889_v8 = vpop.eup %5888 }
0x1861   : > { %v3703_v57 = vmul.f32 %v5889_v8, %v5885_v48 }
0x1863   : > { %5508 = vmatmul.mubr.msk.f32.vlgmr.msra.gmra.mrb[32].mxu0 %vm3692_vm9, %v3703_v57 }
0x1864   : > { %5521 = vmatprep.mubr.msk.f32.mxu0 %vm5971_vm0, %v5972_v6 }
0x18c8   : > { %v3871_v59 = vpop.xlane.xlu0 %3870 }
0x18c9   : > { %5890 = vrcp.f32 %v3871_v59 }
0x18cc   : > { %v5825_v61 = vpop.permute.xlu0 %5824 }
0x18cd   : > { %v5827_v62 = vunpack.i.h.bf16 %v5825_v61  ;;  %v5826_v0 = vunpack.i.l.bf16 %v5825_v61 }
0x18cf   : > { %v5697_v1 = vpack.c.bf16 %v5827_v62, %v5826_v0  ;;  %v5095_v62 = vld [vmem:[%s6850_s18 + $0x58] sm:$0xff] }
0x18d0   : > { %v4102_v21 = vpop.permute.xlu0 %4101 }
0x18d1   : > { %5699 = vmatpush3.bf16.msk.msra.mxu0 %vm6629_vm11, %v5697_v1 }
0x18d2   : > { %5524 = vmatprep.subr.mxu0 %v5972_v6 }
0x18d3   : > { %v5891_v4 = vpop.eup %5890 }
0x18d4   : > { %v3873_v5 = vmul.f32 %v5891_v4, %v5887_v54  ;;  %v4349_v24 = vpop.permute.xlu0 %4348 }
0x18d6   : > { %5522 = vmatmul.mubr.msk.f32.vlgmr.msra.gmra.mrb[34].mxu0 %vm3692_vm9, %v3873_v5 }
0x18d7   : > { %5525 = vmatpush3.msra.mxu0 %v5093_v7  ;;  %5526 = vmatprep.mubr.msk.f32.mxu0 %vm5971_vm0, %v5972_v6  ;;  %v5121_v7 = vld [vmem:[%s6851_s19 + $0x2] ss:$0 sm:$0xff] }
0x18d8   : > { %5700 = vmatprep.subr.bf16.mxu0 %v5970_v3 }
0x1936   : > { %v3777_v46 = vpop.f32.mrb[32].mxu0 }
0x1937   : > { %v5509_v9 = vpop.f32.mrb[33].mxu0  ;;  %5532 = vmatmul.mubr.msk.f32.vlgmr.msra.gmra.mrb[34].mxu1 %vm1020_vm2, %v3777_v46 }
0x1938   : > { %5545 = vmatprep.mubr.msk.f32.mxu1 %vm5971_vm0, %v5972_v6 }
0x19a9   : > { %v3951_v16 = vpop.f32.mrb[34].mxu0 }
0x19aa   : > { %v5523_v19 = vpop.f32.mrb[35].mxu0  ;;  %5527 = vmatmul.mubr.msk.f32.vlgmr.msra.gmra.mrb[36].mxu0 %vm1020_vm2, %v3951_v16 }
0x19ab   : > { %5703 = vmatpush3.bf16.xpose.msk.msra.mxu0 %vm6367_vm4, %v5701_v15  ;;  %5538 = vmatprep.mubr.msk.f32.mxu0 %vm5971_vm0, %v5972_v6 }
0x19ac   : > { %5708 = vmatprep.subr.bf16.mxu0 %v5970_v3 }
0x19b2   : > { %5539 = vmatmul.mubr.msk.f32.vlgmr.msra.gmra.mrb[38].mxu0 %vm1020_vm2, %v4102_v21 }
0x19b3   : > { %5711 = vmatpush3.bf16.xpose.msk.msra.mxu0 %vm6367_vm4, %v5709_v63  ;;  %5557 = vmatprep.mubr.msk.f32.mxu0 %vm5971_vm0, %v5972_v6  ;;  %v4635_v63 = vld [vmem:[%s6854_s22 + $0x8] sm:$0xff] }
0x19b4   : > { %5716 = vmatprep.subr.bf16.mxu0 %v5970_v3 }
0x19ba   : > { %5558 = vmatmul.mubr.msk.f32.vlgmr.msra.gmra.mrb[40].mxu0 %vm1020_vm2, %v4349_v24  ;;  %v4637_v24 = vld [vmem:[%s6854_s22 + $0x18] sm:$0xff] }
0x19bb   : > { %5580 = vmatprep.mubr.msk.f32.mxu0 %vm5971_vm0, %v5972_v6 }
0x1a0a   : > { %v4097_v25 = vpop.f32.mrb[34].mxu1 }
0x1a0b   : > { %v5533_v2 = vpop.f32.mrb[35].mxu1 }
0x1a7d   : > { %v4024_v27 = vpop.f32.mrb[36].mxu0 }
0x1a7e   : > { %v6678_v28 = vadd.f32 %v4097_v25, %v4024_v27  ;;  %v5528_v29 = vpop.f32.mrb[37].mxu0 }
0x1a85   : > { %v4179_v30 = vpop.f32.mrb[38].mxu0 }
0x1a86   : > { %v4180_v22 = vadd.f32 %v4179_v30, %v6614_v32  ;;  %v5540_v31 = vpop.f32.mrb[39].mxu0  ;;  %v5123_v30 = vld [vmem:[%s6852_s20 + $0x2] ss:$0 sm:$0xff] }
0x1a87   : > { %v5125_v31 = vld [vmem:[%s6853_s21 + $0x2] ss:$0 sm:$0xff] }
0x1a88   : > { %v4183_v33 = vsel %vm3692_vm9, %v4180_v22, -inf }
0x1a89   : > { %4184 = vmax.xlane.f32.xlu1 %v4183_v33 }
0x1a8d   : > { %v4426_v34 = vpop.f32.mrb[40].mxu0 }
0x1a8e   : > { %v4427_v35 = vadd.f32 %v4426_v34, %v6614_v32  ;;  %v5559_v26 = vpop.f32.mrb[41].mxu0 }
0x1a8f   : > { %v4728_v26 = vld [vmem:[%s6856_s24 + $0x8] sm:$0xff] }
0x1a90   : > { %v4430_v36 = vsel %vm3692_vm9, %v4427_v35, -inf }
0x1a91   : > { %4431 = vmax.xlane.f32.xlu1 %v4430_v36 }
0x1b16   : > { %v4185_v37 = vpop.xlane.xlu1 %4184 }
0x1b17   : > { %v4186_v11 = vsub.f32 %v4180_v22, %v4185_v37  ;;  %v4729_v37 = vld [vmem:[%s6856_s24 + $0x10] sm:$0xff] }
0x1b19   : > { %v4187_v38 = vmul.f32 1.442695, %v4186_v11  ;;  %v4730_v11 = vld [vmem:[%s6856_s24 + $0x18] sm:$0xff] }
0x1b1b   : > { %5892 = vpow2.f32 %v4187_v38  ;;  %v5726_v38 = vpack.c.bf16 %v4730_v11, %v4729_v37 }
0x1b1e   : > { %v4432_v23 = vpop.xlane.xlu1 %4431 }
0x1b1f   : > { %v4433_v39 = vsub.f32 %v4427_v35, %v4432_v23  ;;  %v4727_v35 = vld [vmem:[%s6856_s24] sm:$0xff] }
0x1b20   : > { %v5723_v36 = vpack.c.bf16 %v4728_v26, %v4727_v35  ;;  %v4731_v23 = vld [vmem:[%s6856_s24 + $0x20] sm:$0xff] }
0x1b21   : > { %v4434_v40 = vmul.f32 1.442695, %v4433_v39  ;;  %v4732_v39 = vld [vmem:[%s6856_s24 + $0x28] sm:$0xff] }
0x1b23   : > { %5894 = vpow2.f32 %v4434_v40  ;;  %v5729_v40 = vpack.c.bf16 %v4732_v39, %v4731_v23 }
0x1b25   : > { %v5893_v17 = vpop.eup %5892 }
0x1b26   : > { %v4189_v41 = vsel %vm3692_vm9, %v5893_v17, 0.0 }
0x1b27   : > { %4190 = vadd.xlane.f32.xlu0 %v4189_v41  ;;  %v4734_v41 = vld [vmem:[%s6856_s24 + $0x38] sm:$0xff] }
0x1b2d   : > { %v5895_v42 = vpop.eup %5894 }
0x1b2e   : > { %v4436_v43 = vsel %vm3692_vm9, %v5895_v42, 0.0 }
0x1b2f   : > { %4437 = vadd.xlane.f32.xlu1 %v4436_v43  ;;  %v5126_v43 = vld [vmem:[%s6855_s23] ss:$0 sm:$0xff] }
0x1b3d   : > { %5839 = vrot.lane.b32.xlu0 %v6625_v47, %s6916_s28  ;;  %s5906_s28 = scalar_lea.vmem %s6791_s9, 128 }
0x1b3e   : > { %p5907_p11 = scmp.ne.s32.totalorder %s6791_s9, %s5906_s28 }
0x1b40   : > { %5844 = vrot.lane.b32.xlu1 %v6625_v47, %s6917_s29  ;;  %p5908_p12 = pnand %p5907_p11, %p6159_p5  ;;  %s5910_s29 = sshll.u32 %s5985_s8, 4  ;;  %s5911_s29 = int_to_ptr.vmem [resolvable:$false] %s5910_s29 }
0x1b41   : > { %s5912_s2 = scalar_lea.vmem %s5911_s29, 256  ;;  %p5913_p0 = scmp.lt.s32.totalorder %s6791_s9, %s5911_s29 }
0x1b42   : > { %p5909_p13 = pneg %p5908_p12  ;;  %p5914_p1 = scmp.lt.s32.totalorder %s5912_s2, %s5906_s28 }
0x1b44   : > { %p5915_p2 = por %p5914_p1, %p5913_p0 }
0x1b46   : > { %p5916_p3 = pnand %p5915_p2, %p5909_p13 }
0x1bb4   : > { %v4191_v32 = vpop.xlane.xlu0 %4190 }
0x1bb5   : > { %5896 = vrcp.f32 %v4191_v32 }
0x1bb8   : > { %v5840_v44 = vpop.permute.xlu0 %5839 }
0x1bb9   : > { %v5842_v45 = vunpack.i.h.bf16 %v5840_v44  ;;  %v5841_v48 = vunpack.i.l.bf16 %v5840_v44 }
0x1bbb   : > { %v5705_v49 = vpack.c.bf16 %v5842_v45, %v5841_v48 }
0x1bbc   : > { %v4438_v47 = vpop.xlane.xlu1 %4437 }
0x1bbd   : > { %5707 = vmatpush3.bf16.msk.msra.mxu1 %vm6629_vm11, %v5705_v49  ;;  %5898 = vrcp.f32 %v4438_v47 }
0x1bbe   : > { %5548 = vmatprep.subr.mxu1 %v5972_v6 }
0x1bbf   : > { %v5897_v51 = vpop.eup %5896 }
0x1bc0   : > { %v4193_v52 = vmul.f32 %v5897_v51, %v5893_v17  ;;  %v5845_v54 = vpop.permute.xlu1 %5844  ;;  %v4733_v17 = vld [vmem:[%s6856_s24 + $0x30] sm:$0xff] }
0x1bc1   : > { %v5847_v55 = vunpack.i.h.bf16 %v5845_v54  ;;  %v5846_v56 = vunpack.i.l.bf16 %v5845_v54 }
0x1bc2   : > { %5546 = vmatmul.mubr.msk.f32.vlgmr.msra.gmra.mrb[36].mxu1 %vm3692_vm9, %v4193_v52 }
0x1bc3   : > { %5549 = vmatpush3.msra.mxu1 %v5094_v53  ;;  %5550 = vmatprep.mubr.msk.f32.mxu1 %vm5971_vm0, %v5972_v6  ;;  %v5713_v57 = vpack.c.bf16 %v5847_v55, %v5846_v56 }
0x1bc4   : > { %5712 = vmatprep.subr.bf16.mxu1 %v5970_v3 }
0x1bc7   : > { %v5899_v8 = vpop.eup %5898 }
0x1bc8   : > { %v4440_v61 = vmul.f32 %v5899_v8, %v5895_v42  ;;  %v5732_v42 = vpack.c.bf16 %v4734_v41, %v4733_v17 }
0x1c95   : > { %v4270_v58 = vpop.f32.mrb[36].mxu1 }
0x1c96   : > { %v5547_v59 = vpop.f32.mrb[37].mxu1  ;;  %5551 = vmatmul.mubr.msk.f32.vlgmr.msra.gmra.mrb[38].mxu1 %vm1020_vm2, %v4270_v58 }
0x1c97   : > { %5715 = vmatpush3.bf16.msk.msra.mxu1 %vm6629_vm11, %v5713_v57  ;;  %5564 = vmatprep.mubr.msk.f32.mxu1 %vm5971_vm0, %v5972_v6 }
0x1c98   : > { %5567 = vmatprep.subr.mxu1 %v5972_v6 }
0x1c9a   : > { %5565 = vmatmul.mubr.msk.f32.vlgmr.msra.gmra.mrb[40].mxu1 %vm3692_vm9, %v4440_v61 }
0x1c9b   : > { %5569 = vmatprep.mubr.msk.f32.mxu1 %vm5971_vm0, %v5972_v6  ;;  %5568 = vmatpush3.msra.mxu1 %v5095_v62 }
0x1c9c   : > { %5722 = vmatprep.subr.bf16.mxu1 %v5970_v3 }
0x1d69   : > { %v4343_v50 = vpop.f32.mrb[38].mxu1 }
0x1d6a   : > { %v4347_v0 = vadd.f32 %v4343_v50, %v6678_v28  ;;  %v5552_v1 = vpop.f32.mrb[39].mxu1 }
0x1d6d   : > { %v4517_v4 = vpop.f32.mrb[40].mxu1 }
0x1d6e   : > { %v5566_v5 = vpop.f32.mrb[41].mxu1  ;;  %5570 = vmatmul.mubr.msk.f32.vlgmr.msra.gmra.mrb[42].mxu1 %vm1020_vm2, %v4517_v4 }
0x1d6f   : > { %5599 = vmatprep.mubr.msk.f32.mxu1 %vm5971_vm0, %v5972_v6  ;;  %v4634_v6 = vld [vmem:[%s6854_s22] sm:$0xff]  ;;  %5724 = vmatpush3.bf16.msra.mxu1 %v5723_v36 }
0x1d70   : > { %v5717_v21 = vpack.c.bf16 %v4635_v63, %v4634_v6  ;;  %5725 = vmatprep.subr.bf16.mxu1 %v5970_v3 }
0x1d72   : > { %5718 = vmatpush3.bf16.msra.mxu0 %v5717_v21 }
0x1d73   : > { %5719 = vmatprep.subr.bf16.mxu0 %v5970_v3  ;;  %5727 = vmatpush3.bf16.msra.mxu1 %v5726_v38 }
0x1d74   : > { %5728 = vmatprep.subr.bf16.mxu1 %v5970_v3 }
0x1d77   : > { %5730 = vmatpush3.bf16.msra.mxu1 %v5729_v40 }
0x1d78   : > { %5731 = vmatprep.subr.bf16.mxu1 %v5970_v3  ;;  %v5128_v3 = vld [vmem:[%s6857_s25] ss:$0 sm:$0xff] }
0x1d7b   : > { %5733 = vmatpush3.bf16.msra.mxu1 %v5732_v42 }
0x1e41   : > { %v4590_v46 = vpop.f32.mrb[42].mxu1 }
0x1e42   : > { %v4594_v9 = vadd.f32 %v4590_v46, %v4347_v0  ;;  %v5571_v10 = vpop.f32.mrb[43].mxu1 }
0x1e43   : > { %v5131_v10 = vld [vmem:[%s6852_s20 + $0x3] ss:$0 sm:$0xff] }
0x1e44   : > { %v4601_v12 = vadd.f32 %v5121_v7, %v4594_v9 }
0x1e46   : > { %v4602_v14 = vadd.f32 %v4601_v12, %v6560_v60  ;;  %v4636_v60 = vld [vmem:[%s6854_s22 + $0x10] sm:$0xff] }
0x1e47   : > { %v5720_v25 = vpack.c.bf16 %v4637_v24, %v4636_v60 }
0x1e48   : > { %v4603_v15 = vsel %vm937_vm1, %v4602_v14, 0.0 }
0x1e49   : > { %4604 = vadd.xlane.f32.xlu0 %v4603_v15  ;;  %5721 = vmatpush3.bf16.msra.mxu0 %v5720_v25 }
0x1ed6   : > { %v4605_v16 = vpop.xlane.xlu0 %4604 }
0x1ed7   : > { %v4606_v18 = vmul.f32 0.03125, %v4605_v16 }
0x1ed9   : > { %v4607_v19 = vsub.f32 %v4602_v14, %v4606_v18  ;;  %v5133_v14 = vld [vmem:[%s6853_s21 + $0x3] ss:$0 sm:$0xff] }
0x1edb   : > { %v4608_v13 = vmul.f32 %v4607_v19, %v4607_v19 }
0x1edd   : > { %v4609_v20 = vsel %vm937_vm1, %v4608_v13, 0.0 }
0x1ede   : > { %4610 = vadd.xlane.f32.xlu1 %v4609_v20 }
0x1f6b   : > { %v4611_v2 = vpop.xlane.xlu1 %4610 }
0x1f6c   : > { %v4612_v27 = vmul.f32 0.03125, %v4611_v2 }
0x1f6e   : > { %v4613_v28 = vadd.f32 1e-12, %v4612_v27 }
0x1f70   : > { %5900 = vrsqrt.f32 %v4613_v28 }
0x1f7a   : > { %v5901_v29 = vpop.eup %5900 }
0x1f7b   : > { %v4615_v22 = vmul.f32 %v5901_v29, %v4607_v19 }
0x1f7d   : > { %v4624_v33 = vmul.f32 %v5123_v30, %v4615_v22 }
0x1f7f   : > { %v4633_v34 = vadd.f32 %v5125_v31, %v4624_v33 }
0x1f81   : > { %5581 = vmatmul.mubr.msk.f32.vlgmr.msra.gmra.mrb[42].mxu0 %vm937_vm1, %v4633_v34 }
0x2054   : > { %v4714_v32 = vpop.f32.mrb[42].mxu0 }
0x2055   : > { %v4715_v44 = vadd.f32 %v5126_v43, %v4714_v32  ;;  %v5582_v45 = vpop.f32.mrb[43].mxu0 }
0x2057   : > { %v4719_v48 = vmul.f32 0.044715, %v4715_v44  ;;  %v4718_v54 = vmul.f32 0.5, %v4715_v44 }
0x2059   : > { %v4720_v49 = vmul.f32 %v4719_v48, %v4715_v44 }
0x205b   : > { %v4721_v51 = vmul.f32 %v4720_v49, %v4715_v44 }
0x205d   : > { %v4722_v52 = vadd.f32 %v4721_v51, %v4715_v44 }
0x205f   : > { %v4723_v53 = vmul.f32 0.7978846, %v4722_v52 }
0x2061   : > { %5902 = vtanh.f32 %v4723_v53 }
0x206b   : > { %v5903_v47 = vpop.eup %5902 }
0x206c   : > { %v4725_v55 = vadd.f32 1.0, %v5903_v47 }
0x206e   : > { %v4726_v56 = vmul.f32 %v4725_v55, %v4718_v54 }
0x2070   : > { %5600 = vmatmul.mubr.msk.f32.vlgmr.msra.gmra.mrb[44].mxu1 %vm4742_vm12, %v4726_v56 }
0x2143   : > { %v4812_v8 = vpop.f32.mrb[44].mxu1 }
0x2144   : > { %v4813_v57 = vadd.f32 %v5128_v3, %v4812_v8  ;;  %v5601_v58 = vpop.f32.mrb[45].mxu1 }
0x2146   : > { %v4816_v59 = vadd.f32 %v4813_v57, %v4633_v34 }
0x2148   : > { %v4817_v61 = vsel %vm937_vm1, %v4816_v59, 0.0 }
0x2149   : > { %4818 = vadd.xlane.f32.xlu0 %v4817_v61 }
0x21d6   : > { %v4819_v62 = vpop.xlane.xlu0 %4818 }
0x21d7   : > { %v4820_v50 = vmul.f32 0.03125, %v4819_v62 }
0x21d9   : > { %v4821_v0 = vsub.f32 %v4816_v59, %v4820_v50 }
0x21db   : > { %v4822_v1 = vmul.f32 %v4821_v0, %v4821_v0 }
0x21dd   : > { %v4823_v4 = vsel %vm937_vm1, %v4822_v1, 0.0 }
0x21de   : > { %4824 = vadd.xlane.f32.xlu0 %v4823_v4 }
0x226b   : > { %v4825_v5 = vpop.xlane.xlu0 %4824 }
0x226c   : > { %v4826_v7 = vmul.f32 0.03125, %v4825_v5 }
0x226e   : > { %v4827_v46 = vadd.f32 1e-12, %v4826_v7 }
0x2270   : > { %5904 = vrsqrt.f32 %v4827_v46 }
0x227a   : > { %v5905_v9 = vpop.eup %5904 }
0x227b   : > { %v4829_v12 = vmul.f32 %v5905_v9, %v4821_v0 }
0x227d   : > { %v4838_v15 = vmul.f32 %v5131_v10, %v4829_v12 }
0x227f   : > { %v4847_v16 = vadd.f32 %v5133_v14, %v4838_v15 }
0x2281   : > { %4848 = vst.msk [vmem:[%s875_s0] sm:$0xff] %vm937_vm1, %v4847_v16 }
0x2282   : > { %5919 = shalt.err (!%p5916_p3)
}
0x2283   : > { %s5920_s26 = scalar_lea.hbm %s6789_s27, 128  ;;  %s5924_s5 = scalar_lea.hbm %s6926_s4, 256 }
0x2284   : > { %p5921_p4 = scmp.ne.s32.totalorder %s6789_s27, %s5920_s26  ;;  %p5925_p9 = scmp.lt.u32.totalorder %s6789_s27, %s6926_s4 }
0x2285   : > { %p5926_p10 = scmp.lt.u32.totalorder %s5924_s5, %s5920_s26  ;;  %p5928_p12 = scmp.lt.u32.totalorder %s5920_s26, %s6789_s27 }
0x2286   : > { %p5922_p7 = pnand %p5921_p4, %p6159_p5 }
0x2287   : > { %p5927_p11 = por %p5926_p10, %p5925_p9 }
0x2288   : > { %p5923_p8 = pneg %p5922_p7 }
0x2289   : > { %p5929_p13 = por %p5928_p12, %p5927_p11 }
0x228b   : > { %p5930_p0 = pnand %p5929_p13, %p5923_p8 }
0x228d   : > { %5933 = shalt.err (!%p5930_p0)
}
0x228e   : > { %5734 = dma.vmem_to_hbm [thread:$0]  (%p6159_p5), %s6791_s9, 128, %s6789_s27, %s4850_s11  }
0x228f PF: > { %s6927_s0 = sld [smem:[#allocation7_spill]]  ;;  %s6928_s7 = sld [smem:[#allocation5_spill]] }
0x2295   : > { %p5740_p1 = scmp.ge.s32.totalorder %s6927_s0, 2  ;;  %s4875_s28 = sand.u32 1, %s6928_s7  }
0x2296   : > { %s4876_s8 = scalar_lea.sflag [#allocation3], %s4875_s28 }
0x2297   : > { %p5737_p2 = pnand %p5740_p1, %p6163_p6 }
0x2299   : > { %5951 = dma.done.wait (!%p5737_p2), %s4876_s8, 128  }
0x229a   : > { %5953 = vsyncadd (!%p5737_p2), %s4876_s8, 4294967168  ;;  %s6930_s28 = sld [smem:[#allocation8_spill]]  ;;  %s6931_s29 = sld [smem:[#allocation6_spill]] }
0x229b   : > { %s6932_s7 = sld [smem:[#allocation9_spill]]  ;;  %s6933_s27 = smov %s5960_s3 }
0x22a0   : > { %p36_p3 = scmp.ge.s32.totalorder %s6930_s28, 4   ;;  %s6934_s3 = smov %s6931_s29 }
0x22a2   :  { %38 = sbr.rel (!%p36_p3) target bundleno = 19 (0x13), region = 194 }
0x22a9   :  { %4881 = vsyncpa [#allocation3], 1 }
0x22aa   :  { %4883 = vsyncpa [#allocation3 + $0x1], 1 }

// kernel: multimodal_decoder_forward.2
= control target key start
LH: loop header
LB: loop body
LE: loop exit
PB: predicated region body
PF: predicated region fallthrough
CT: control target
= control target key end

     0   :  { %s6012_s27 = smov 0   ;;  %s6644_s0 = inlined_call_operand.vmem [shape: f32[2,8,32], index: 0, kind: input, shape index: {}]   ;;  %s6645_s1 = inlined_call_operand.vmem [shape: f32[2,10,32], index: 1, kind: input, shape index: {}]   ;;  %s6646_s2 = inlined_call_operand.vmem [shape: f32[2,10,32], index: 2, kind: input, shape index: {}]   ;;  %s6647_s3 = inlined_call_operand.vmem [shape: f32[2,12,32], index: 3, kind: input, shape index: {}]   ;;  %s6648_s4 = inlined_call_operand.vmem [shape: f32[2,12,32], index: 4, kind: input, shape index: {}]   ;;  %s6649_s5 = inlined_call_operand.vmem [shape: f32[2,1,8], index: 5, kind: input, shape index: {}]   ;;  %s6650_s6 = inlined_call_operand.vmem [shape: f32[2,1,10], index: 6, kind: input, shape index: {}]   ;;  %s6651_s7 = inlined_call_operand.vmem [shape: f32[2,1,12], index: 7, kind: input, shape index: {}]   ;;  %s6652_s8 = inlined_call_operand.vmem [shape: f32[32,96], index: 8, kind: input, shape index: {}]   ;;  %s6653_s9 = inlined_call_operand.vmem [shape: f32[1,96], index: 9, kind: input, shape index: {}]   ;;  %s6654_s10 = inlined_call_operand.vmem [shape: f32[32,32], index: 10, kind: input, shape index: {}]   ;;  %s6655_s11 = inlined_call_operand.vmem [shape: f32[1,32], index: 11, kind: input, shape index: {}]   ;;  %s6656_s12 = inlined_call_operand.vmem [shape: f32[2,32,32], index: 12, kind: input, shape index: {}]   ;;  %s6657_s13 = inlined_call_operand.vmem [shape: f32[2,1,32], index: 13, kind: input, shape index: {}]   ;;  %s6658_s14 = inlined_call_operand.vmem [shape: f32[32,32], index: 14, kind: input, shape index: {}]   ;;  %s6659_s15 = inlined_call_operand.vmem [shape: f32[1,32], index: 15, kind: input, shape index: {}]   ;;  %s6660_s16 = inlined_call_operand.vmem [shape: f32[2,32,32], index: 16, kind: input, shape index: {}]   ;;  %s6661_s17 = inlined_call_operand.vmem [shape: f32[2,1,32], index: 17, kind: input, shape index: {}]   ;;  %s6662_s18 = inlined_call_operand.vmem [shape: f32[3,32,32], index: 18, kind: input, shape index: {}]   ;;  %s6663_s19 = inlined_call_operand.vmem [shape: f32[3,1,32], index: 19, kind: input, shape index: {}]   ;;  %s6664_s20 = inlined_call_operand.vmem [shape: f32[4,1,32], index: 20, kind: input, shape index: {}]   ;;  %s6665_s21 = inlined_call_operand.vmem [shape: f32[4,1,32], index: 21, kind: input, shape index: {}]   ;;  %s6666_s22 = inlined_call_operand.vmem [shape: f32[32,64], index: 22, kind: input, shape index: {}]   ;;  %s6667_s23 = inlined_call_operand.vmem [shape: f32[1,64], index: 23, kind: input, shape index: {}]   ;;  %s6668_s24 = inlined_call_operand.vmem [shape: f32[64,32], index: 24, kind: input, shape index: {}]   ;;  %s6669_s25 = inlined_call_operand.vmem [shape: f32[1,32], index: 25, kind: input, shape index: {}]   ;;  %s6670_s26 = inlined_call_operand.vmem [shape: f32[2,8,32], index: 26, kind: output, shape index: {}]  }
   0x1   :  { %6682 = sst [smem:[#allocation2_spill]] %s6644_s0 }
   0x2   :  { %6683 = sst [smem:[#allocation3_spill]] %s6645_s1 }
   0x3   :  { %6684 = sst [smem:[#allocation4_spill]] %s6646_s2 }
   0x4   :  { %6685 = sst [smem:[#allocation5_spill]] %s6647_s3 }
   0x5   :  { %6686 = sst [smem:[#allocation6_spill]] %s6648_s4 }
   0x6   :  { %6687 = sst [smem:[#allocation7_spill]] %s6649_s5 }
   0x7   :  { %6688 = sst [smem:[#allocation8_spill]] %s6650_s6 }
   0x8   :  { %6689 = sst [smem:[#allocation9_spill]] %s6651_s7 }
   0x9   :  { %6690 = sst [smem:[#allocation10_spill]] %s6652_s8 }
   0xa   :  { %6691 = sst [smem:[#allocation11_spill]] %s6653_s9 }
   0xb   :  { %6692 = sst [smem:[#allocation12_spill]] %s6654_s10 }
   0xc   :  { %6693 = sst [smem:[#allocation13_spill]] %s6655_s11 }
   0xd   :  { %6694 = sst [smem:[#allocation14_spill]] %s6656_s12 }
   0xe   :  { %6695 = sst [smem:[#allocation15_spill]] %s6657_s13 }
   0xf LB: > { %s4977_s3 = sadd.s32 4294967295, %s5860_s27   ;;  %p4981_p0 = scmp.ge.s32.totalorder %s5860_s27, 1  ;;  %s5860_s27 = sphi %s6012_s27, %s36_s27  }
  0x10   : > { %p775_p1 = scmp.lt.s32.totalorder %s5860_s27, 3 }
  0x12   : > { %p776_p2 = pnand %p4981_p0, %p775_p1 }
  0x13   : > { %s6696_s8 = sld [smem:[#allocation10_spill]] (!%p776_p2)  ;;  %v5862_v3 = vmov (!%p776_p2), 0.0|0.0   ;;  %vm5863_vm0 = vmmov (!%p776_p2), 0   ;;  %v5864_v6 = vmov (!%p776_p2), 0.0   ;;  %p872_p3 = scmp.lt.s32.totalorder (!%p776_p2), %s4977_s3, 1  ;;  %vm937_vm1 = vcmask (!%p776_p2), 261120  }
  0x14   : > { %779 = sbr.rel (%p776_p2) target bundleno = 8819 (0x2273), region = 124  ;;  %5581 = vmatprep.subr.bf16.mxu0 (!%p776_p2), %v5862_v3  ;;  %5270 = vmatprep.mubr.msk.f32.mxu0 (!%p776_p2), %vm5863_vm0, %v5864_v6  ;;  %s6697_s1 = sld [smem:[#allocation2_spill]] (!%p776_p2)  ;;  %vm1020_vm2 = vcmask (!%p776_p2), 64512   ;;  %v910_v17 = vlaneseq (!%p776_p2)  ;;  %v1012_v45 = vld [vmem:[%s6662_s18 + $0x8] sm:$0xff] (!%p776_p2)  ;;  %v1011_v54 = vld [vmem:[%s6662_s18] sm:$0xff] (!%p776_p2)  ;;  %vm2380_vm5 = vcmask (!%p776_p2), 80896  }
  0x15   : > { %5278 = vmatprep.subr.mxu1 (!%p776_p2), %v5864_v6  ;;  %5280 = vmatprep.mubr.msk.f32.mxu1 (!%p776_p2), %vm5863_vm0, %v5864_v6  ;;  %s6698_s29 = sld [smem:[#allocation11_spill]] (!%p776_p2)  ;;  %s5865_s0 = smov (!%p776_p2), 96   ;;  %vm6218_vm4 = vmpackc.low (!%p776_p2), %vm1020_vm2, %vm1020_vm2  ;;  %vm2395_vm6 = vcmask (!%p776_p2), 1041408   ;;  %vm5876_vm7 = vmmov (!%p776_p2), 1   ;;  %vm3692_vm9 = vcmask (!%p776_p2), 97280   ;;  %vm3707_vm10 = vcmask (!%p776_p2), 1043456  }
  0x16   : > { %s6676_s9 = smov (!%p776_p2), 120   ;;  %s5867_s30 = smov (!%p776_p2), 88   ;;  %v911_v19 = vshrl.u32 (!%p776_p2), %v910_v17, 7  ;;  %v913_v21 = vand.u32 (!%p776_p2), 127, %v910_v17  ;;  %vm6285_vm8 = vmpackc.low (!%p776_p2), %vm2395_vm6, %vm5876_vm7  ;;  %vm4742_vm12 = vcmask (!%p776_p2), 523264  }
  0x17   : > { %s6699_s6 = sld [smem:[#allocation7_spill]] (!%p776_p2)  ;;  %s5869_s28 = smov (!%p776_p2), 64   ;;  %vm6480_vm11 = vmpackc.low (!%p776_p2), %vm3707_vm10, %vm5876_vm7 }
  0x18   : > { %v6081_v23 = vsub.s32 (!%p776_p2), 0, %v911_v19  ;;  %vm914_vm3 = vcmp.gt.s32.totalorder (!%p776_p2), %v913_v21, %v911_v19  ;;  %s5870_s4 = smov (!%p776_p2), 80   ;;  %v1013_v21 = vld [vmem:[%s6662_s18 + $0x10] sm:$0xff] (!%p776_p2)  ;;  %s6700_s12 = sld [smem:[#allocation14_spill]] (!%p776_p2) }
  0x19   : > { %v926_v0 = vld [vmem:[%s6696_s8] sm:$0xff] (!%p776_p2)  ;;  %v927_v1 = vld [vmem:[%s6696_s8 + $0x8] sm:$0xff] (!%p776_p2)  ;;  %v928_v2 = vld [vmem:[%s6696_s8 + $0x10] sm:$0xff] (!%p776_p2)  ;;  %v915_v25 = vsel (!%p776_p2), %vm914_vm3, -1e+09, %v5864_v6  ;;  %s6702_s10 = sld [smem:[#allocation12_spill]] (!%p776_p2) }
  0x1a   : > { %v5582_v4 = vpack.c.bf16 (!%p776_p2), %v927_v1, %v926_v0  ;;  %v929_v5 = vld [vmem:[%s6696_s8 + $0x18] sm:$0xff] (!%p776_p2)  ;;  %s6703_s13 = sld [smem:[#allocation15_spill]] (!%p776_p2)  ;;  %s6706_s11 = sld [smem:[#allocation13_spill]] (!%p776_p2) }
  0x1b   : > { %v5585_v7 = vpack.c.bf16 %v929_v5, %v928_v2  ;;  %s6721_s3 = smov (!%p872_p3, %s4977_s3), 1  ;;  %v4992_v9 = vld [vmem:[%s6698_s29] ss:$0 sm:$0xff]  ;;  %s6678_s29 = smov 112  }
  0x1c   : > { %5583 = vmatpush3.bf16.msra.mxu0 %v5582_v4  ;;  %s6673_s5 = sshll.u32 %s6721_s3, 3  ;;  %s6715_s2 = sld [smem:[#allocation6_spill]] }
  0x1d   : > { %5584 = vmatprep.subr.bf16.mxu0 %v5862_v3  ;;  %s875_s7 = scalar_lea.vmem %s6697_s1, %s6673_s5  ;;  %s898_s1 = scalar_lea.vmem %s6699_s6, %s6721_s3 }
  0x1e   : > { %v6047_v8 = vld [vmem:[%s875_s7] sm:$0xff]  ;;  %s5868_s7 = smov 56   ;;  %s5872_s6 = smov 72  }
  0x1f   : > { %v916_v18 = vld [vmem:[%s898_s1] sm:$0x1]  ;;  %s6674_s1 = smov 104   ;;  %s6179_s5 = sshll.u32 %s6721_s3, 4 }
  0x20   : > { %5586 = vmatpush3.bf16.msra.mxu0 %v5585_v7  ;;  %v917_v20 = vsub.f32 1.0, %v916_v18 }
  0x21   : > { %5273 = vmatprep.subr.mxu0 %v5864_v6 }
  0x22   : > { %v918_v22 = vmul.f32 -1e+09, %v917_v20 }
  0x23   : > { %5271 = vmatmul.mubr.msk.f32.vlgmr.msra.gmra.mrb[0].mxu0 %vm937_vm1, %v6047_v8 }
  0x24   : > { %5275 = vmatprep.mubr.msk.f32.mxu0 %vm5863_vm0, %v5864_v6  ;;  %v923_v24 = vrot.slane %v918_v22, %v6081_v23 }
  0x26   : > { %v6085_v26 = vadd.f32 %v923_v24, %v915_v25 }
  0xf6   : > { %v1007_v10 = vpop.f32.mrb[0].mxu0 }
  0xf7   : > { %v6057_v11 = vadd.f32 %v4992_v9, %v1007_v10  ;;  %v5272_v12 = vpop.f32.mrb[1].mxu0 }
  0xf9   : > { %1018 = vrot.lane.b32.xlu0 %v6057_v11, %s5865_s0  ;;  %v6061_v13 = vmul.f32 0.35355338, %v6057_v11  ;;  %s5875_s0 = smov 40  }
  0xfb   : > { %1183 = vrot.lane.b32.xlu1 %v6061_v13, %s6676_s9 }
  0xfd   : > { %1185 = vrot.lane.b32.xlu0 %v6057_v11, %s5867_s30  ;;  %s6710_s30 = smov 104  }
 0x16b   : > { %v1019_v14 = vpop.permute.xlu0 %1018 }
 0x16c   : > { %5274 = vmatpush3.xpose.msk.msra.mxu0 %vm1020_vm2, %v1019_v14 }
 0x16d   : > { %5283 = vmatprep.subr.mxu0 %v5864_v6  ;;  %v1184_v16 = vpop.permute.xlu1 %1183 }
 0x16f   : > { %v1186_v15 = vpop.permute.xlu0 %1185  ;;  %5276 = vmatmul.mubr.msk.f32.vlgmr.msra.gmra.mrb[2].mxu0 %vm1020_vm2, %v6061_v13 }
 0x170   : > { %5284 = vmatpush3.xpose.msk.msra.mxu0 %vm1020_vm2, %v1186_v15  ;;  %5285 = vmatprep.mubr.msk.f32.mxu0 %vm5863_vm0, %v5864_v6 }
 0x171   : > { %5293 = vmatprep.subr.mxu0 %v5864_v6 }
 0x173   : > { %5286 = vmatmul.mubr.msk.f32.vlgmr.msra.gmra.mrb[4].mxu0 %vm1020_vm2, %v1184_v16 }
 0x174   : > { %5295 = vmatprep.mubr.msk.f32.mxu0 %vm5863_vm0, %v5864_v6  ;;  %5294 = vmatpush3.msra.mxu0 %v1012_v45 }
 0x175   : > { %5303 = vmatprep.subr.mxu0 %v5864_v6 }
 0x242   : > { %v1092_v27 = vpop.f32.mrb[2].mxu0 }
 0x243   : > { %v1093_v28 = vadd.f32 %v1092_v27, %v6085_v26  ;;  %v5277_v29 = vpop.f32.mrb[3].mxu0 }
 0x245   : > { %v1096_v30 = vsel %vm1020_vm2, %v1093_v28, -inf }
 0x246   : > { %1097 = vmax.xlane.f32.xlu1 %v1096_v30  ;;  %v1257_v31 = vpop.f32.mrb[4].mxu0 }
 0x247   : > { %v1258_v32 = vadd.f32 %v1257_v31, %v6085_v26  ;;  %v5287_v33 = vpop.f32.mrb[5].mxu0 }
 0x249   : > { %v1261_v34 = vsel %vm1020_vm2, %v1258_v32, -inf }
 0x24a   : > { %1262 = vmax.xlane.f32.xlu0 %v1261_v34 }
 0x2d3   : > { %v1098_v35 = vpop.xlane.xlu1 %1097 }
 0x2d4   : > { %v1099_v36 = vsub.f32 %v1093_v28, %v1098_v35 }
 0x2d6   : > { %v1100_v37 = vmul.f32 1.442695, %v1099_v36 }
 0x2d7   : > { %v1263_v38 = vpop.xlane.xlu0 %1262 }
 0x2d8   : > { %5796 = vpow2.f32 %v1100_v37  ;;  %v1264_v39 = vsub.f32 %v1258_v32, %v1263_v38 }
 0x2da   : > { %v1265_v40 = vmul.f32 1.442695, %v1264_v39 }
 0x2dc   : > { %5798 = vpow2.f32 %v1265_v40 }
 0x2e2   : > { %v5797_v41 = vpop.eup %5796 }
 0x2e3   : > { %v1102_v42 = vsel %vm1020_vm2, %v5797_v41, 0.0 }
 0x2e4   : > { %1103 = vadd.xlane.f32.xlu0 %v1102_v42 }
 0x2e6   : > { %v5799_v43 = vpop.eup %5798 }
 0x2e7   : > { %v1267_v44 = vsel %vm1020_vm2, %v5799_v43, 0.0 }
 0x2e8   : > { %1268 = vadd.xlane.f32.xlu1 %v1267_v44 }
 0x2f9   : > { %1272 = vrot.lane.b32.xlu1 %v6057_v11, %s5868_s7  ;;  %s5874_s7 = smov 48  }
 0x2fa   : > { %1107 = vrot.lane.b32.xlu0 %v6057_v11, %s5869_s28  ;;  %s6719_s28 = sshll.u32 %s6721_s3, 3 }
 0x2fb   : > { %s908_s8 = scalar_lea.vmem %s6670_s26, %s6719_s28 }
 0x2fd   : > { %1496 = vrot.lane.b32.xlu1 %v6057_v11, %s5870_s4  ;;  %s6701_s4 = sld [smem:[#allocation3_spill]] }
 0x2fe   : > { %1494 = vrot.lane.b32.xlu0 %v6061_v13, %s6678_s29 }
 0x371   : > { %v1104_v46 = vpop.xlane.xlu0 %1103 }
 0x372   : > { %5800 = vrcp.f32 %v1104_v46 }
 0x375   : > { %v1269_v47 = vpop.xlane.xlu1 %1268  ;;  %v1108_v48 = vpop.permute.xlu0 %1107 }
 0x376   : > { %5802 = vrcp.f32 %v1269_v47  ;;  %5279 = vmatpush3.msra.mxu1 %v1108_v48 }
 0x377   : > { %5288 = vmatprep.subr.mxu1 %v5864_v6 }
 0x379   : > { %v1273_v51 = vpop.permute.xlu1 %1272  ;;  %v1495_v60 = vpop.permute.xlu0 %1494 }
 0x37c   : > { %v5801_v49 = vpop.eup %5800 }
 0x37d   : > { %v1106_v50 = vmul.f32 %v5801_v49, %v5797_v41  ;;  %v1497_v58 = vpop.permute.xlu1 %1496 }
 0x37f   : > { %5281 = vmatmul.mubr.msk.f32.vlgmr.msra.gmra.mrb[0].mxu1 %vm1020_vm2, %v1106_v50 }
 0x380   : > { %v5803_v52 = vpop.eup %5802  ;;  %5289 = vmatpush3.msra.mxu1 %v1273_v51  ;;  %5290 = vmatprep.mubr.msk.f32.mxu1 %vm5863_vm0, %v5864_v6 }
 0x381   : > { %v1271_v53 = vmul.f32 %v5803_v52, %v5799_v43  ;;  %5298 = vmatprep.subr.mxu1 %v5864_v6  ;;  %v5010_v43 = vld [vmem:[%s6663_s19] ss:$0 sm:$0xff] }
 0x383   : > { %5291 = vmatmul.mubr.msk.f32.vlgmr.msra.gmra.mrb[2].mxu1 %vm1020_vm2, %v1271_v53 }
 0x384   : > { %5300 = vmatprep.mubr.msk.f32.mxu1 %vm5863_vm0, %v5864_v6  ;;  %5299 = vmatpush3.msra.mxu1 %v1011_v54 }
 0x385   : > { %5308 = vmatprep.subr.mxu1 %v5864_v6 }
 0x452   : > { %v1179_v55 = vpop.f32.mrb[0].mxu1 }
 0x453   : > { %v5282_v56 = vpop.f32.mrb[1].mxu1  ;;  %5301 = vmatmul.mubr.msk.f32.vlgmr.msra.gmra.mrb[4].mxu1 %vm1020_vm2, %v1179_v55  ;;  %v2096_v55 = vld [vmem:[%s6700_s12] sm:$0xff] }
 0x454   : > { %5310 = vmatprep.mubr.msk.f32.mxu1 %vm5863_vm0, %v5864_v6  ;;  %v2097_v56 = vld [vmem:[%s6700_s12 + $0x8] sm:$0xff] }
 0x456   : > { %v1344_v57 = vpop.f32.mrb[2].mxu1 }
 0x457   : > { %v5292_v59 = vpop.f32.mrb[3].mxu1  ;;  %5296 = vmatmul.mubr.msk.f32.vlgmr.msra.gmra.mrb[6].mxu0 %vm1020_vm2, %v1344_v57  ;;  %v2098_v57 = vld [vmem:[%s6700_s12 + $0x10] sm:$0xff] }
 0x458   : > { %5304 = vmatpush3.xpose.msk.msra.mxu0 %vm1020_vm2, %v1497_v58  ;;  %5305 = vmatprep.mubr.msk.f32.mxu0 %vm5863_vm0, %v5864_v6  ;;  %v2099_v58 = vld [vmem:[%s6700_s12 + $0x18] sm:$0xff] }
 0x459   : > { %5313 = vmatprep.subr.mxu0 %v5864_v6  ;;  %v5597_v59 = vpack.c.bf16 %v2099_v58, %v2098_v57  ;;  %v5023_v58 = vld [vmem:[%s6703_s13 + $0x1] ss:$0 sm:$0xff] }
 0x45b   : > { %5306 = vmatmul.mubr.msk.f32.vlgmr.msra.gmra.mrb[8].mxu0 %vm1020_vm2, %v1495_v60 }
 0x45c   : > { %5315 = vmatprep.mubr.msk.f32.mxu0 %vm5863_vm0, %v5864_v6  ;;  %5314 = vmatpush3.msra.mxu0 %v1013_v21 }
 0x45d   : > { %5323 = vmatprep.subr.mxu0 %v5864_v6 }
 0x526   : > { %v1490_v61 = vpop.f32.mrb[4].mxu1 }
 0x527   : > { %v5302_v62 = vpop.f32.mrb[5].mxu1 }
 0x528   : > { %v2010_v62 = vld [vmem:[%s6702_s10] sm:$0xff] }
 0x52a   : > { %v1417_v63 = vpop.f32.mrb[6].mxu0 }
 0x52b   : > { %v1491_v0 = vadd.f32 %v1490_v61, %v1417_v63  ;;  %v5297_v1 = vpop.f32.mrb[7].mxu0  ;;  %v2011_v63 = vld [vmem:[%s6702_s10 + $0x8] sm:$0xff] }
 0x52c   : > { %v2012_v1 = vld [vmem:[%s6702_s10 + $0x10] sm:$0xff] }
 0x52e   : > { %v1568_v2 = vpop.f32.mrb[8].mxu0 }
 0x52f   : > { %v1569_v4 = vadd.f32 %v1568_v2, %v6085_v26  ;;  %v5307_v5 = vpop.f32.mrb[9].mxu0  ;;  %v2013_v2 = vld [vmem:[%s6702_s10 + $0x18] sm:$0xff]  ;;  %s6708_s10 = sld [smem:[#allocation8_spill]] }
 0x531   : > { %v1572_v7 = vsel %vm1020_vm2, %v1569_v4, -inf }
 0x532   : > { %1573 = vmax.xlane.f32.xlu1 %v1572_v7 }
 0x543   : > { %1735 = vrot.lane.b32.xlu1 %v6057_v11, %s5872_s6  ;;  %s895_s6 = scalar_lea.vmem %s6715_s2, %s6179_s5 }
 0x547   : > { %1733 = vrot.lane.b32.xlu1 %v6061_v13, %s6674_s1  ;;  %s901_s1 = scalar_lea.vmem %s6708_s10, %s6721_s3 }
 0x5bf   : > { %v1574_v9 = vpop.xlane.xlu1 %1573 }
 0x5c0   : > { %v1575_v10 = vsub.f32 %v1569_v4, %v1574_v9  ;;  %v5591_v4 = vpack.c.bf16 %v2013_v2, %v2012_v1 }
 0x5c2   : > { %v1576_v12 = vmul.f32 1.442695, %v1575_v10 }
 0x5c3   : > { %v1736_v19 = vpop.permute.xlu1 %1735 }
 0x5c4   : > { %5804 = vpow2.f32 %v1576_v12  ;;  %v5011_v12 = vld [vmem:[%s6664_s20] ss:$0 sm:$0xff] }
 0x5c7   : > { %v1734_v20 = vpop.permute.xlu1 %1733 }
 0x5ce   : > { %v5805_v14 = vpop.eup %5804 }
 0x5cf   : > { %v1578_v15 = vsel %vm1020_vm2, %v5805_v14, 0.0 }
 0x5d0   : > { %1579 = vadd.xlane.f32.xlu0 %v1578_v15  ;;  %v5012_v15 = vld [vmem:[%s6665_s21] ss:$0 sm:$0xff] }
 0x5e6   : > { %1583 = vrot.lane.b32.xlu0 %v6057_v11, %s5874_s7  ;;  %s6713_s7 = smov 120  }
 0x65d   : > { %v1580_v16 = vpop.xlane.xlu0 %1579 }
 0x65e   : > { %5806 = vrcp.f32 %v1580_v16 }
 0x661   : > { %v1584_v17 = vpop.permute.xlu0 %1583 }
 0x662   : > { %5309 = vmatpush3.msra.mxu1 %v1584_v17 }
 0x663   : > { %5318 = vmatprep.subr.mxu1 %v5864_v6 }
 0x668   : > { %v5807_v18 = vpop.eup %5806 }
 0x669   : > { %v1582_v13 = vmul.f32 %v5807_v18, %v5805_v14  ;;  %v5015_v18 = vld [vmem:[%s6703_s13] ss:$0 sm:$0xff] }
 0x66b   : > { %5311 = vmatmul.mubr.msk.f32.vlgmr.msra.gmra.mrb[6].mxu1 %vm1020_vm2, %v1582_v13 }
 0x66c   : > { %5319 = vmatpush3.xpose.msk.msra.mxu1 %vm1020_vm2, %v1736_v19  ;;  %5320 = vmatprep.mubr.msk.f32.mxu1 %vm5863_vm0, %v5864_v6 }
 0x66d   : > { %5328 = vmatprep.subr.mxu1 %v5864_v6 }
 0x66f   : > { %5321 = vmatmul.mubr.msk.f32.vlgmr.msra.gmra.mrb[8].mxu1 %vm1020_vm2, %v1734_v20 }
 0x670   : > { %5330 = vmatprep.mubr.msk.f32.mxu1 %vm5863_vm0, %v5864_v6 }
 0x73e   : > { %v1655_v22 = vpop.f32.mrb[6].mxu1 }
 0x73f   : > { %v5312_v24 = vpop.f32.mrb[7].mxu1  ;;  %5316 = vmatmul.mubr.msk.f32.vlgmr.msra.gmra.mrb[10].mxu0 %vm1020_vm2, %v1655_v22 }
 0x740   : > { %5325 = vmatprep.mubr.msk.f32.mxu0 %vm5863_vm0, %v5864_v6 }
 0x742   : > { %v1807_v25 = vpop.f32.mrb[8].mxu1 }
 0x743   : > { %v1808_v27 = vadd.f32 %v1807_v25, %v6085_v26  ;;  %v5322_v28 = vpop.f32.mrb[9].mxu1  ;;  %v1014_v26 = vld [vmem:[%s6662_s18 + $0x18] sm:$0xff] }
 0x744   : > { %5329 = vmatpush3.msra.mxu1 %v1014_v26  ;;  %v5013_v28 = vld [vmem:[%s6706_s11] ss:$0 sm:$0xff] }
 0x745   : > { %v1811_v29 = vsel %vm1020_vm2, %v1808_v27, -inf  ;;  %v5018_v26 = vld [vmem:[%s6700_s12 + $0x20] sm:$0xff] }
 0x746   : > { %1812 = vmax.xlane.f32.xlu0 %v1811_v29 }
 0x75c   : > { %1822 = vrot.lane.b32.xlu0 %v6057_v11, %s5875_s0  ;;  %s880_s0 = scalar_lea.vmem %s6701_s4, %s6179_s5 }
 0x75d   : > { %v2094_v60 = vld [vmem:[%s880_s0] sm:$0xff]  ;;  %v2095_v61 = vld [vmem:[%s880_s0 + $0x8] sm:$0x3]  ;;  %s6714_s0 = sld [smem:[#allocation5_spill]] }
 0x763   : > { %s890_s11 = scalar_lea.vmem %s6714_s0, %s6179_s5 }
 0x7d3   : > { %v1813_v30 = vpop.xlane.xlu0 %1812 }
 0x7d4   : > { %v1814_v31 = vsub.f32 %v1808_v27, %v1813_v30 }
 0x7d6   : > { %v1815_v32 = vmul.f32 1.442695, %v1814_v31 }
 0x7d7   : > { %v1823_v33 = vpop.permute.xlu0 %1822 }
 0x7d8   : > { %5808 = vpow2.f32 %v1815_v32  ;;  %5324 = vmatpush3.msra.mxu0 %v1823_v33 }
 0x7d9   : > { %5587 = vmatprep.subr.bf16.mxu0 %v5862_v3 }
 0x7e2   : > { %v5809_v34 = vpop.eup %5808 }
 0x7e3   : > { %v1817_v35 = vsel %vm1020_vm2, %v5809_v34, 0.0 }
 0x7e4   : > { %1818 = vadd.xlane.f32.xlu1 %v1817_v35 }
 0x812   : > { %v1728_v36 = vpop.f32.mrb[10].mxu0 }
 0x813   : > { %v1732_v37 = vadd.f32 %v1728_v36, %v1491_v0  ;;  %v5317_v11 = vpop.f32.mrb[11].mxu0  ;;  %v5588_v0 = vpack.c.bf16 %v2011_v63, %v2010_v62  ;;  %v5019_v36 = vld [vmem:[%s6700_s12 + $0x28] sm:$0xff] }
 0x814   : > { %v5601_v11 = vpack.c.bf16 %v5019_v36, %v5018_v26 }
 0x871   : > { %v1819_v38 = vpop.xlane.xlu1 %1818 }
 0x872   : > { %5810 = vrcp.f32 %v1819_v38  ;;  %v5021_v38 = vld [vmem:[%s6700_s12 + $0x38] sm:$0xff] }
 0x87c   : > { %v5811_v39 = vpop.eup %5810 }
 0x87d   : > { %v1821_v40 = vmul.f32 %v5811_v39, %v5809_v34 }
 0x87f   : > { %5326 = vmatmul.mubr.msk.f32.vlgmr.msra.gmra.mrb[12].mxu0 %vm1020_vm2, %v1821_v40 }
 0x880   : > { %5341 = vmatprep.mubr.msk.f32.mxu0 %vm5863_vm0, %v5864_v6  ;;  %5589 = vmatpush3.bf16.msra.mxu0 %v5588_v0 }
 0x881   : > { %5590 = vmatprep.subr.bf16.mxu0 %v5862_v3 }
 0x884   : > { %5592 = vmatpush3.bf16.msra.mxu0 %v5591_v4 }
 0x885   : > { %5602 = vmatprep.subr.bf16.mxu0 %v5601_v11 }
 0x952   : > { %v1894_v41 = vpop.f32.mrb[12].mxu0 }
 0x953   : > { %v5327_v42 = vpop.f32.mrb[13].mxu0  ;;  %5331 = vmatmul.mubr.msk.f32.vlgmr.msra.gmra.mrb[10].mxu1 %vm1020_vm2, %v1894_v41 }
 0x954   : > { %5352 = vmatprep.mubr.msk.f32.mxu1 %vm937_vm1, %v2094_v60 }
 0xa26   : > { %v1967_v44 = vpop.f32.mrb[10].mxu1 }
 0xa27   : > { %v1971_v45 = vadd.f32 %v1967_v44, %v1732_v37  ;;  %v5332_v46 = vpop.f32.mrb[11].mxu1  ;;  %v5020_v37 = vld [vmem:[%s6700_s12 + $0x30] sm:$0xff] }
 0xa28   : > { %v5605_v40 = vpack.c.bf16 %v5021_v38, %v5020_v37 }
 0xa29   : > { %v1978_v47 = vadd.f32 %v5010_v43, %v1971_v45  ;;  %v2284_v43 = vld [vmem:[%s901_s1] sm:$0x1] }
 0xa2a   : > { %v2285_v44 = vsub.f32 1.0, %v2284_v43 }
 0xa2b   : > { %v1979_v48 = vadd.f32 %v1978_v47, %v6047_v8  ;;  %v5593_v8 = vpack.c.bf16 %v2097_v56, %v2096_v55 }
 0xa2c   : > { %v2286_v45 = vmul.f32 -1e+09, %v2285_v44 }
 0xa2d   : > { %v1980_v49 = vsel %vm937_vm1, %v1979_v48, 0.0  ;;  %5594 = vmatprep.subr.bf16.mxu1 %v5593_v8 }
 0xa2e   : > { %1981 = vadd.xlane.f32.xlu1 %v1980_v49  ;;  %5596 = vmatpush3.bf16.msra.mxu1 %v5593_v8  ;;  %v6268_v46 = vrot.slane %v2286_v45, %v6081_v23 }
 0xa2f   : > { %5598 = vmatprep.subr.bf16.mxu1 %v5597_v59 }
 0xa32   : > { %5600 = vmatpush3.bf16.msra.mxu1 %v5597_v59 }
 0xa33   : > { %5609 = vmatprep.subr.bf16.mxu1 %v5862_v3 }
 0xa35   : > { %5353 = vmatmul.mubr.msk.f32.vlgmr.msra.gmra.mrb[12].mxu1 %vm937_vm1, %v2095_v61 }
 0xa36   : > { %5370 = vmatprep.mubr.msk.f32.mxu1 %vm5863_vm0, %v5864_v6 }
 0xabb   : > { %v1982_v50 = vpop.xlane.xlu1 %1981 }
 0xabc   : > { %v1984_v51 = vmul.f32 0.03125, %v1982_v50 }
 0xabe   : > { %v1985_v52 = vsub.f32 %v1979_v48, %v1984_v51 }
 0xac0   : > { %v1986_v53 = vmul.f32 %v1985_v52, %v1985_v52 }
 0xac2   : > { %v1987_v54 = vsel %vm937_vm1, %v1986_v53, 0.0 }
 0xac3   : > { %1988 = vadd.xlane.f32.xlu1 %v1987_v54 }
 0xb08   : > { %v5354_v19 = vpop.f32.mrb[12].mxu1 }
 0xb09   : > { %v2185_v13 = vadd.f32 %v5354_v19, %v5015_v18  ;;  %v2179_v20 = vpop.f32.mrb[13].mxu1 }
 0xb0a   : > { %v2180_v21 = vadd.f32 %v5015_v18, %v2179_v20 }
 0xb0c   : > { %v5610_v24 = vpack.c.bf16 %v2185_v13, %v2180_v21  ;;  %v6222_v25 = vpack.i.bf16 %v2185_v13, %v2180_v21 }
 0xb0e   : > { %5737 = vrot.lane.b32.xlu1 %v6222_v25, %s6676_s9  ;;  %5612 = vmatpush3.bf16.xpose.msk.msra.mxu1 %vm6218_vm4, %v5610_v24 }
 0xb0f   : > { %5617 = vmatprep.subr.bf16.mxu1 %v5862_v3 }
 0xb50   : > { %v1989_v5 = vpop.xlane.xlu1 %1988 }
 0xb51   : > { %v1990_v7 = vmul.f32 0.03125, %v1989_v5 }
 0xb53   : > { %v1991_v9 = vadd.f32 1e-12, %v1990_v7 }
 0xb55   : > { %5812 = vrsqrt.f32 %v1991_v9 }
 0xb5f   : > { %v5813_v10 = vpop.eup %5812 }
 0xb60   : > { %v1993_v14 = vmul.f32 %v5813_v10, %v1985_v52 }
 0xb62   : > { %v2001_v16 = vmul.f32 %v5011_v12, %v1993_v14 }
 0xb64   : > { %v6209_v17 = vadd.f32 %v5012_v15, %v2001_v16  ;;  %v5026_v16 = vld [vmem:[%s6662_s18 + $0x20] sm:$0xff] }
 0xb66   : > { %5342 = vmatmul.mubr.msk.f32.vlgmr.msra.gmra.mrb[14].mxu0 %vm937_vm1, %v6209_v17 }
 0xb67   : > { %5604 = vmatpush3.bf16.msra.mxu0 %v5601_v11 }
 0xb68   : > { %5606 = vmatprep.subr.bf16.mxu0 %v5605_v40 }
 0xb6b   : > { %5608 = vmatpush3.bf16.msra.mxu0 %v5605_v40 }
 0xb6c   : > { %5613 = vmatprep.subr.bf16.mxu0 %v5862_v3 }
 0xb80   : > { %v5738_v27 = vpop.permute.xlu1 %5737 }
 0xb81   : > { %v5740_v29 = vunpack.i.h.bf16 %v5738_v27  ;;  %v5739_v30 = vunpack.i.l.bf16 %v5738_v27  ;;  %v5027_v27 = vld [vmem:[%s6662_s18 + $0x28] sm:$0xff] }
 0xb83   : > { %v5618_v34 = vpack.c.bf16 %v5740_v29, %v5739_v30 }
 0xc39   : > { %v2090_v31 = vpop.f32.mrb[14].mxu0 }
 0xc3a   : > { %v2091_v32 = vadd.f32 %v5013_v28, %v2090_v31  ;;  %v5343_v33 = vpop.f32.mrb[15].mxu0 }
 0xc3c   : > { %v2294_v35 = vmul.f32 0.35355338, %v2091_v32 }
 0xc3e   : > { %2469 = vrot.lane.b32.xlu0 %v2294_v35, %s6676_s9  ;;  %5371 = vmatmul.mubr.msk.f32.vlgmr.msra.gmra.mrb[14].mxu1 %vm1020_vm2, %v2294_v35  ;;  %s6707_s9 = sld [smem:[#allocation4_spill]] }
 0xc3f   : > { %5620 = vmatpush3.bf16.xpose.msk.msra.mxu1 %vm6218_vm4, %v5618_v34  ;;  %5384 = vmatprep.mubr.msk.f32.mxu1 %vm5863_vm0, %v5864_v6 }
 0xc40   : > { %5399 = vmatprep.subr.mxu1 %v5864_v6 }
 0xc44   : > { %s885_s29 = scalar_lea.vmem %s6707_s9, %s6179_s5  ;;  %s6716_s5 = sld [smem:[#allocation9_spill]] }
 0xc45   : > { %v2188_v39 = vld [vmem:[%s885_s29] sm:$0xff]  ;;  %v2189_v41 = vld [vmem:[%s885_s29 + $0x8] sm:$0x3]  ;;  %s6709_s29 = smov 112  }
 0xc46   : > { %5363 = vmatprep.mubr.msk.f32.mxu0 %vm937_vm1, %v2188_v39 }
 0xc47   : > { %5364 = vmatmul.mubr.msk.f32.vlgmr.msra.gmra.mrb[16].mxu0 %vm937_vm1, %v2189_v41 }
 0xc48   : > { %5377 = vmatprep.mubr.msk.f32.mxu0 %vm5863_vm0, %v5864_v6 }
 0xcb0   : > { %v2470_v42 = vpop.permute.xlu0 %2469 }
 0xcb1   : > { %5385 = vmatmul.mubr.msk.f32.vlgmr.msra.gmra.mrb[16].mxu1 %vm1020_vm2, %v2470_v42 }
 0xcb2   : > { %5401 = vmatprep.mubr.msk.f32.mxu1 %vm5863_vm0, %v5864_v6  ;;  %5400 = vmatpush3.msra.mxu1 %v5026_v16 }
 0xcb3   : > { %5629 = vmatprep.subr.bf16.mxu1 %v5862_v3 }
 0xd11   : > { %v2376_v47 = vpop.f32.mrb[14].mxu1 }
 0xd12   : > { %v2377_v48 = vadd.f32 %v2376_v47, %v6268_v46  ;;  %v5372_v49 = vpop.f32.mrb[15].mxu1 }
 0xd14   : > { %v2381_v50 = vsel %vm2380_vm5, %v2377_v48, -inf }
 0xd15   : > { %2382 = vmax.xlane.f32.xlu0 %v2381_v50 }
 0xd1a   : > { %v5365_v57 = vpop.f32.mrb[16].mxu0 }
 0xd1b   : > { %v2281_v59 = vadd.f32 %v5365_v57, %v5023_v58  ;;  %v2275_v60 = vpop.f32.mrb[17].mxu0 }
 0xd1c   : > { %v2276_v61 = vadd.f32 %v5023_v58, %v2275_v60 }
 0xd1e   : > { %v5614_v62 = vpack.c.bf16 %v2281_v59, %v2276_v61  ;;  %v6281_v63 = vpack.i.bf16 %v2281_v59, %v2276_v61 }
 0xd20   : > { %5616 = vmatpush3.bf16.msk.msra.mxu0 %vm6285_vm8, %v5614_v62 }
 0xd21   : > { %5621 = vmatprep.subr.bf16.mxu0 %v5862_v3 }
 0xd84   : > { %v2547_v51 = vpop.f32.mrb[16].mxu1 }
 0xd85   : > { %v2548_v52 = vadd.f32 %v2547_v51, %v6268_v46  ;;  %v5386_v53 = vpop.f32.mrb[17].mxu1 }
 0xd87   : > { %v2551_v54 = vsel %vm2380_vm5, %v2548_v52, -inf }
 0xd88   : > { %2552 = vmax.xlane.f32.xlu1 %v2551_v54 }
 0xd99   : > { %5747 = vrot.lane.b32.xlu1 %v6222_v25, %s6709_s29 }
 0xd9d   : > { %2789 = vrot.lane.b32.xlu1 %v2294_v35, %s6709_s29 }
 0xda1   : > { %3036 = vrot.lane.b32.xlu1 %v2294_v35, %s6710_s30 }
 0xda2   : > { %v2383_v55 = vpop.xlane.xlu0 %2382 }
 0xda3   : > { %v2384_v56 = vsub.f32 %v2377_v48, %v2383_v55 }
 0xda5   : > { %v2385_v8 = vmul.f32 1.442695, %v2384_v56 }
 0xda7   : > { %5814 = vpow2.f32 %v2385_v8 }
 0xdb1   : > { %v5815_v0 = vpop.eup %5814 }
 0xdb2   : > { %v2387_v1 = vsel %vm2380_vm5, %v5815_v0, 0.0 }
 0xdb3   : > { %2388 = vadd.xlane.f32.xlu0 %v2387_v1 }
 0xe15   : > { %v2553_v4 = vpop.xlane.xlu1 %2552 }
 0xe16   : > { %v2554_v5 = vsub.f32 %v2548_v52, %v2553_v4 }
 0xe18   : > { %v2555_v7 = vmul.f32 1.442695, %v2554_v5 }
 0xe19   : > { %v5748_v30 = vpop.permute.xlu1 %5747 }
 0xe1a   : > { %5816 = vpow2.f32 %v2555_v7  ;;  %v5750_v31 = vunpack.i.h.bf16 %v5748_v30  ;;  %v5749_v32 = vunpack.i.l.bf16 %v5748_v30 }
 0xe1c   : > { %v5626_v33 = vpack.c.bf16 %v5750_v31, %v5749_v32 }
 0xe1d   : > { %v2790_v11 = vpop.permute.xlu1 %2789 }
 0xe21   : > { %v3037_v39 = vpop.permute.xlu1 %3036 }
 0xe24   : > { %v5817_v9 = vpop.eup %5816 }
 0xe25   : > { %v2557_v10 = vsel %vm2380_vm5, %v5817_v9, 0.0 }
 0xe26   : > { %2558 = vadd.xlane.f32.xlu0 %v2557_v10  ;;  %v5028_v10 = vld [vmem:[%s6662_s18 + $0x30] sm:$0xff] }
 0xe3c   : > { %5742 = vrot.lane.b32.xlu0 %v6281_v63, %s6713_s7 }
 0xe40   : > { %v2389_v12 = vpop.xlane.xlu0 %2388  ;;  %5752 = vrot.lane.b32.xlu0 %v6222_v25, %s6710_s30 }
 0xe41   : > { %5818 = vrcp.f32 %v2389_v12 }
 0xe4b   : > { %v5819_v14 = vpop.eup %5818 }
 0xe4c   : > { %v2391_v15 = vmul.f32 %v5819_v14, %v5815_v0 }
 0xe4e   : > { %5378 = vmatmul.mubr.msk.f32.vlgmr.msra.gmra.mrb[18].mxu0 %vm2380_vm5, %v2391_v15 }
 0xe4f   : > { %5391 = vmatprep.mubr.msk.f32.mxu0 %vm5863_vm0, %v5864_v6 }
 0xeb3   : > { %v2559_v18 = vpop.xlane.xlu0 %2558 }
 0xeb4   : > { %5820 = vrcp.f32 %v2559_v18 }
 0xeb7   : > { %v5743_v19 = vpop.permute.xlu0 %5742 }
 0xeb8   : > { %v5745_v13 = vunpack.i.h.bf16 %v5743_v19  ;;  %v5744_v20 = vunpack.i.l.bf16 %v5743_v19 }
 0xeba   : > { %v5622_v21 = vpack.c.bf16 %v5745_v13, %v5744_v20 }
 0xebb   : > { %v5753_v35 = vpop.permute.xlu0 %5752 }
 0xebc   : > { %5624 = vmatpush3.bf16.msk.msra.mxu0 %vm6285_vm8, %v5622_v21  ;;  %v5755_v36 = vunpack.i.h.bf16 %v5753_v35  ;;  %v5754_v37 = vunpack.i.l.bf16 %v5753_v35  ;;  %v5029_v21 = vld [vmem:[%s6662_s18 + $0x38] sm:$0xff] }
 0xebd   : > { %5394 = vmatprep.subr.mxu0 %v5864_v6 }
 0xebe   : > { %v5821_v24 = vpop.eup %5820  ;;  %v5634_v38 = vpack.c.bf16 %v5755_v36, %v5754_v37 }
 0xebf   : > { %v2561_v25 = vmul.f32 %v5821_v24, %v5817_v9 }
 0xec1   : > { %5392 = vmatmul.mubr.msk.f32.vlgmr.msra.gmra.mrb[20].mxu0 %vm2380_vm5, %v2561_v25 }
 0xec2   : > { %5395 = vmatpush3.msra.mxu0 %v5027_v27  ;;  %5396 = vmatprep.mubr.msk.f32.mxu0 %vm5863_vm0, %v5864_v6 }
 0xec3   : > { %5625 = vmatprep.subr.bf16.mxu0 %v5862_v3 }
 0xf21   : > { %v2465_v28 = vpop.f32.mrb[18].mxu0 }
 0xf22   : > { %v5379_v29 = vpop.f32.mrb[19].mxu0  ;;  %5402 = vmatmul.mubr.msk.f32.vlgmr.msra.gmra.mrb[18].mxu1 %vm1020_vm2, %v2465_v28 }
 0xf23   : > { %5415 = vmatprep.mubr.msk.f32.mxu1 %vm5863_vm0, %v5864_v6  ;;  %v5055_v29 = vld [vmem:[%s6663_s19 + $0x1] ss:$0 sm:$0xff] }
 0xf94   : > { %v2639_v34 = vpop.f32.mrb[20].mxu0 }
 0xf95   : > { %v5393_v26 = vpop.f32.mrb[21].mxu0  ;;  %5397 = vmatmul.mubr.msk.f32.vlgmr.msra.gmra.mrb[22].mxu0 %vm1020_vm2, %v2639_v34 }
 0xf96   : > { %5628 = vmatpush3.bf16.xpose.msk.msra.mxu0 %vm6218_vm4, %v5626_v33  ;;  %5408 = vmatprep.mubr.msk.f32.mxu0 %vm5863_vm0, %v5864_v6 }
 0xf97   : > { %5633 = vmatprep.subr.bf16.mxu0 %v5862_v3 }
 0xf9d   : > { %5409 = vmatmul.mubr.msk.f32.vlgmr.msra.gmra.mrb[24].mxu0 %vm1020_vm2, %v2790_v11 }
 0xf9e   : > { %5636 = vmatpush3.bf16.xpose.msk.msra.mxu0 %vm6218_vm4, %v5634_v38  ;;  %5427 = vmatprep.mubr.msk.f32.mxu0 %vm5863_vm0, %v5864_v6 }
 0xf9f   : > { %5641 = vmatprep.subr.bf16.mxu0 %v5862_v3 }
 0xfa5   : > { %5428 = vmatmul.mubr.msk.f32.vlgmr.msra.gmra.mrb[26].mxu0 %vm1020_vm2, %v3037_v39  ;;  %v3408_v39 = vld [vmem:[%s6660_s16] sm:$0xff] }
 0xfa6   : > { %5450 = vmatprep.mubr.msk.f32.mxu0 %vm5863_vm0, %v5864_v6 }
 0xff5   : > { %v2785_v40 = vpop.f32.mrb[18].mxu1 }
 0xff6   : > { %v5403_v41 = vpop.f32.mrb[19].mxu1 }
 0xff7   : > { %v3410_v41 = vld [vmem:[%s6660_s16 + $0x10] sm:$0xff] }
0x1068   : > { %v2712_v42 = vpop.f32.mrb[22].mxu0 }
0x1069   : > { %v2786_v43 = vadd.f32 %v2785_v40, %v2712_v42  ;;  %v5398_v44 = vpop.f32.mrb[23].mxu0  ;;  %v3409_v40 = vld [vmem:[%s6660_s16 + $0x8] sm:$0xff]  ;;  %v3411_v42 = vld [vmem:[%s6660_s16 + $0x18] sm:$0xff] }
0x106a   : > { %v3406_v44 = vld [vmem:[%s890_s11] sm:$0xff] }
0x1070   : > { %v2867_v45 = vpop.f32.mrb[24].mxu0 }
0x1071   : > { %v2868_v47 = vadd.f32 %v2867_v45, %v6268_v46  ;;  %v5410_v48 = vpop.f32.mrb[25].mxu0  ;;  %v3407_v45 = vld [vmem:[%s890_s11 + $0x8] sm:$0xf]  ;;  %s904_s11 = scalar_lea.vmem %s6716_s5, %s6721_s3 }
0x1072   : > { %v3323_v48 = vld [vmem:[%s6658_s14 + $0x8] sm:$0xff] }
0x1073   : > { %v2871_v49 = vsel %vm2380_vm5, %v2868_v47, -inf }
0x1074   : > { %2872 = vmax.xlane.f32.xlu0 %v2871_v49 }
0x1078   : > { %v3114_v50 = vpop.f32.mrb[26].mxu0 }
0x1079   : > { %v5429_v51 = vpop.f32.mrb[27].mxu0  ;;  %v3115_v59 = vadd.f32 %v3114_v50, %v6268_v46  ;;  %v3324_v50 = vld [vmem:[%s6658_s14 + $0x10] sm:$0xff] }
0x107a   : > { %v3325_v51 = vld [vmem:[%s6658_s14 + $0x18] sm:$0xff] }
0x107b   : > { %v3118_v61 = vsel %vm2380_vm5, %v3115_v59, -inf }
0x108a   : > { %5757 = vrot.lane.b32.xlu0 %v6281_v63, %s6709_s29 }
0x1101   : > { %v2873_v52 = vpop.xlane.xlu0 %2872 }
0x1102   : > { %v2874_v53 = vsub.f32 %v2868_v47, %v2873_v52  ;;  %v3322_v47 = vld [vmem:[%s6658_s14] sm:$0xff]  ;;  %v5645_v52 = vpack.c.bf16 %v3325_v51, %v3324_v50 }
0x1103   : > { %v5642_v49 = vpack.c.bf16 %v3323_v48, %v3322_v47 }
0x1104   : > { %v2875_v54 = vmul.f32 1.442695, %v2874_v53 }
0x1105   : > { %v5758_v55 = vpop.permute.xlu0 %5757  ;;  %5643 = vmatpush3.bf16.msra.mxu0 %v5642_v49 }
0x1106   : > { %5822 = vpow2.f32 %v2875_v54  ;;  %v5760_v56 = vunpack.i.h.bf16 %v5758_v55  ;;  %v5759_v8 = vunpack.i.l.bf16 %v5758_v55  ;;  %5644 = vmatprep.subr.bf16.mxu0 %v5862_v3 }
0x1108   : > { %v5630_v57 = vpack.c.bf16 %v5760_v56, %v5759_v8  ;;  %v5057_v8 = vld [vmem:[%s6664_s20 + $0x1] ss:$0 sm:$0xff] }
0x1109   : > { %5646 = vmatpush3.bf16.msra.mxu0 %v5645_v52 }
0x110a   : > { %5632 = vmatpush3.bf16.msk.msra.mxu1 %vm6285_vm8, %v5630_v57 }
0x110b   : > { %5418 = vmatprep.subr.mxu1 %v5864_v6 }
0x1110   : > { %v5823_v58 = vpop.eup %5822 }
0x1111   : > { %v2877_v60 = vsel %vm2380_vm5, %v5823_v58, 0.0 }
0x1112   : > { %2878 = vadd.xlane.f32.xlu1 %v2877_v60 }
0x1116   : > { %3119 = vmax.xlane.f32.xlu1 %v3118_v61  ;;  %v5062_v61 = vld [vmem:[%s6661_s17] ss:$0 sm:$0xff] }
0x119f   : > { %v2879_v62 = vpop.xlane.xlu1 %2878 }
0x11a0   : > { %5824 = vrcp.f32 %v2879_v62 }
0x11a3   : > { %v3120_v0 = vpop.xlane.xlu1 %3119 }
0x11a4   : > { %v3121_v1 = vsub.f32 %v3115_v59, %v3120_v0 }
0x11a6   : > { %v3122_v4 = vmul.f32 1.442695, %v3121_v1 }
0x11a8   : > { %5826 = vpow2.f32 %v3122_v4 }
0x11aa   : > { %v5825_v5 = vpop.eup %5824 }
0x11ab   : > { %v2881_v7 = vmul.f32 %v5825_v5, %v5823_v58  ;;  %v5059_v58 = vld [vmem:[%s6665_s21 + $0x1] ss:$0 sm:$0xff] }
0x11ad   : > { %5416 = vmatmul.mubr.msk.f32.vlgmr.msra.gmra.mrb[20].mxu1 %vm2380_vm5, %v2881_v7 }
0x11ae   : > { %5420 = vmatprep.mubr.msk.f32.mxu1 %vm5863_vm0, %v5864_v6  ;;  %5419 = vmatpush3.msra.mxu1 %v5028_v10 }
0x11af   : > { %5637 = vmatprep.subr.bf16.mxu1 %v5862_v3 }
0x11b2   : > { %v5827_v46 = vpop.eup %5826 }
0x11b3   : > { %v3124_v9 = vsel %vm2380_vm5, %v5827_v46, 0.0 }
0x11b4   : > { %3125 = vadd.xlane.f32.xlu1 %v3124_v9  ;;  %v5060_v9 = vld [vmem:[%s6659_s15] ss:$0 sm:$0xff] }
0x11c5   : > { %5762 = vrot.lane.b32.xlu1 %v6281_v63, %s6710_s30 }
0x1241   : > { %v3126_v12 = vpop.xlane.xlu1 %3125 }
0x1242   : > { %5828 = vrcp.f32 %v3126_v12 }
0x1245   : > { %v5763_v14 = vpop.permute.xlu1 %5762 }
0x1246   : > { %v5765_v15 = vunpack.i.h.bf16 %v5763_v14  ;;  %v5764_v16 = vunpack.i.l.bf16 %v5763_v14 }
0x1248   : > { %v5638_v19 = vpack.c.bf16 %v5765_v15, %v5764_v16 }
0x124c   : > { %v5829_v18 = vpop.eup %5828 }
0x124d   : > { %v3128_v63 = vmul.f32 %v5829_v18, %v5827_v46 }
0x1280   : > { %v2958_v13 = vpop.f32.mrb[20].mxu1 }
0x1281   : > { %v5417_v20 = vpop.f32.mrb[21].mxu1  ;;  %5421 = vmatmul.mubr.msk.f32.vlgmr.msra.gmra.mrb[22].mxu1 %vm1020_vm2, %v2958_v13  ;;  %v5065_v13 = vld [vmem:[%s6660_s16 + $0x20] sm:$0xff] }
0x1282   : > { %5640 = vmatpush3.bf16.msk.msra.mxu1 %vm6285_vm8, %v5638_v19  ;;  %5434 = vmatprep.mubr.msk.f32.mxu1 %vm5863_vm0, %v5864_v6  ;;  %v5066_v20 = vld [vmem:[%s6660_s16 + $0x28] sm:$0xff] }
0x1283   : > { %5437 = vmatprep.subr.mxu1 %v5864_v6 }
0x1285   : > { %5435 = vmatmul.mubr.msk.f32.vlgmr.msra.gmra.mrb[24].mxu1 %vm2380_vm5, %v3128_v63  ;;  %v5067_v63 = vld [vmem:[%s6660_s16 + $0x30] sm:$0xff] }
0x1286   : > { %5439 = vmatprep.mubr.msk.f32.mxu1 %vm5863_vm0, %v5864_v6  ;;  %5438 = vmatpush3.msra.mxu1 %v5029_v21  ;;  %v5655_v21 = vpack.c.bf16 %v5066_v20, %v5065_v13 }
0x1288   : > { %5656 = vmatprep.subr.bf16.mxu0 %v5655_v21 }
0x1354   : > { %v3031_v24 = vpop.f32.mrb[22].mxu1 }
0x1355   : > { %v3035_v25 = vadd.f32 %v3031_v24, %v2786_v43  ;;  %v5422_v2 = vpop.f32.mrb[23].mxu1  ;;  %v5651_v43 = vpack.c.bf16 %v3411_v42, %v3410_v41  ;;  %v5068_v24 = vld [vmem:[%s6660_s16 + $0x38] sm:$0xff]  ;;  %v5070_v41 = vld [vmem:[%s6661_s17 + $0x1] ss:$0 sm:$0xff] }
0x1356   : > { %v5659_v2 = vpack.c.bf16 %v5068_v24, %v5067_v63 }
0x1358   : > { %v3205_v27 = vpop.f32.mrb[24].mxu1 }
0x1359   : > { %v5436_v28 = vpop.f32.mrb[25].mxu1  ;;  %5440 = vmatmul.mubr.msk.f32.vlgmr.msra.gmra.mrb[26].mxu1 %vm1020_vm2, %v3205_v27  ;;  %v3501_v27 = vld [vmem:[%s895_s6 + $0x8] sm:$0xf] }
0x135a   : > { %5461 = vmatprep.mubr.msk.f32.mxu1 %vm937_vm1, %v3406_v44 }
0x142c   : > { %v3278_v30 = vpop.f32.mrb[26].mxu1 }
0x142d   : > { %v3282_v31 = vadd.f32 %v3278_v30, %v3035_v25  ;;  %v5441_v32 = vpop.f32.mrb[27].mxu1  ;;  %v3500_v25 = vld [vmem:[%s895_s6] sm:$0xff] }
0x142f   : > { %v3289_v33 = vadd.f32 %v5055_v29, %v3282_v31  ;;  %v3596_v29 = vld [vmem:[%s904_s11] sm:$0x1] }
0x1430   : > { %v3597_v30 = vsub.f32 1.0, %v3596_v29 }
0x1431   : > { %v3290_v34 = vadd.f32 %v3289_v33, %v6209_v17  ;;  %v5647_v17 = vpack.c.bf16 %v3409_v40, %v3408_v39 }
0x1432   : > { %v3598_v31 = vmul.f32 -1e+09, %v3597_v30 }
0x1433   : > { %v3291_v35 = vsel %vm937_vm1, %v3290_v34, 0.0  ;;  %5648 = vmatprep.subr.bf16.mxu1 %v5647_v17 }
0x1434   : > { %3292 = vadd.xlane.f32.xlu0 %v3291_v35  ;;  %5650 = vmatpush3.bf16.msra.mxu1 %v5647_v17  ;;  %v6465_v32 = vrot.slane %v3598_v31, %v6081_v23 }
0x1435   : > { %5652 = vmatprep.subr.bf16.mxu1 %v5651_v43 }
0x1438   : > { %5654 = vmatpush3.bf16.msra.mxu1 %v5651_v43 }
0x1439   : > { %5663 = vmatprep.subr.bf16.mxu1 %v5862_v3 }
0x143b   : > { %5462 = vmatmul.mubr.msk.f32.vlgmr.msra.gmra.mrb[28].mxu1 %vm937_vm1, %v3407_v45 }
0x143c   : > { %5479 = vmatprep.mubr.msk.f32.mxu1 %vm5863_vm0, %v5864_v6 }
0x14c1   : > { %v3293_v26 = vpop.xlane.xlu0 %3292 }
0x14c2   : > { %v3294_v36 = vmul.f32 0.03125, %v3293_v26 }
0x14c4   : > { %v3295_v37 = vsub.f32 %v3290_v34, %v3294_v36 }
0x14c6   : > { %v3296_v11 = vmul.f32 %v3295_v37, %v3295_v37 }
0x14c8   : > { %v3297_v38 = vsel %vm937_vm1, %v3296_v11, 0.0 }
0x14c9   : > { %3298 = vadd.xlane.f32.xlu1 %v3297_v38 }
0x150e   : > { %v5463_v62 = vpop.f32.mrb[28].mxu1 }
0x150f   : > { %v3497_v0 = vadd.f32 %v5463_v62, %v5062_v61  ;;  %v3491_v1 = vpop.f32.mrb[29].mxu1 }
0x1510   : > { %v3492_v4 = vadd.f32 %v5062_v61, %v3491_v1 }
0x1512   : > { %v5664_v5 = vpack.c.bf16 %v3497_v0, %v3492_v4  ;;  %v5766_v7 = vpack.i.bf16 %v3497_v0, %v3492_v4 }
0x1514   : > { %5767 = vrot.lane.b32.xlu0 %v5766_v7, %s6713_s7  ;;  %5666 = vmatpush3.bf16.xpose.msk.msra.mxu1 %vm6218_vm4, %v5664_v5 }
0x1515   : > { %5671 = vmatprep.subr.bf16.mxu1 %v5862_v3 }
0x1556   : > { %v3299_v53 = vpop.xlane.xlu1 %3298 }
0x1557   : > { %v3300_v54 = vmul.f32 0.03125, %v3299_v53 }
0x1559   : > { %v3301_v55 = vadd.f32 1e-12, %v3300_v54 }
0x155b   : > { %5830 = vrsqrt.f32 %v3301_v55 }
0x1565   : > { %v5831_v56 = vpop.eup %5830 }
0x1566   : > { %v3303_v57 = vmul.f32 %v5831_v56, %v3295_v37 }
0x1568   : > { %v3312_v59 = vmul.f32 %v5057_v8, %v3303_v57 }
0x156a   : > { %v6411_v60 = vadd.f32 %v5059_v58, %v3312_v59  ;;  %v5073_v58 = vld [vmem:[%s6662_s18 + $0x40] sm:$0xff] }
0x156c   : > { %5451 = vmatmul.mubr.msk.f32.vlgmr.msra.gmra.mrb[28].mxu0 %vm937_vm1, %v6411_v60 }
0x156d   : > { %5472 = vmatprep.mubr.msk.f32.mxu0 %vm937_vm1, %v3500_v25  ;;  %5658 = vmatpush3.bf16.msra.mxu0 %v5655_v21 }
0x156e   : > { %5660 = vmatprep.subr.bf16.mxu0 %v5659_v2 }
0x1571   : > { %5662 = vmatpush3.bf16.msra.mxu0 %v5659_v2 }
0x1572   : > { %5667 = vmatprep.subr.bf16.mxu0 %v5862_v3 }
0x1574   : > { %5473 = vmatmul.mubr.msk.f32.vlgmr.msra.gmra.mrb[30].mxu0 %vm937_vm1, %v3501_v27 }
0x1575   : > { %5486 = vmatprep.mubr.msk.f32.mxu0 %vm5863_vm0, %v5864_v6 }
0x1586   : > { %v5768_v46 = vpop.permute.xlu0 %5767 }
0x1587   : > { %v5770_v10 = vunpack.i.h.bf16 %v5768_v46  ;;  %v5769_v12 = vunpack.i.l.bf16 %v5768_v46 }
0x1589   : > { %v5672_v18 = vpack.c.bf16 %v5770_v10, %v5769_v12 }
0x163f   : > { %v3402_v14 = vpop.f32.mrb[28].mxu0 }
0x1640   : > { %v3403_v15 = vadd.f32 %v5060_v9, %v3402_v14  ;;  %v5452_v16 = vpop.f32.mrb[29].mxu0 }
0x1642   : > { %v6425_v19 = vmul.f32 0.35355338, %v3403_v15 }
0x1644   : > { %3781 = vrot.lane.b32.xlu1 %v6425_v19, %s6713_s7  ;;  %5480 = vmatmul.mubr.msk.f32.vlgmr.msra.gmra.mrb[30].mxu1 %vm1020_vm2, %v6425_v19 }
0x1645   : > { %5674 = vmatpush3.bf16.xpose.msk.msra.mxu1 %vm6218_vm4, %v5672_v18  ;;  %5493 = vmatprep.mubr.msk.f32.mxu1 %vm5863_vm0, %v5864_v6 }
0x1646   : > { %5508 = vmatprep.subr.mxu1 %v5864_v6 }
0x1647   : > { %v5474_v17 = vpop.f32.mrb[30].mxu0 }
0x1648   : > { %v3593_v42 = vadd.f32 %v5474_v17, %v5070_v41  ;;  %v3587_v43 = vpop.f32.mrb[31].mxu0 }
0x1649   : > { %v3588_v44 = vadd.f32 %v5070_v41, %v3587_v43 }
0x164b   : > { %v5668_v45 = vpack.c.bf16 %v3593_v42, %v3588_v44  ;;  %v6476_v47 = vpack.i.bf16 %v3593_v42, %v3588_v44 }
0x164d   : > { %5670 = vmatpush3.bf16.msk.msra.mxu0 %vm6480_vm11, %v5668_v45 }
0x164e   : > { %5675 = vmatprep.subr.bf16.mxu0 %v5862_v3 }
0x16b6   : > { %v3782_v28 = vpop.permute.xlu1 %3781 }
0x16b7   : > { %5494 = vmatmul.mubr.msk.f32.vlgmr.msra.gmra.mrb[32].mxu1 %vm1020_vm2, %v3782_v28 }
0x16b8   : > { %5510 = vmatprep.mubr.msk.f32.mxu1 %vm5863_vm0, %v5864_v6  ;;  %5509 = vmatpush3.msra.mxu1 %v5073_v58 }
0x16b9   : > { %5683 = vmatprep.subr.bf16.mxu1 %v5862_v3 }
0x1717   : > { %v3688_v33 = vpop.f32.mrb[30].mxu1 }
0x1718   : > { %v3689_v34 = vadd.f32 %v3688_v33, %v6465_v32  ;;  %v5481_v35 = vpop.f32.mrb[31].mxu1 }
0x171a   : > { %v3693_v26 = vsel %vm3692_vm9, %v3689_v34, -inf }
0x171b   : > { %3694 = vmax.xlane.f32.xlu0 %v3693_v26 }
0x178a   : > { %v3859_v36 = vpop.f32.mrb[32].mxu1 }
0x178b   : > { %v3860_v37 = vadd.f32 %v3859_v36, %v6465_v32  ;;  %v5495_v11 = vpop.f32.mrb[33].mxu1 }
0x178d   : > { %v3863_v38 = vsel %vm3692_vm9, %v3860_v37, -inf }
0x178e   : > { %3864 = vmax.xlane.f32.xlu1 %v3863_v38 }
0x179f   : > { %5777 = vrot.lane.b32.xlu1 %v5766_v7, %s6709_s29 }
0x17a3   : > { %5782 = vrot.lane.b32.xlu1 %v5766_v7, %s6710_s30  ;;  %v5074_v7 = vld [vmem:[%s6662_s18 + $0x48] sm:$0xff] }
0x17a8   : > { %v3695_v23 = vpop.xlane.xlu0 %3694 }
0x17a9   : > { %v3696_v39 = vsub.f32 %v3689_v34, %v3695_v23 }
0x17ab   : > { %v3697_v40 = vmul.f32 1.442695, %v3696_v39 }
0x17ad   : > { %5832 = vpow2.f32 %v3697_v40 }
0x17b7   : > { %v5833_v48 = vpop.eup %5832 }
0x17b8   : > { %v3699_v49 = vsel %vm3692_vm9, %v5833_v48, 0.0 }
0x17b9   : > { %3700 = vadd.xlane.f32.xlu0 %v3699_v49 }
0x181b   : > { %v3865_v51 = vpop.xlane.xlu1 %3864 }
0x181c   : > { %v3866_v52 = vsub.f32 %v3860_v37, %v3865_v51 }
0x181e   : > { %v3867_v53 = vmul.f32 1.442695, %v3866_v52 }
0x181f   : > { %v5778_v10 = vpop.permute.xlu1 %5777 }
0x1820   : > { %5834 = vpow2.f32 %v3867_v53  ;;  %v5780_v12 = vunpack.i.h.bf16 %v5778_v10  ;;  %v5779_v14 = vunpack.i.l.bf16 %v5778_v10  ;;  %v5075_v53 = vld [vmem:[%s6662_s18 + $0x50] sm:$0xff] }
0x1822   : > { %v5680_v15 = vpack.c.bf16 %v5780_v12, %v5779_v14 }
0x1823   : > { %v5783_v18 = vpop.permute.xlu1 %5782 }
0x1824   : > { %v5785_v13 = vunpack.i.h.bf16 %v5783_v18  ;;  %v5784_v20 = vunpack.i.l.bf16 %v5783_v18 }
0x1826   : > { %v5688_v63 = vpack.c.bf16 %v5785_v13, %v5784_v20 }
0x182a   : > { %v5835_v54 = vpop.eup %5834 }
0x182b   : > { %v3869_v55 = vsel %vm3692_vm9, %v5835_v54, 0.0 }
0x182c   : > { %3870 = vadd.xlane.f32.xlu0 %v3869_v55 }
0x1842   : > { %5772 = vrot.lane.b32.xlu0 %v6476_v47, %s6713_s7 }
0x1846   : > { %v3701_v56 = vpop.xlane.xlu0 %3700  ;;  %4101 = vrot.lane.b32.xlu0 %v6425_v19, %s6709_s29 }
0x1847   : > { %5836 = vrcp.f32 %v3701_v56 }
0x184a   : > { %4348 = vrot.lane.b32.xlu0 %v6425_v19, %s6710_s30 }
0x1851   : > { %v5837_v8 = vpop.eup %5836 }
0x1852   : > { %v3703_v57 = vmul.f32 %v5837_v8, %v5833_v48 }
0x1854   : > { %5487 = vmatmul.mubr.msk.f32.vlgmr.msra.gmra.mrb[32].mxu0 %vm3692_vm9, %v3703_v57 }
0x1855   : > { %5500 = vmatprep.mubr.msk.f32.mxu0 %vm5863_vm0, %v5864_v6 }
0x18b9   : > { %v3871_v59 = vpop.xlane.xlu0 %3870 }
0x18ba   : > { %5838 = vrcp.f32 %v3871_v59 }
0x18bd   : > { %v5773_v61 = vpop.permute.xlu0 %5772 }
0x18be   : > { %v5775_v62 = vunpack.i.h.bf16 %v5773_v61  ;;  %v5774_v0 = vunpack.i.l.bf16 %v5773_v61 }
0x18c0   : > { %v5676_v1 = vpack.c.bf16 %v5775_v62, %v5774_v0  ;;  %v5076_v62 = vld [vmem:[%s6662_s18 + $0x58] sm:$0xff] }
0x18c1   : > { %v4102_v21 = vpop.permute.xlu0 %4101 }
0x18c2   : > { %5678 = vmatpush3.bf16.msk.msra.mxu0 %vm6480_vm11, %v5676_v1 }
0x18c3   : > { %5503 = vmatprep.subr.mxu0 %v5864_v6 }
0x18c4   : > { %v5839_v4 = vpop.eup %5838 }
0x18c5   : > { %v3873_v5 = vmul.f32 %v5839_v4, %v5835_v54  ;;  %v4349_v24 = vpop.permute.xlu0 %4348 }
0x18c7   : > { %5501 = vmatmul.mubr.msk.f32.vlgmr.msra.gmra.mrb[34].mxu0 %vm3692_vm9, %v3873_v5 }
0x18c8   : > { %5504 = vmatpush3.msra.mxu0 %v5074_v7  ;;  %5505 = vmatprep.mubr.msk.f32.mxu0 %vm5863_vm0, %v5864_v6  ;;  %v5102_v7 = vld [vmem:[%s6663_s19 + $0x2] ss:$0 sm:$0xff] }
0x18c9   : > { %5679 = vmatprep.subr.bf16.mxu0 %v5862_v3 }
0x1927   : > { %v3777_v46 = vpop.f32.mrb[32].mxu0 }
0x1928   : > { %v5488_v9 = vpop.f32.mrb[33].mxu0  ;;  %5511 = vmatmul.mubr.msk.f32.vlgmr.msra.gmra.mrb[34].mxu1 %vm1020_vm2, %v3777_v46 }
0x1929   : > { %5524 = vmatprep.mubr.msk.f32.mxu1 %vm5863_vm0, %v5864_v6 }
0x199a   : > { %v3951_v16 = vpop.f32.mrb[34].mxu0 }
0x199b   : > { %v5502_v19 = vpop.f32.mrb[35].mxu0  ;;  %5506 = vmatmul.mubr.msk.f32.vlgmr.msra.gmra.mrb[36].mxu0 %vm1020_vm2, %v3951_v16 }
0x199c   : > { %5682 = vmatpush3.bf16.xpose.msk.msra.mxu0 %vm6218_vm4, %v5680_v15  ;;  %5517 = vmatprep.mubr.msk.f32.mxu0 %vm5863_vm0, %v5864_v6 }
0x199d   : > { %5687 = vmatprep.subr.bf16.mxu0 %v5862_v3 }
0x19a3   : > { %5518 = vmatmul.mubr.msk.f32.vlgmr.msra.gmra.mrb[38].mxu0 %vm1020_vm2, %v4102_v21 }
0x19a4   : > { %5690 = vmatpush3.bf16.xpose.msk.msra.mxu0 %vm6218_vm4, %v5688_v63  ;;  %5536 = vmatprep.mubr.msk.f32.mxu0 %vm5863_vm0, %v5864_v6  ;;  %v4635_v63 = vld [vmem:[%s6666_s22 + $0x8] sm:$0xff] }
0x19a5   : > { %5695 = vmatprep.subr.bf16.mxu0 %v5862_v3 }
0x19ab   : > { %5537 = vmatmul.mubr.msk.f32.vlgmr.msra.gmra.mrb[40].mxu0 %vm1020_vm2, %v4349_v24  ;;  %v4637_v24 = vld [vmem:[%s6666_s22 + $0x18] sm:$0xff] }
0x19ac   : > { %5559 = vmatprep.mubr.msk.f32.mxu0 %vm5863_vm0, %v5864_v6 }
0x19fb   : > { %v4097_v25 = vpop.f32.mrb[34].mxu1 }
0x19fc   : > { %v5512_v2 = vpop.f32.mrb[35].mxu1 }
0x1a6e   : > { %v4024_v27 = vpop.f32.mrb[36].mxu0 }
0x1a6f   : > { %v6529_v28 = vadd.f32 %v4097_v25, %v4024_v27  ;;  %v5507_v29 = vpop.f32.mrb[37].mxu0 }
0x1a76   : > { %v4179_v30 = vpop.f32.mrb[38].mxu0 }
0x1a77   : > { %v4180_v22 = vadd.f32 %v4179_v30, %v6465_v32  ;;  %v5519_v31 = vpop.f32.mrb[39].mxu0  ;;  %v5104_v30 = vld [vmem:[%s6664_s20 + $0x2] ss:$0 sm:$0xff] }
0x1a78   : > { %v5106_v31 = vld [vmem:[%s6665_s21 + $0x2] ss:$0 sm:$0xff] }
0x1a79   : > { %v4183_v33 = vsel %vm3692_vm9, %v4180_v22, -inf }
0x1a7a   : > { %4184 = vmax.xlane.f32.xlu1 %v4183_v33 }
0x1a7e   : > { %v4426_v34 = vpop.f32.mrb[40].mxu0 }
0x1a7f   : > { %v4427_v35 = vadd.f32 %v4426_v34, %v6465_v32  ;;  %v5538_v26 = vpop.f32.mrb[41].mxu0 }
0x1a80   : > { %v4728_v26 = vld [vmem:[%s6668_s24 + $0x8] sm:$0xff] }
0x1a81   : > { %v4430_v36 = vsel %vm3692_vm9, %v4427_v35, -inf }
0x1a82   : > { %4431 = vmax.xlane.f32.xlu1 %v4430_v36 }
0x1b07   : > { %v4185_v37 = vpop.xlane.xlu1 %4184 }
0x1b08   : > { %v4186_v11 = vsub.f32 %v4180_v22, %v4185_v37  ;;  %v4729_v37 = vld [vmem:[%s6668_s24 + $0x10] sm:$0xff] }
0x1b0a   : > { %v4187_v38 = vmul.f32 1.442695, %v4186_v11  ;;  %v4730_v11 = vld [vmem:[%s6668_s24 + $0x18] sm:$0xff] }
0x1b0c   : > { %5840 = vpow2.f32 %v4187_v38  ;;  %v5705_v38 = vpack.c.bf16 %v4730_v11, %v4729_v37 }
0x1b0f   : > { %v4432_v23 = vpop.xlane.xlu1 %4431 }
0x1b10   : > { %v4433_v39 = vsub.f32 %v4427_v35, %v4432_v23  ;;  %v4727_v35 = vld [vmem:[%s6668_s24] sm:$0xff] }
0x1b11   : > { %v5702_v36 = vpack.c.bf16 %v4728_v26, %v4727_v35  ;;  %v4731_v23 = vld [vmem:[%s6668_s24 + $0x20] sm:$0xff] }
0x1b12   : > { %v4434_v40 = vmul.f32 1.442695, %v4433_v39  ;;  %v4732_v39 = vld [vmem:[%s6668_s24 + $0x28] sm:$0xff] }
0x1b14   : > { %5842 = vpow2.f32 %v4434_v40  ;;  %v5708_v40 = vpack.c.bf16 %v4732_v39, %v4731_v23 }
0x1b16   : > { %v5841_v17 = vpop.eup %5840 }
0x1b17   : > { %v4189_v41 = vsel %vm3692_vm9, %v5841_v17, 0.0 }
0x1b18   : > { %4190 = vadd.xlane.f32.xlu0 %v4189_v41  ;;  %v4734_v41 = vld [vmem:[%s6668_s24 + $0x38] sm:$0xff] }
0x1b1e   : > { %v5843_v42 = vpop.eup %5842 }
0x1b1f   : > { %v4436_v43 = vsel %vm3692_vm9, %v5843_v42, 0.0 }
0x1b20   : > { %4437 = vadd.xlane.f32.xlu1 %v4436_v43  ;;  %v5107_v43 = vld [vmem:[%s6667_s23] ss:$0 sm:$0xff] }
0x1b2e   : > { %5787 = vrot.lane.b32.xlu0 %v6476_v47, %s6709_s29 }
0x1b31   : > { %5792 = vrot.lane.b32.xlu1 %v6476_v47, %s6710_s30 }
0x1ba5   : > { %v4191_v32 = vpop.xlane.xlu0 %4190 }
0x1ba6   : > { %5844 = vrcp.f32 %v4191_v32 }
0x1ba9   : > { %v5788_v44 = vpop.permute.xlu0 %5787 }
0x1baa   : > { %v5790_v45 = vunpack.i.h.bf16 %v5788_v44  ;;  %v5789_v48 = vunpack.i.l.bf16 %v5788_v44 }
0x1bac   : > { %v5684_v49 = vpack.c.bf16 %v5790_v45, %v5789_v48 }
0x1bad   : > { %v4438_v47 = vpop.xlane.xlu1 %4437 }
0x1bae   : > { %5686 = vmatpush3.bf16.msk.msra.mxu1 %vm6480_vm11, %v5684_v49  ;;  %5846 = vrcp.f32 %v4438_v47 }
0x1baf   : > { %5527 = vmatprep.subr.mxu1 %v5864_v6 }
0x1bb0   : > { %v5845_v51 = vpop.eup %5844 }
0x1bb1   : > { %v4193_v52 = vmul.f32 %v5845_v51, %v5841_v17  ;;  %v5793_v54 = vpop.permute.xlu1 %5792  ;;  %v4733_v17 = vld [vmem:[%s6668_s24 + $0x30] sm:$0xff] }
0x1bb2   : > { %v5795_v55 = vunpack.i.h.bf16 %v5793_v54  ;;  %v5794_v56 = vunpack.i.l.bf16 %v5793_v54 }
0x1bb3   : > { %5525 = vmatmul.mubr.msk.f32.vlgmr.msra.gmra.mrb[36].mxu1 %vm3692_vm9, %v4193_v52 }
0x1bb4   : > { %5528 = vmatpush3.msra.mxu1 %v5075_v53  ;;  %5529 = vmatprep.mubr.msk.f32.mxu1 %vm5863_vm0, %v5864_v6  ;;  %v5692_v57 = vpack.c.bf16 %v5795_v55, %v5794_v56 }
0x1bb5   : > { %5691 = vmatprep.subr.bf16.mxu1 %v5862_v3 }
0x1bb8   : > { %v5847_v8 = vpop.eup %5846 }
0x1bb9   : > { %v4440_v61 = vmul.f32 %v5847_v8, %v5843_v42  ;;  %v5711_v42 = vpack.c.bf16 %v4734_v41, %v4733_v17 }
0x1c86   : > { %v4270_v58 = vpop.f32.mrb[36].mxu1 }
0x1c87   : > { %v5526_v59 = vpop.f32.mrb[37].mxu1  ;;  %5530 = vmatmul.mubr.msk.f32.vlgmr.msra.gmra.mrb[38].mxu1 %vm1020_vm2, %v4270_v58 }
0x1c88   : > { %5694 = vmatpush3.bf16.msk.msra.mxu1 %vm6480_vm11, %v5692_v57  ;;  %5543 = vmatprep.mubr.msk.f32.mxu1 %vm5863_vm0, %v5864_v6 }
0x1c89   : > { %5546 = vmatprep.subr.mxu1 %v5864_v6 }
0x1c8b   : > { %5544 = vmatmul.mubr.msk.f32.vlgmr.msra.gmra.mrb[40].mxu1 %vm3692_vm9, %v4440_v61 }
0x1c8c   : > { %5548 = vmatprep.mubr.msk.f32.mxu1 %vm5863_vm0, %v5864_v6  ;;  %5547 = vmatpush3.msra.mxu1 %v5076_v62 }
0x1c8d   : > { %5701 = vmatprep.subr.bf16.mxu1 %v5862_v3 }
0x1d5a   : > { %v4343_v50 = vpop.f32.mrb[38].mxu1 }
0x1d5b   : > { %v4347_v0 = vadd.f32 %v4343_v50, %v6529_v28  ;;  %v5531_v1 = vpop.f32.mrb[39].mxu1 }
0x1d5e   : > { %v4517_v4 = vpop.f32.mrb[40].mxu1 }
0x1d5f   : > { %v5545_v5 = vpop.f32.mrb[41].mxu1  ;;  %5549 = vmatmul.mubr.msk.f32.vlgmr.msra.gmra.mrb[42].mxu1 %vm1020_vm2, %v4517_v4 }
0x1d60   : > { %5578 = vmatprep.mubr.msk.f32.mxu1 %vm5863_vm0, %v5864_v6  ;;  %v4634_v6 = vld [vmem:[%s6666_s22] sm:$0xff]  ;;  %5703 = vmatpush3.bf16.msra.mxu1 %v5702_v36 }
0x1d61   : > { %v5696_v21 = vpack.c.bf16 %v4635_v63, %v4634_v6  ;;  %5704 = vmatprep.subr.bf16.mxu1 %v5862_v3 }
0x1d63   : > { %5697 = vmatpush3.bf16.msra.mxu0 %v5696_v21 }
0x1d64   : > { %5698 = vmatprep.subr.bf16.mxu0 %v5862_v3  ;;  %5706 = vmatpush3.bf16.msra.mxu1 %v5705_v38 }
0x1d65   : > { %5707 = vmatprep.subr.bf16.mxu1 %v5862_v3 }
0x1d68   : > { %5709 = vmatpush3.bf16.msra.mxu1 %v5708_v40 }
0x1d69   : > { %5710 = vmatprep.subr.bf16.mxu1 %v5862_v3  ;;  %v5109_v3 = vld [vmem:[%s6669_s25] ss:$0 sm:$0xff] }
0x1d6c   : > { %5712 = vmatpush3.bf16.msra.mxu1 %v5711_v42 }
0x1e32   : > { %v4590_v46 = vpop.f32.mrb[42].mxu1 }
0x1e33   : > { %v4594_v9 = vadd.f32 %v4590_v46, %v4347_v0  ;;  %v5550_v10 = vpop.f32.mrb[43].mxu1 }
0x1e34   : > { %v5112_v10 = vld [vmem:[%s6664_s20 + $0x3] ss:$0 sm:$0xff] }
0x1e35   : > { %v4601_v12 = vadd.f32 %v5102_v7, %v4594_v9 }
0x1e37   : > { %v4602_v14 = vadd.f32 %v4601_v12, %v6411_v60  ;;  %v4636_v60 = vld [vmem:[%s6666_s22 + $0x10] sm:$0xff] }
0x1e38   : > { %v5699_v25 = vpack.c.bf16 %v4637_v24, %v4636_v60 }
0x1e39   : > { %v4603_v15 = vsel %vm937_vm1, %v4602_v14, 0.0 }
0x1e3a   : > { %4604 = vadd.xlane.f32.xlu0 %v4603_v15  ;;  %5700 = vmatpush3.bf16.msra.mxu0 %v5699_v25 }
0x1ec7   : > { %v4605_v16 = vpop.xlane.xlu0 %4604 }
0x1ec8   : > { %v4606_v18 = vmul.f32 0.03125, %v4605_v16 }
0x1eca   : > { %v4607_v19 = vsub.f32 %v4602_v14, %v4606_v18  ;;  %v5114_v14 = vld [vmem:[%s6665_s21 + $0x3] ss:$0 sm:$0xff] }
0x1ecc   : > { %v4608_v13 = vmul.f32 %v4607_v19, %v4607_v19 }
0x1ece   : > { %v4609_v20 = vsel %vm937_vm1, %v4608_v13, 0.0 }
0x1ecf   : > { %4610 = vadd.xlane.f32.xlu1 %v4609_v20 }
0x1f5c   : > { %v4611_v2 = vpop.xlane.xlu1 %4610 }
0x1f5d   : > { %v4612_v27 = vmul.f32 0.03125, %v4611_v2 }
0x1f5f   : > { %v4613_v28 = vadd.f32 1e-12, %v4612_v27 }
0x1f61   : > { %5848 = vrsqrt.f32 %v4613_v28 }
0x1f6b   : > { %v5849_v29 = vpop.eup %5848 }
0x1f6c   : > { %v4615_v22 = vmul.f32 %v5849_v29, %v4607_v19 }
0x1f6e   : > { %v4624_v33 = vmul.f32 %v5104_v30, %v4615_v22 }
0x1f70   : > { %v4633_v34 = vadd.f32 %v5106_v31, %v4624_v33 }
0x1f72   : > { %5560 = vmatmul.mubr.msk.f32.vlgmr.msra.gmra.mrb[42].mxu0 %vm937_vm1, %v4633_v34 }
0x2045   : > { %v4714_v32 = vpop.f32.mrb[42].mxu0 }
0x2046   : > { %v4715_v44 = vadd.f32 %v5107_v43, %v4714_v32  ;;  %v5561_v45 = vpop.f32.mrb[43].mxu0 }
0x2048   : > { %v4719_v48 = vmul.f32 0.044715, %v4715_v44  ;;  %v4718_v54 = vmul.f32 0.5, %v4715_v44 }
0x204a   : > { %v4720_v49 = vmul.f32 %v4719_v48, %v4715_v44 }
0x204c   : > { %v4721_v51 = vmul.f32 %v4720_v49, %v4715_v44 }
0x204e   : > { %v4722_v52 = vadd.f32 %v4721_v51, %v4715_v44 }
0x2050   : > { %v4723_v53 = vmul.f32 0.7978846, %v4722_v52 }
0x2052   : > { %5850 = vtanh.f32 %v4723_v53 }
0x205c   : > { %v5851_v47 = vpop.eup %5850 }
0x205d   : > { %v4725_v55 = vadd.f32 1.0, %v5851_v47 }
0x205f   : > { %v4726_v56 = vmul.f32 %v4725_v55, %v4718_v54 }
0x2061   : > { %5579 = vmatmul.mubr.msk.f32.vlgmr.msra.gmra.mrb[44].mxu1 %vm4742_vm12, %v4726_v56 }
0x2134   : > { %v4812_v8 = vpop.f32.mrb[44].mxu1 }
0x2135   : > { %v4813_v57 = vadd.f32 %v5109_v3, %v4812_v8  ;;  %v5580_v58 = vpop.f32.mrb[45].mxu1 }
0x2137   : > { %v4816_v59 = vadd.f32 %v4813_v57, %v4633_v34 }
0x2139   : > { %v4817_v61 = vsel %vm937_vm1, %v4816_v59, 0.0 }
0x213a   : > { %4818 = vadd.xlane.f32.xlu0 %v4817_v61 }
0x21c7   : > { %v4819_v62 = vpop.xlane.xlu0 %4818 }
0x21c8   : > { %v4820_v50 = vmul.f32 0.03125, %v4819_v62 }
0x21ca   : > { %v4821_v0 = vsub.f32 %v4816_v59, %v4820_v50 }
0x21cc   : > { %v4822_v1 = vmul.f32 %v4821_v0, %v4821_v0 }
0x21ce   : > { %v4823_v4 = vsel %vm937_vm1, %v4822_v1, 0.0 }
0x21cf   : > { %4824 = vadd.xlane.f32.xlu0 %v4823_v4 }
0x225c   : > { %v4825_v5 = vpop.xlane.xlu0 %4824 }
0x225d   : > { %v4826_v7 = vmul.f32 0.03125, %v4825_v5 }
0x225f   : > { %v4827_v46 = vadd.f32 1e-12, %v4826_v7 }
0x2261   : > { %5852 = vrsqrt.f32 %v4827_v46 }
0x226b   : > { %v5853_v9 = vpop.eup %5852 }
0x226c   : > { %v4829_v12 = vmul.f32 %v5853_v9, %v4821_v0 }
0x226e   : > { %v4838_v15 = vmul.f32 %v5112_v10, %v4829_v12 }
0x2270   : > { %v4847_v16 = vadd.f32 %v5114_v14, %v4838_v15 }
0x2272   : > { %4848 = vst.msk [vmem:[%s908_s8] sm:$0xff] %vm937_vm1, %v4847_v16 }
0x2273 PF: > { %s36_s27 = sadd.s32 1, %s5860_s27  }
0x2274   : > { %p33_p4 = scmp.ge.s32.totalorder %s36_s27, 4  }
0x2276   :  { %35 = sbr.rel (!%p33_p4) target bundleno = 15 (0xf), region = 189 }

</bundles_post_ra>
